<compile_context>
chip_gen: v5e
topology: v5e:2x2
jax: 0.10.0
libtpu: 0.0.40
codegen_flags: <defaults>
</compile_context>

<pallas_src>
import functools

import jax
import jax.numpy as jnp
from jax.experimental import pallas as pl
from jax.experimental.pallas import tpu as pltpu

F32 = jnp.float32
BF16 = jnp.bfloat16
LANE = 128
SUB = 16  # bf16 sublane packing; row tiles kept multiples of 16


def _vmem_limit_bytes():
    try:
        cap = int(pltpu.get_tpu_info().vmem_capacity_bytes)
    except Exception:
        cap = 64 * 1024 * 1024  # conservative (v7x-sized) fallback
    return min(cap * 3 // 4, 100 * 1024 * 1024)


VMEM_LIMIT = _vmem_limit_bytes()
TILE_BUDGET = max(8 * 1024 * 1024, VMEM_LIMIT // 2)


def _round_up(x, m):
    return (x + m - 1) // m * m


def _apply_act(y, act):
    if act == "none":
        return y
    if act == "relu":
        return jnp.maximum(y, 0.0)
    if act == "leaky":
        return jnp.where(y >= 0.0, y, 0.2 * y)
    if act == "sigmoid":
        return 1.0 / (1.0 + jnp.exp(-y))
    raise ValueError(act)


def _pick_tm(m_pad, k, npad, out_bytes, g):
    """Largest row tile (multiple of 16, divides m_pad) whose double-buffered
    footprint fits the budget; prefers >=2 grid points when g == 1 and the
    slab is big enough (keeps both v7x TensorCores busy)."""
    def foot(t):
        return (2 * t * k * 2                 # A (bf16, double-buffered)
                + 2 * k * npad * 2            # B (bf16)
                + 2 * t * npad * out_bytes    # y at its real dtype
                + 2 * 8 * npad * 4            # stats block
                + 4 * (2 * k + npad))         # scale/shift/bias vectors
    want_multi = (g == 1 and m_pad >= 256)
    fallback = None
    for t in (2048, 1024, 512, 256, 128, 64, 32, 16):
        if m_pad % t:
            continue
        if foot(t) > TILE_BUDGET:
            continue
        if want_multi and m_pad // t < 2:
            if fallback is None:
                fallback = t
            continue
        return t
    return fallback if fallback is not None else 16


# --------------------------- Pallas kernel ----------------------------------

def _mm_kernel(a_ref, *refs, has_affine, has_bias, want_stats,
               pre_act, post_act, mask_rows, m_real, tm):
    """Fused (tm, K) @ (K, Npad) MXU matmul.

    Prologue (optional): A' = pre_act(A * scale + shift)  -- previous layer's
    BatchNorm + activation, applied per K column.
    Epilogue (optional): + bias, post activation, per-tile BN partial stats
    (column sum / sum-of-squares of the f32 accumulator)."""
    i = 0
    if has_affine:
        scale_ref, shift_ref = refs[0], refs[1]
        i = 2
    b_ref = refs[i]; i += 1
    bias_ref = None
    if has_bias:
        bias_ref = refs[i]; i += 1
    y_ref = refs[i]; i += 1
    st_ref = refs[i] if want_stats else None

    if has_affine:
        a = a_ref[...].astype(jnp.float32)
        a = _apply_act(a * scale_ref[...] + shift_ref[...], pre_act)
        if mask_rows:
            # Zero rows that only exist because of M padding so they do not
            # pollute the fused BN statistics of this layer's output.
            row = (pl.program_id(1) * tm
                   + jax.lax.broadcasted_iota(jnp.int32, a.shape, 0))
            a = jnp.where(row < m_real, a, 0.0)
        a = a.astype(b_ref.dtype)
    else:
        a = a_ref[...]

    y = jnp.dot(a, b_ref[...], preferred_element_type=jnp.float32)
    if has_bias:
        y = y + bias_ref[...]
    if want_stats:
        s1 = jnp.sum(y, axis=0, keepdims=True)          # (1, Npad) sums
        s2 = jnp.sum(y * y, axis=0, keepdims=True)      # (1, Npad) sums of sq
        row = jax.lax.broadcasted_iota(jnp.int32, st_ref.shape, 0)
        st_ref[...] = jnp.where(row == 0, s1, jnp.where(row == 1, s2, 0.0))
    y_ref[...] = _apply_act(y, post_act).astype(y_ref.dtype)


# --------------------------- Pallas wrapper ----------------------------------

def fused_matmul(a_gmk, b_gkn, *, scale_k=None, shift_k=None, pre_act="none",
                 bias_n=None, post_act="none", want_stats=False,
                 out_dtype=BF16):
    """Grouped (G, M, K) @ (G, K, N) with lane-dense (G, Mpad, Npad) output.

    scale_k / shift_k: optional per-K-column affine (+ pre_act) applied to A
    inside the kernel (fuses the previous layer's BatchNorm + activation into
    this matmul).  want_stats additionally returns per-channel sum and
    sum-of-squares of the f32 accumulator (this layer's BN statistics)."""
    g, m, k = a_gmk.shape
    n = b_gkn.shape[2]
    npad = _round_up(n, LANE)
    m_pad = _round_up(m, SUB)
    if m_pad != m:
        a_gmk = jnp.pad(a_gmk, ((0, 0), (0, m_pad - m), (0, 0)))
    if npad != n:
        b_gkn = jnp.pad(b_gkn, ((0, 0), (0, 0), (0, npad - n)))
    a = a_gmk.astype(BF16)
    b = b_gkn.astype(BF16)

    has_affine = scale_k is not None
    has_bias = bias_n is not None
    out_bytes = jnp.dtype(out_dtype).itemsize
    tm = _pick_tm(m_pad, k, npad, out_bytes, g)
    tiles = m_pad // tm
    mask_rows = bool(want_stats and has_affine and m_pad != m)

    inputs = [a]
    in_specs = [pl.BlockSpec((None, tm, k), lambda gi, i: (gi, i, 0))]
    if has_affine:
        inputs += [scale_k.astype(F32).reshape(1, k),
                   shift_k.astype(F32).reshape(1, k)]
        in_specs += [pl.BlockSpec((1, k), lambda gi, i: (0, 0)),
                     pl.BlockSpec((1, k), lambda gi, i: (0, 0))]
    inputs.append(b)
    in_specs.append(pl.BlockSpec((None, k, npad), lambda gi, i: (gi, 0, 0)))
    if has_bias:
        inputs.append(jnp.zeros((1, npad), F32).at[0, :n].set(
            bias_n.astype(F32)))
        in_specs.append(pl.BlockSpec((1, npad), lambda gi, i: (0, 0)))

    y_shape = jax.ShapeDtypeStruct((g, m_pad, npad), out_dtype)
    y_spec = pl.BlockSpec((None, tm, npad), lambda gi, i: (gi, i, 0))
    if want_stats:
        out_shape = (y_shape, jax.ShapeDtypeStruct((g, tiles, 8, npad), F32))
        out_specs = (y_spec,
                     pl.BlockSpec((None, None, 8, npad),
                                  lambda gi, i: (gi, i, 0, 0)))
    else:
        out_shape = y_shape
        out_specs = y_spec

    cost = pl.CostEstimate(
        flops=2 * g * m_pad * k * npad + 2 * g * m_pad * k,
        transcendentals=(g * m_pad * npad if post_act == "sigmoid" else 0),
        bytes_accessed=2 * g * (m_pad * k + k * npad)
        + out_bytes * g * m_pad * npad
        + (4 * g * tiles * 8 * npad if want_stats else 0))

    kern = functools.partial(
        _mm_kernel, has_affine=has_affine, has_bias=has_bias,
        want_stats=want_stats, pre_act=pre_act, post_act=post_act,
        mask_rows=mask_rows, m_real=m, tm=tm)

    res = pl.pallas_call(
        kern,
        grid=(g, tiles),
        in_specs=in_specs,
        out_specs=out_specs,
        out_shape=out_shape,
        compiler_params=pltpu.CompilerParams(
            dimension_semantics=("parallel", "parallel"),
            vmem_limit_bytes=VMEM_LIMIT),
        cost_estimate=cost,
    )(*inputs)

    if want_stats:
        y, st = res
        sums = jnp.sum(st[:, :, 0, :], axis=(0, 1))     # (Npad,)
        sqs = jnp.sum(st[:, :, 1, :], axis=(0, 1))      # (Npad,)
        return y, sums, sqs
    return res


# --------------------- BatchNorm folding / padding helpers -------------------

def _bn_scale_shift(sums, sqs, count, gamma, beta, cout, eps=1e-5):
    """Training-mode BatchNorm (biased batch variance) folded into a
    per-channel affine y*scale + shift, computed from fused kernel stats."""
    mean = sums[:cout] / count
    var = jnp.maximum(sqs[:cout] / count - mean * mean, 0.0)
    inv = jax.lax.rsqrt(var + eps)
    scale = gamma.astype(F32) * inv
    shift = beta.astype(F32) - mean * scale
    return scale, shift


def _prologue(prev_bn, reps):
    """Expand a pending (scale, shift, act) BN of the previous layer into the
    per-K-column vectors of this layer's matmul (K = reps * C, channel-minor)
    and the raw-domain pad value v0 with act(v0 * scale + shift) == 0."""
    if prev_bn is None:
        return None, None, None, "none"
    scale_c, shift_c, act = prev_bn
    safe = jnp.where(scale_c != 0.0, scale_c, 1.0)
    pad_vec = jnp.where(scale_c != 0.0, -shift_c / safe, 0.0)
    return pad_vec, jnp.tile(scale_c, reps), jnp.tile(shift_c, reps), act


def _pad_hw(x_nhwc, pt, pb, plft, prgt, pad_vec):
    """Spatial padding; pad_vec=None -> zeros, else a per-channel constant
    (used to pad raw pre-BN activations so that affine + act gives 0)."""
    if pad_vec is None:
        return jnp.pad(x_nhwc, ((0, 0), (pt, pb), (plft, prgt), (0, 0)))
    n, h, w, c = x_nhwc.shape
    v = pad_vec.astype(x_nhwc.dtype).reshape(1, 1, 1, c)
    rows = [x_nhwc]
    if pt:
        rows.insert(0, jnp.broadcast_to(v, (n, pt, w, c)))
    if pb:
        rows.append(jnp.broadcast_to(v, (n, pb, w, c)))
    x = jnp.concatenate(rows, axis=1) if len(rows) > 1 else x_nhwc
    h2 = x.shape[1]
    cols = [x]
    if plft:
        cols.insert(0, jnp.broadcast_to(v, (n, h2, plft, c)))
    if prgt:
        cols.append(jnp.broadcast_to(v, (n, h2, prgt, c)))
    return jnp.concatenate(cols, axis=2) if len(cols) > 1 else x


# --------------- conv / deconv glue (matmuls run in Pallas) ------------------

def _im2col_s2(x_nhwc, pad_vec=None):
    """im2col for the 4x4 / stride-2 / pad-1 encoder conv -> (N*OH*OW, 16*C),
    column order (kh*4 + kw)*C + c.
    TODO(synk): fold this window extraction into the matmul kernel (in-kernel
    tap loads / manual DMA) to avoid materializing the 16x expansion in HBM."""
    n, h, w, c = x_nhwc.shape
    x = _pad_hw(x_nhwc, 1, 1, 1, 1, pad_vec)
    oh, ow = h // 2, w // 2
    taps = []
    for i in range(4):
        for j in range(4):
            taps.append(x[:, i:i + 2 * oh:2, j:j + 2 * ow:2, :])
    cols = jnp.stack(taps, axis=3)                       # (n, oh, ow, 16, c)
    return cols.reshape(n * oh * ow, 16 * c), oh, ow


def _deconv_phase_cols(x_nhwc, pad_vec=None):
    """Sub-pixel decomposition of ConvTranspose2d(k=4, s=2, p=1): each of the
    4 output phases is a stride-1 2x2 conv of the un-dilated input -> no zero
    multiplies on the MXU.  Returns (4, N*H*W, 4*C).
    TODO(synk): consume the previous decoder layer's phase-major output
    directly (skip the XLA interleave round trip between decoder layers)."""
    n, h, w, c = x_nhwc.shape
    phases = []
    for ry in (0, 1):
        for rx in (0, 1):
            xp = _pad_hw(x_nhwc, 1 - ry, ry, 1 - rx, rx, pad_vec)
            taps = []
            for dy in (0, 1):
                for dx in (0, 1):
                    taps.append(xp[:, dy:dy + h, dx:dx + w, :])
            cols = jnp.stack(taps, axis=3)               # (n, h, w, 4, c)
            phases.append(cols.reshape(n * h * w, 4 * c))
    return jnp.stack(phases, axis=0)


def _deconv_phase_weights(w_iohw):
    """Per-phase 2x2 sub-kernels of the 4x4 transposed-conv weight, laid out
    to match _deconv_phase_cols' (tap, cin) column order -> (4, 4*Cin, Cout)."""
    cin, cout = w_iohw.shape[0], w_iohw.shape[1]
    mats = []
    for ry in (0, 1):
        for rx in (0, 1):
            taps = []
            for dy in (0, 1):
                for dx in (0, 1):
                    ky = (3 - ry) - 2 * dy
                    kx = (3 - rx) - 2 * dx
                    taps.append(w_iohw[:, :, ky, kx])    # (cin, cout)
            mats.append(jnp.stack(taps, axis=0).reshape(4 * cin, cout))
    return jnp.stack(mats, axis=0)


def _interleave_phases(y_phases, n, h, w, c):
    """(4, N*H*W, C) phase-major (ry, rx row-major) -> (N, 2H, 2W, C)."""
    y = y_phases.reshape(2, 2, n, h, w, c)
    y = jnp.transpose(y, (2, 3, 0, 4, 1, 5))
    return y.reshape(n, 2 * h, 2 * w, c)


# ------------------------------ VAE ------------------------------------------

def init_params(key, zsize, layer_count, channels, d):
    params = {}
    keys = jax.random.split(key, 64)
    ki = iter(range(64))
    mul, inputs = 1, channels
    for i in range(layer_count):
        cout = d * mul
        params[f"conv{i+1}_w"] = 0.02 * jax.random.normal(
            keys[next(ki)], (cout, inputs, 4, 4), F32)
        params[f"conv{i+1}_b"] = jnp.zeros((cout,), F32)
        params[f"conv{i+1}_bn_g"] = jnp.ones((cout,), F32)
        params[f"conv{i+1}_bn_b"] = jnp.zeros((cout,), F32)
        inputs, mul = cout, mul * 2
    d_max = inputs
    params["fc1_w"] = 0.02 * jax.random.normal(keys[next(ki)], (d_max * 16, zsize), F32)
    params["fc1_b"] = jnp.zeros((zsize,), F32)
    params["fc2_w"] = 0.02 * jax.random.normal(keys[next(ki)], (d_max * 16, zsize), F32)
    params["fc2_b"] = jnp.zeros((zsize,), F32)
    params["d1_w"] = 0.02 * jax.random.normal(keys[next(ki)], (zsize, d_max * 16), F32)
    params["d1_b"] = jnp.zeros((d_max * 16,), F32)
    mul = inputs // d // 2
    for i in range(1, layer_count):
        cout = d * mul
        params[f"deconv{i+1}_w"] = 0.02 * jax.random.normal(
            keys[next(ki)], (inputs, cout, 4, 4), F32)
        params[f"deconv{i+1}_b"] = jnp.zeros((cout,), F32)
        params[f"deconv{i+1}_bn_g"] = jnp.ones((cout,), F32)
        params[f"deconv{i+1}_bn_b"] = jnp.zeros((cout,), F32)
        inputs, mul = cout, mul // 2
    params[f"deconv{layer_count+1}_w"] = 0.02 * jax.random.normal(
        keys[next(ki)], (inputs, channels, 4, 4), F32)
    params[f"deconv{layer_count+1}_b"] = jnp.zeros((channels,), F32)
    return params


def vae_forward(params, x_nchw, eps, zsize, layer_count):
    n = x_nchw.shape[0]
    img = jnp.transpose(x_nchw, (0, 2, 3, 1)).astype(BF16)   # NHWC, bf16
    pending_bn = None   # previous layer's BN (scale, shift, act), not yet applied

    # ---------------- encoder ----------------
    for i in range(layer_count):
        w = params[f"conv{i+1}_w"]
        cout, cin = w.shape[0], w.shape[1]
        pad_vec, scale_k, shift_k, pre_act = _prologue(pending_bn, reps=16)
        cols, oh, ow = _im2col_s2(img, pad_vec)
        wmat = jnp.transpose(w, (2, 3, 1, 0)).reshape(16 * cin, cout)
        # conv bias dropped: exactly cancelled by the BN mean subtraction
        y, s1, s2 = fused_matmul(cols[None], wmat[None],
                                 scale_k=scale_k, shift_k=shift_k,
                                 pre_act=pre_act, want_stats=True)
        m_real = n * oh * ow
        scale_c, shift_c = _bn_scale_shift(
            s1, s2, m_real, params[f"conv{i+1}_bn_g"],
            params[f"conv{i+1}_bn_b"], cout)
        pending_bn = (scale_c, shift_c, "relu")
        img = y[0, :m_real, :cout].reshape(n, oh, ow, cout)   # RAW (pre-BN)

    d_max = img.shape[-1]
    # ------- fc1 / fc2 (one matmul); last conv's BN + ReLU fused as prologue -------
    scale_c, shift_c, _ = pending_bn
    x_flat = jnp.transpose(img, (0, 3, 1, 2)).reshape(n, d_max * 16)  # NCHW .view order
    w_fc = jnp.concatenate([params["fc1_w"], params["fc2_w"]], axis=1)
    b_fc = jnp.concatenate([params["fc1_b"], params["fc2_b"]], axis=0)
    h = fused_matmul(x_flat[None], w_fc[None],
                     scale_k=jnp.repeat(scale_c, 16),
                     shift_k=jnp.repeat(shift_c, 16),
                     pre_act="relu", bias_n=b_fc, post_act="none",
                     out_dtype=F32)[0]
    mu = h[:n, :zsize]                       # no squeeze(): batch == 1 safe
    logvar = h[:n, zsize:2 * zsize]

    # ------------- reparameterize (training mode) -------------
    # TODO(synk): torch.randn_like replaced by a caller-supplied normal eps.
    std = jnp.exp(0.5 * logvar)
    z = eps * std + mu

    # ---------------- decoder ----------------
    # leaky_relu(0.2) commutes with the reshape, so fuse it into d1's epilogue
    h1 = fused_matmul(z[None], params["d1_w"][None], bias_n=params["d1_b"],
                      post_act="leaky", out_dtype=BF16)[0]
    img = jnp.transpose(h1[:n, :d_max * 16].reshape(n, d_max, 4, 4),
                        (0, 2, 3, 1))        # NHWC, already activated
    pending_bn = None
    for i in range(1, layer_count):
        w = params[f"deconv{i+1}_w"]
        cout = w.shape[1]
        nb, hh, ww = img.shape[0], img.shape[1], img.shape[2]
        pad_vec, scale_k, shift_k, pre_act = _prologue(pending_bn, reps=4)
        cols = _deconv_phase_cols(img, pad_vec)
        y, s1, s2 = fused_matmul(cols, _deconv_phase_weights(w),
                                 scale_k=scale_k, shift_k=shift_k,
                                 pre_act=pre_act, want_stats=True)
        m_real = nb * hh * ww
        scale_c, shift_c = _bn_scale_shift(
            s1, s2, 4 * m_real, params[f"deconv{i+1}_bn_g"],
            params[f"deconv{i+1}_bn_b"], cout)
        pending_bn = (scale_c, shift_c, "leaky")
        img = _interleave_phases(y[:, :m_real, :cout], nb, hh, ww, cout)  # RAW

    # ------- final ConvTranspose2d + bias + sigmoid (bf16, sliced before f32) -------
    w = params[f"deconv{layer_count+1}_w"]
    b = params[f"deconv{layer_count+1}_b"]
    cout = w.shape[1]
    nb, hh, ww = img.shape[0], img.shape[1], img.shape[2]
    pad_vec, scale_k, shift_k, pre_act = _prologue(pending_bn, reps=4)
    cols = _deconv_phase_cols(img, pad_vec)
    y = fused_matmul(cols, _deconv_phase_weights(w),
                     scale_k=scale_k, shift_k=shift_k, pre_act=pre_act,
                     bias_n=b, post_act="sigmoid", out_dtype=BF16)
    x_out = _interleave_phases(y[:, :nb * hh * ww, :cout], nb, hh, ww, cout)
    recon = jnp.transpose(x_out, (0, 3, 1, 2)).astype(F32)   # NHWC -> NCHW, f32
    return recon, mu, logvar


if __name__ == "__main__":
    zsize, layer_count, channels, filter_base, batch, spatial = 16, 3, 3, 8, 2, 32
    key = jax.random.PRNGKey(0)
    k_param, k_x, k_eps = jax.random.split(key, 3)
    params = init_params(k_param, zsize, layer_count, channels, filter_base)
    x = jax.random.normal(k_x, (batch, channels, spatial, spatial), F32)
    eps = jax.random.normal(k_eps, (batch, zsize), F32)

    fwd = jax.jit(functools.partial(vae_forward, zsize=zsize,
                                    layer_count=layer_count))
    recon, mu, logvar = fwd(params, x, eps)
    jax.block_until_ready((recon, mu, logvar))

    assert recon.shape == (batch, channels, spatial, spatial)
    assert mu.shape == (batch, zsize) and logvar.shape == (batch, zsize)
    assert bool(jnp.all(jnp.isfinite(recon)))
    assert bool(jnp.all((recon >= 0.0) & (recon <= 1.0)))
    print("KERNEL_OK")
</pallas_src>

<mosaic_0001>
module attributes {stable_mosaic.version = 11 : i64} {
  func.func @_mm_kernel(%arg0: i32, %arg1: i32, %arg2: memref<1x256x48xbf16, #tpu.memory_space<vmem>>, %arg3: memref<1x48x128xbf16, #tpu.memory_space<vmem>>, %arg4: memref<1x256x128xbf16, #tpu.memory_space<vmem>>, %arg5: memref<1x1x8x128xf32, #tpu.memory_space<vmem>>) attributes {dimension_semantics = [#tpu.dimension_semantics<parallel>, #tpu.dimension_semantics<parallel>], iteration_bounds = array<i64: 1, 2>, scalar_prefetch = 0 : i64, scratch_operands = 0 : i64, tpu.core_type = #tpu.core_type<tc>, window_params = [{transform_indices = @transform_0, window_bounds = array<i64: 1, 256, 48>}, {transform_indices = @transform_1, window_bounds = array<i64: 1, 48, 128>}, {transform_indices = @transform_2, window_bounds = array<i64: 1, 256, 128>}, {transform_indices = @transform_3, window_bounds = array<i64: 1, 1, 8, 128>}]} {
    %c0 = arith.constant 0 : index
    %c0_0 = arith.constant 0 : index
    %c0_1 = arith.constant 0 : index
    %0 = vector.load %arg2[%c0, %c0_0, %c0_1] : memref<1x256x48xbf16, #tpu.memory_space<vmem>>, vector<1x256x48xbf16>
    %1 = vector.shape_cast %0 : vector<1x256x48xbf16> to vector<256x48xbf16>
    %c0_2 = arith.constant 0 : index
    %c0_3 = arith.constant 0 : index
    %c0_4 = arith.constant 0 : index
    %2 = vector.load %arg3[%c0_2, %c0_3, %c0_4] : memref<1x48x128xbf16, #tpu.memory_space<vmem>>, vector<1x48x128xbf16>
    %3 = vector.shape_cast %2 : vector<1x48x128xbf16> to vector<48x128xbf16>
    %cst = arith.constant dense<0.000000e+00> : vector<256x128xf32>
    %4 = tpu.matmul %1, %3, %cst {dimension_numbers = #tpu.dot_dimension_numbers<[1], [0], [0], [1], [0, 0, 1, 1], [], []>} : vector<256x48xbf16>, vector<48x128xbf16>, vector<256x128xf32> -> vector<256x128xf32>
    %cst_5 = arith.constant dense<0.000000e+00> : vector<128xf32>
    %5 = vector.multi_reduction <add>, %4, %cst_5 [0] : vector<256x128xf32> to vector<128xf32>
    %6 = vector.shape_cast %5 : vector<128xf32> to vector<1x128xf32>
    %7 = arith.mulf %4, %4 : vector<256x128xf32>
    %cst_6 = arith.constant dense<0.000000e+00> : vector<128xf32>
    %8 = vector.multi_reduction <add>, %7, %cst_6 [0] : vector<256x128xf32> to vector<128xf32>
    %9 = vector.shape_cast %8 : vector<128xf32> to vector<1x128xf32>
    %10 = tpu.iota {dimensions = array<i32: 0>} : vector<8x128xi32>
    %c0_i32 = arith.constant 0 : i32
    %11 = vector.broadcast %c0_i32 : i32 to vector<8x128xi32>
    %12 = arith.cmpi eq, %10, %11 : vector<8x128xi32>
    %c1_i32 = arith.constant 1 : i32
    %13 = vector.broadcast %c1_i32 : i32 to vector<8x128xi32>
    %14 = arith.cmpi eq, %10, %13 : vector<8x128xi32>
    %cst_7 = arith.constant 0.000000e+00 : f32
    %15 = vector.shape_cast %9 : vector<1x128xf32> to vector<1x128xf32>
    %16 = vector.broadcast %15 : vector<1x128xf32> to vector<8x128xf32>
    %17 = vector.broadcast %cst_7 : f32 to vector<8x128xf32>
    %18 = arith.select %14, %16, %17 : vector<8x128xi1>, vector<8x128xf32>
    %19 = vector.shape_cast %6 : vector<1x128xf32> to vector<1x128xf32>
    %20 = vector.broadcast %19 : vector<1x128xf32> to vector<8x128xf32>
    %21 = arith.select %12, %20, %18 : vector<8x128xi1>, vector<8x128xf32>
    %c0_8 = arith.constant 0 : index
    %c0_9 = arith.constant 0 : index
    %c0_10 = arith.constant 0 : index
    %c0_11 = arith.constant 0 : index
    %22 = vector.load %arg5[%c0_8, %c0_9, %c0_10, %c0_11] : memref<1x1x8x128xf32, #tpu.memory_space<vmem>>, vector<1x1x8x128xf32>
    %23 = vector.shape_cast %22 : vector<1x1x8x128xf32> to vector<8x128xf32>
    %24 = vector.shape_cast %21 : vector<8x128xf32> to vector<1x1x8x128xf32>
    tpu.vector_store %arg5[%c0_8, %c0_9, %c0_10, %c0_11], %24 {strides = array<i32>} : memref<1x1x8x128xf32, #tpu.memory_space<vmem>>, vector<1x1x8x128xf32>,
    %25 = arith.truncf %4 : vector<256x128xf32> to vector<256x128xbf16>
    %c0_12 = arith.constant 0 : index
    %c0_13 = arith.constant 0 : index
    %c0_14 = arith.constant 0 : index
    %26 = vector.load %arg4[%c0_12, %c0_13, %c0_14] : memref<1x256x128xbf16, #tpu.memory_space<vmem>>, vector<1x256x128xbf16>
    %27 = vector.shape_cast %26 : vector<1x256x128xbf16> to vector<256x128xbf16>
    %28 = vector.shape_cast %25 : vector<256x128xbf16> to vector<1x256x128xbf16>
    tpu.vector_store %arg4[%c0_12, %c0_13, %c0_14], %28 {strides = array<i32>} : memref<1x256x128xbf16, #tpu.memory_space<vmem>>, vector<1x256x128xbf16>,
    return
  }
  func.func @transform_0(%arg0: i32, %arg1: i32) -> (i32, i32, i32) {
    %c0_i32 = arith.constant 0 : i32
    %c0_i32_0 = arith.constant 0 : i32
    return %arg0, %arg1, %c0_i32 : i32, i32, i32
  }
  func.func @transform_1(%arg0: i32, %arg1: i32) -> (i32, i32, i32) {
    %c0_i32 = arith.constant 0 : i32
    %c0_i32_0 = arith.constant 0 : i32
    %c0_i32_1 = arith.constant 0 : i32
    return %arg0, %c0_i32, %c0_i32_0 : i32, i32, i32
  }
  func.func @transform_2(%arg0: i32, %arg1: i32) -> (i32, i32, i32) {
    %c0_i32 = arith.constant 0 : i32
    %c0_i32_0 = arith.constant 0 : i32
    return %arg0, %arg1, %c0_i32 : i32, i32, i32
  }
  func.func @transform_3(%arg0: i32, %arg1: i32) -> (i32, i32, i32, i32) {
    %c0_i32 = arith.constant 0 : i32
    %c0_i32_0 = arith.constant 0 : i32
    %c0_i32_1 = arith.constant 0 : i32
    return %arg0, %arg1, %c0_i32, %c0_i32_0 : i32, i32, i32, i32
  }
}

module attributes {stable_mosaic.version = 11 : i64} {
  func.func @_mm_kernel(%arg0: i32, %arg1: i32, %arg2: memref<1x128x128xbf16, #tpu.memory_space<vmem>>, %arg3: memref<1x128xf32, #tpu.memory_space<vmem>>, %arg4: memref<1x128xf32, #tpu.memory_space<vmem>>, %arg5: memref<1x128x128xbf16, #tpu.memory_space<vmem>>, %arg6: memref<1x128x128xbf16, #tpu.memory_space<vmem>>, %arg7: memref<1x1x8x128xf32, #tpu.memory_space<vmem>>) attributes {dimension_semantics = [#tpu.dimension_semantics<parallel>, #tpu.dimension_semantics<parallel>], iteration_bounds = array<i64: 1, 1>, scalar_prefetch = 0 : i64, scratch_operands = 0 : i64, tpu.core_type = #tpu.core_type<tc>, window_params = [{transform_indices = @transform_0, window_bounds = array<i64: 1, 128, 128>}, {pipeline_mode = #tpu.pipeline_mode<synchronous>, transform_indices = @transform_1, window_bounds = array<i64: 1, 128>}, {pipeline_mode = #tpu.pipeline_mode<synchronous>, transform_indices = @transform_2, window_bounds = array<i64: 1, 128>}, {transform_indices = @transform_3, window_bounds = array<i64: 1, 128, 128>}, {transform_indices = @transform_4, window_bounds = array<i64: 1, 128, 128>}, {transform_indices = @transform_5, window_bounds = array<i64: 1, 1, 8, 128>}]} {
    %c0 = arith.constant 0 : index
    %c0_0 = arith.constant 0 : index
    %c0_1 = arith.constant 0 : index
    %0 = vector.load %arg2[%c0, %c0_0, %c0_1] : memref<1x128x128xbf16, #tpu.memory_space<vmem>>, vector<1x128x128xbf16>
    %1 = vector.shape_cast %0 : vector<1x128x128xbf16> to vector<128x128xbf16>
    %2 = arith.extf %1 : vector<128x128xbf16> to vector<128x128xf32>
    %c0_2 = arith.constant 0 : index
    %c0_3 = arith.constant 0 : index
    %3 = vector.load %arg3[%c0_2, %c0_3] : memref<1x128xf32, #tpu.memory_space<vmem>>, vector<1x128xf32>
    %4 = vector.broadcast %3 : vector<1x128xf32> to vector<128x128xf32>
    %5 = arith.mulf %2, %4 : vector<128x128xf32>
    %c0_4 = arith.constant 0 : index
    %c0_5 = arith.constant 0 : index
    %6 = vector.load %arg4[%c0_4, %c0_5] : memref<1x128xf32, #tpu.memory_space<vmem>>, vector<1x128xf32>
    %7 = vector.broadcast %6 : vector<1x128xf32> to vector<128x128xf32>
    %8 = arith.addf %5, %7 : vector<128x128xf32>
    %cst = arith.constant 0.000000e+00 : f32
    %9 = vector.broadcast %cst : f32 to vector<128x128xf32>
    %10 = arith.maximumf %8, %9 : vector<128x128xf32>
    %11 = arith.truncf %10 : vector<128x128xf32> to vector<128x128xbf16>
    %c0_6 = arith.constant 0 : index
    %c0_7 = arith.constant 0 : index
    %c0_8 = arith.constant 0 : index
    %12 = vector.load %arg5[%c0_6, %c0_7, %c0_8] : memref<1x128x128xbf16, #tpu.memory_space<vmem>>, vector<1x128x128xbf16>
    %13 = vector.shape_cast %12 : vector<1x128x128xbf16> to vector<128x128xbf16>
    %cst_9 = arith.constant dense<0.000000e+00> : vector<128x128xf32>
    %14 = tpu.matmul %11, %13, %cst_9 {dimension_numbers = #tpu.dot_dimension_numbers<[1], [0], [0], [1], [0, 0, 1, 1], [], []>} : vector<128x128xbf16>, vector<128x128xbf16>, vector<128x128xf32> -> vector<128x128xf32>
    %cst_10 = arith.constant dense<0.000000e+00> : vector<128xf32>
    %15 = vector.multi_reduction <add>, %14, %cst_10 [0] : vector<128x128xf32> to vector<128xf32>
    %16 = vector.shape_cast %15 : vector<128xf32> to vector<1x128xf32>
    %17 = arith.mulf %14, %14 : vector<128x128xf32>
    %cst_11 = arith.constant dense<0.000000e+00> : vector<128xf32>
    %18 = vector.multi_reduction <add>, %17, %cst_11 [0] : vector<128x128xf32> to vector<128xf32>
    %19 = vector.shape_cast %18 : vector<128xf32> to vector<1x128xf32>
    %20 = tpu.iota {dimensions = array<i32: 0>} : vector<8x128xi32>
    %c0_i32 = arith.constant 0 : i32
    %21 = vector.broadcast %c0_i32 : i32 to vector<8x128xi32>
    %22 = arith.cmpi eq, %20, %21 : vector<8x128xi32>
    %c1_i32 = arith.constant 1 : i32
    %23 = vector.broadcast %c1_i32 : i32 to vector<8x128xi32>
    %24 = arith.cmpi eq, %20, %23 : vector<8x128xi32>
    %cst_12 = arith.constant 0.000000e+00 : f32
    %25 = vector.shape_cast %19 : vector<1x128xf32> to vector<1x128xf32>
    %26 = vector.broadcast %25 : vector<1x128xf32> to vector<8x128xf32>
    %27 = vector.broadcast %cst_12 : f32 to vector<8x128xf32>
    %28 = arith.select %24, %26, %27 : vector<8x128xi1>, vector<8x128xf32>
    %29 = vector.shape_cast %16 : vector<1x128xf32> to vector<1x128xf32>
    %30 = vector.broadcast %29 : vector<1x128xf32> to vector<8x128xf32>
    %31 = arith.select %22, %30, %28 : vector<8x128xi1>, vector<8x128xf32>
    %c0_13 = arith.constant 0 : index
    %c0_14 = arith.constant 0 : index
    %c0_15 = arith.constant 0 : index
    %c0_16 = arith.constant 0 : index
    %32 = vector.load %arg7[%c0_13, %c0_14, %c0_15, %c0_16] : memref<1x1x8x128xf32, #tpu.memory_space<vmem>>, vector<1x1x8x128xf32>
    %33 = vector.shape_cast %32 : vector<1x1x8x128xf32> to vector<8x128xf32>
    %34 = vector.shape_cast %31 : vector<8x128xf32> to vector<1x1x8x128xf32>
    tpu.vector_store %arg7[%c0_13, %c0_14, %c0_15, %c0_16], %34 {strides = array<i32>} : memref<1x1x8x128xf32, #tpu.memory_space<vmem>>, vector<1x1x8x128xf32>,
    %35 = arith.truncf %14 : vector<128x128xf32> to vector<128x128xbf16>
    %c0_17 = arith.constant 0 : index
    %c0_18 = arith.constant 0 : index
    %c0_19 = arith.constant 0 : index
    %36 = vector.load %arg6[%c0_17, %c0_18, %c0_19] : memref<1x128x128xbf16, #tpu.memory_space<vmem>>, vector<1x128x128xbf16>
    %37 = vector.shape_cast %36 : vector<1x128x128xbf16> to vector<128x128xbf16>
    %38 = vector.shape_cast %35 : vector<128x128xbf16> to vector<1x128x128xbf16>
    tpu.vector_store %arg6[%c0_17, %c0_18, %c0_19], %38 {strides = array<i32>} : memref<1x128x128xbf16, #tpu.memory_space<vmem>>, vector<1x128x128xbf16>,
    return
  }
  func.func @transform_0(%arg0: i32, %arg1: i32) -> (i32, i32, i32) {
    %c0_i32 = arith.constant 0 : i32
    %c0_i32_0 = arith.constant 0 : i32
    return %arg0, %arg1, %c0_i32 : i32, i32, i32
  }
  func.func @transform_1(%arg0: i32, %arg1: i32) -> (i32, i32) {
    %c0_i32 = arith.constant 0 : i32
    %c0_i32_0 = arith.constant 0 : i32
    %c0_i32_1 = arith.constant 0 : i32
    return %c0_i32, %c0_i32_0 : i32, i32
  }
  func.func @transform_2(%arg0: i32, %arg1: i32) -> (i32, i32) {
    %c0_i32 = arith.constant 0 : i32
    %c0_i32_0 = arith.constant 0 : i32
    %c0_i32_1 = arith.constant 0 : i32
    return %c0_i32, %c0_i32_0 : i32, i32
  }
  func.func @transform_3(%arg0: i32, %arg1: i32) -> (i32, i32, i32) {
    %c0_i32 = arith.constant 0 : i32
    %c0_i32_0 = arith.constant 0 : i32
    %c0_i32_1 = arith.constant 0 : i32
    return %arg0, %c0_i32, %c0_i32_0 : i32, i32, i32
  }
  func.func @transform_4(%arg0: i32, %arg1: i32) -> (i32, i32, i32) {
    %c0_i32 = arith.constant 0 : i32
    %c0_i32_0 = arith.constant 0 : i32
    return %arg0, %arg1, %c0_i32 : i32, i32, i32
  }
  func.func @transform_5(%arg0: i32, %arg1: i32) -> (i32, i32, i32, i32) {
    %c0_i32 = arith.constant 0 : i32
    %c0_i32_0 = arith.constant 0 : i32
    %c0_i32_1 = arith.constant 0 : i32
    return %arg0, %arg1, %c0_i32, %c0_i32_0 : i32, i32, i32, i32
  }
}

module attributes {stable_mosaic.version = 11 : i64} {
  func.func @_mm_kernel(%arg0: i32, %arg1: i32, %arg2: memref<1x32x256xbf16, #tpu.memory_space<vmem>>, %arg3: memref<1x256xf32, #tpu.memory_space<vmem>>, %arg4: memref<1x256xf32, #tpu.memory_space<vmem>>, %arg5: memref<1x256x128xbf16, #tpu.memory_space<vmem>>, %arg6: memref<1x32x128xbf16, #tpu.memory_space<vmem>>, %arg7: memref<1x1x8x128xf32, #tpu.memory_space<vmem>>) attributes {dimension_semantics = [#tpu.dimension_semantics<parallel>, #tpu.dimension_semantics<parallel>], iteration_bounds = array<i64: 1, 1>, scalar_prefetch = 0 : i64, scratch_operands = 0 : i64, tpu.core_type = #tpu.core_type<tc>, window_params = [{transform_indices = @transform_0, window_bounds = array<i64: 1, 32, 256>}, {pipeline_mode = #tpu.pipeline_mode<synchronous>, transform_indices = @transform_1, window_bounds = array<i64: 1, 256>}, {pipeline_mode = #tpu.pipeline_mode<synchronous>, transform_indices = @transform_2, window_bounds = array<i64: 1, 256>}, {transform_indices = @transform_3, window_bounds = array<i64: 1, 256, 128>}, {transform_indices = @transform_4, window_bounds = array<i64: 1, 32, 128>}, {transform_indices = @transform_5, window_bounds = array<i64: 1, 1, 8, 128>}]} {
    %c0 = arith.constant 0 : index
    %c0_0 = arith.constant 0 : index
    %c0_1 = arith.constant 0 : index
    %0 = vector.load %arg2[%c0, %c0_0, %c0_1] : memref<1x32x256xbf16, #tpu.memory_space<vmem>>, vector<1x32x256xbf16>
    %1 = vector.shape_cast %0 : vector<1x32x256xbf16> to vector<32x256xbf16>
    %2 = arith.extf %1 : vector<32x256xbf16> to vector<32x256xf32>
    %c0_2 = arith.constant 0 : index
    %c0_3 = arith.constant 0 : index
    %3 = vector.load %arg3[%c0_2, %c0_3] : memref<1x256xf32, #tpu.memory_space<vmem>>, vector<1x256xf32>
    %4 = vector.broadcast %3 : vector<1x256xf32> to vector<32x256xf32>
    %5 = arith.mulf %2, %4 : vector<32x256xf32>
    %c0_4 = arith.constant 0 : index
    %c0_5 = arith.constant 0 : index
    %6 = vector.load %arg4[%c0_4, %c0_5] : memref<1x256xf32, #tpu.memory_space<vmem>>, vector<1x256xf32>
    %7 = vector.broadcast %6 : vector<1x256xf32> to vector<32x256xf32>
    %8 = arith.addf %5, %7 : vector<32x256xf32>
    %cst = arith.constant 0.000000e+00 : f32
    %9 = vector.broadcast %cst : f32 to vector<32x256xf32>
    %10 = arith.maximumf %8, %9 : vector<32x256xf32>
    %11 = arith.truncf %10 : vector<32x256xf32> to vector<32x256xbf16>
    %c0_6 = arith.constant 0 : index
    %c0_7 = arith.constant 0 : index
    %c0_8 = arith.constant 0 : index
    %12 = vector.load %arg5[%c0_6, %c0_7, %c0_8] : memref<1x256x128xbf16, #tpu.memory_space<vmem>>, vector<1x256x128xbf16>
    %13 = vector.shape_cast %12 : vector<1x256x128xbf16> to vector<256x128xbf16>
    %cst_9 = arith.constant dense<0.000000e+00> : vector<32x128xf32>
    %14 = tpu.matmul %11, %13, %cst_9 {dimension_numbers = #tpu.dot_dimension_numbers<[1], [0], [0], [1], [0, 0, 1, 1], [], []>} : vector<32x256xbf16>, vector<256x128xbf16>, vector<32x128xf32> -> vector<32x128xf32>
    %cst_10 = arith.constant dense<0.000000e+00> : vector<128xf32>
    %15 = vector.multi_reduction <add>, %14, %cst_10 [0] : vector<32x128xf32> to vector<128xf32>
    %16 = vector.shape_cast %15 : vector<128xf32> to vector<1x128xf32>
    %17 = arith.mulf %14, %14 : vector<32x128xf32>
    %cst_11 = arith.constant dense<0.000000e+00> : vector<128xf32>
    %18 = vector.multi_reduction <add>, %17, %cst_11 [0] : vector<32x128xf32> to vector<128xf32>
    %19 = vector.shape_cast %18 : vector<128xf32> to vector<1x128xf32>
    %20 = tpu.iota {dimensions = array<i32: 0>} : vector<8x128xi32>
    %c0_i32 = arith.constant 0 : i32
    %21 = vector.broadcast %c0_i32 : i32 to vector<8x128xi32>
    %22 = arith.cmpi eq, %20, %21 : vector<8x128xi32>
    %c1_i32 = arith.constant 1 : i32
    %23 = vector.broadcast %c1_i32 : i32 to vector<8x128xi32>
    %24 = arith.cmpi eq, %20, %23 : vector<8x128xi32>
    %cst_12 = arith.constant 0.000000e+00 : f32
    %25 = vector.shape_cast %19 : vector<1x128xf32> to vector<1x128xf32>
    %26 = vector.broadcast %25 : vector<1x128xf32> to vector<8x128xf32>
    %27 = vector.broadcast %cst_12 : f32 to vector<8x128xf32>
    %28 = arith.select %24, %26, %27 : vector<8x128xi1>, vector<8x128xf32>
    %29 = vector.shape_cast %16 : vector<1x128xf32> to vector<1x128xf32>
    %30 = vector.broadcast %29 : vector<1x128xf32> to vector<8x128xf32>
    %31 = arith.select %22, %30, %28 : vector<8x128xi1>, vector<8x128xf32>
    %c0_13 = arith.constant 0 : index
    %c0_14 = arith.constant 0 : index
    %c0_15 = arith.constant 0 : index
    %c0_16 = arith.constant 0 : index
    %32 = vector.load %arg7[%c0_13, %c0_14, %c0_15, %c0_16] : memref<1x1x8x128xf32, #tpu.memory_space<vmem>>, vector<1x1x8x128xf32>
    %33 = vector.shape_cast %32 : vector<1x1x8x128xf32> to vector<8x128xf32>
    %34 = vector.shape_cast %31 : vector<8x128xf32> to vector<1x1x8x128xf32>
    tpu.vector_store %arg7[%c0_13, %c0_14, %c0_15, %c0_16], %34 {strides = array<i32>} : memref<1x1x8x128xf32, #tpu.memory_space<vmem>>, vector<1x1x8x128xf32>,
    %35 = arith.truncf %14 : vector<32x128xf32> to vector<32x128xbf16>
    %c0_17 = arith.constant 0 : index
    %c0_18 = arith.constant 0 : index
    %c0_19 = arith.constant 0 : index
    %36 = vector.load %arg6[%c0_17, %c0_18, %c0_19] : memref<1x32x128xbf16, #tpu.memory_space<vmem>>, vector<1x32x128xbf16>
    %37 = vector.shape_cast %36 : vector<1x32x128xbf16> to vector<32x128xbf16>
    %38 = vector.shape_cast %35 : vector<32x128xbf16> to vector<1x32x128xbf16>
    tpu.vector_store %arg6[%c0_17, %c0_18, %c0_19], %38 {strides = array<i32>} : memref<1x32x128xbf16, #tpu.memory_space<vmem>>, vector<1x32x128xbf16>,
    return
  }
  func.func @transform_0(%arg0: i32, %arg1: i32) -> (i32, i32, i32) {
    %c0_i32 = arith.constant 0 : i32
    %c0_i32_0 = arith.constant 0 : i32
    return %arg0, %arg1, %c0_i32 : i32, i32, i32
  }
  func.func @transform_1(%arg0: i32, %arg1: i32) -> (i32, i32) {
    %c0_i32 = arith.constant 0 : i32
    %c0_i32_0 = arith.constant 0 : i32
    %c0_i32_1 = arith.constant 0 : i32
    return %c0_i32, %c0_i32_0 : i32, i32
  }
  func.func @transform_2(%arg0: i32, %arg1: i32) -> (i32, i32) {
    %c0_i32 = arith.constant 0 : i32
    %c0_i32_0 = arith.constant 0 : i32
    %c0_i32_1 = arith.constant 0 : i32
    return %c0_i32, %c0_i32_0 : i32, i32
  }
  func.func @transform_3(%arg0: i32, %arg1: i32) -> (i32, i32, i32) {
    %c0_i32 = arith.constant 0 : i32
    %c0_i32_0 = arith.constant 0 : i32
    %c0_i32_1 = arith.constant 0 : i32
    return %arg0, %c0_i32, %c0_i32_0 : i32, i32, i32
  }
  func.func @transform_4(%arg0: i32, %arg1: i32) -> (i32, i32, i32) {
    %c0_i32 = arith.constant 0 : i32
    %c0_i32_0 = arith.constant 0 : i32
    return %arg0, %arg1, %c0_i32 : i32, i32, i32
  }
  func.func @transform_5(%arg0: i32, %arg1: i32) -> (i32, i32, i32, i32) {
    %c0_i32 = arith.constant 0 : i32
    %c0_i32_0 = arith.constant 0 : i32
    %c0_i32_1 = arith.constant 0 : i32
    return %arg0, %arg1, %c0_i32, %c0_i32_0 : i32, i32, i32, i32
  }
}

module attributes {stable_mosaic.version = 11 : i64} {
  func.func @_mm_kernel(%arg0: i32, %arg1: i32, %arg2: memref<1x16x512xbf16, #tpu.memory_space<vmem>>, %arg3: memref<1x512xf32, #tpu.memory_space<vmem>>, %arg4: memref<1x512xf32, #tpu.memory_space<vmem>>, %arg5: memref<1x512x128xbf16, #tpu.memory_space<vmem>>, %arg6: memref<1x128xf32, #tpu.memory_space<vmem>>, %arg7: memref<1x16x128xf32, #tpu.memory_space<vmem>>) attributes {dimension_semantics = [#tpu.dimension_semantics<parallel>, #tpu.dimension_semantics<parallel>], iteration_bounds = array<i64: 1, 1>, scalar_prefetch = 0 : i64, scratch_operands = 0 : i64, tpu.core_type = #tpu.core_type<tc>, window_params = [{transform_indices = @transform_0, window_bounds = array<i64: 1, 16, 512>}, {pipeline_mode = #tpu.pipeline_mode<synchronous>, transform_indices = @transform_1, window_bounds = array<i64: 1, 512>}, {pipeline_mode = #tpu.pipeline_mode<synchronous>, transform_indices = @transform_2, window_bounds = array<i64: 1, 512>}, {transform_indices = @transform_3, window_bounds = array<i64: 1, 512, 128>}, {pipeline_mode = #tpu.pipeline_mode<synchronous>, transform_indices = @transform_4, window_bounds = array<i64: 1, 128>}, {transform_indices = @transform_5, window_bounds = array<i64: 1, 16, 128>}]} {
    %c0 = arith.constant 0 : index
    %c0_0 = arith.constant 0 : index
    %c0_1 = arith.constant 0 : index
    %0 = vector.load %arg2[%c0, %c0_0, %c0_1] : memref<1x16x512xbf16, #tpu.memory_space<vmem>>, vector<1x16x512xbf16>
    %1 = vector.shape_cast %0 : vector<1x16x512xbf16> to vector<16x512xbf16>
    %2 = arith.extf %1 : vector<16x512xbf16> to vector<16x512xf32>
    %c0_2 = arith.constant 0 : index
    %c0_3 = arith.constant 0 : index
    %3 = vector.load %arg3[%c0_2, %c0_3] : memref<1x512xf32, #tpu.memory_space<vmem>>, vector<1x512xf32>
    %4 = vector.broadcast %3 : vector<1x512xf32> to vector<16x512xf32>
    %5 = arith.mulf %2, %4 : vector<16x512xf32>
    %c0_4 = arith.constant 0 : index
    %c0_5 = arith.constant 0 : index
    %6 = vector.load %arg4[%c0_4, %c0_5] : memref<1x512xf32, #tpu.memory_space<vmem>>, vector<1x512xf32>
    %7 = vector.broadcast %6 : vector<1x512xf32> to vector<16x512xf32>
    %8 = arith.addf %5, %7 : vector<16x512xf32>
    %cst = arith.constant 0.000000e+00 : f32
    %9 = vector.broadcast %cst : f32 to vector<16x512xf32>
    %10 = arith.maximumf %8, %9 : vector<16x512xf32>
    %11 = arith.truncf %10 : vector<16x512xf32> to vector<16x512xbf16>
    %c0_6 = arith.constant 0 : index
    %c0_7 = arith.constant 0 : index
    %c0_8 = arith.constant 0 : index
    %12 = vector.load %arg5[%c0_6, %c0_7, %c0_8] : memref<1x512x128xbf16, #tpu.memory_space<vmem>>, vector<1x512x128xbf16>
    %13 = vector.shape_cast %12 : vector<1x512x128xbf16> to vector<512x128xbf16>
    %cst_9 = arith.constant dense<0.000000e+00> : vector<16x128xf32>
    %14 = tpu.matmul %11, %13, %cst_9 {dimension_numbers = #tpu.dot_dimension_numbers<[1], [0], [0], [1], [0, 0, 1, 1], [], []>} : vector<16x512xbf16>, vector<512x128xbf16>, vector<16x128xf32> -> vector<16x128xf32>
    %c0_10 = arith.constant 0 : index
    %c0_11 = arith.constant 0 : index
    %15 = vector.load %arg6[%c0_10, %c0_11] : memref<1x128xf32, #tpu.memory_space<vmem>>, vector<1x128xf32>
    %16 = vector.broadcast %15 : vector<1x128xf32> to vector<16x128xf32>
    %17 = arith.addf %14, %16 : vector<16x128xf32>
    %c0_12 = arith.constant 0 : index
    %c0_13 = arith.constant 0 : index
    %c0_14 = arith.constant 0 : index
    %18 = vector.load %arg7[%c0_12, %c0_13, %c0_14] : memref<1x16x128xf32, #tpu.memory_space<vmem>>, vector<1x16x128xf32>
    %19 = vector.shape_cast %18 : vector<1x16x128xf32> to vector<16x128xf32>
    %20 = vector.shape_cast %17 : vector<16x128xf32> to vector<1x16x128xf32>
    tpu.vector_store %arg7[%c0_12, %c0_13, %c0_14], %20 {strides = array<i32>} : memref<1x16x128xf32, #tpu.memory_space<vmem>>, vector<1x16x128xf32>,
    return
  }
  func.func @transform_0(%arg0: i32, %arg1: i32) -> (i32, i32, i32) {
    %c0_i32 = arith.constant 0 : i32
    %c0_i32_0 = arith.constant 0 : i32
    return %arg0, %arg1, %c0_i32 : i32, i32, i32
  }
  func.func @transform_1(%arg0: i32, %arg1: i32) -> (i32, i32) {
    %c0_i32 = arith.constant 0 : i32
    %c0_i32_0 = arith.constant 0 : i32
    %c0_i32_1 = arith.constant 0 : i32
    return %c0_i32, %c0_i32_0 : i32, i32
  }
  func.func @transform_2(%arg0: i32, %arg1: i32) -> (i32, i32) {
    %c0_i32 = arith.constant 0 : i32
    %c0_i32_0 = arith.constant 0 : i32
    %c0_i32_1 = arith.constant 0 : i32
    return %c0_i32, %c0_i32_0 : i32, i32
  }
  func.func @transform_3(%arg0: i32, %arg1: i32) -> (i32, i32, i32) {
    %c0_i32 = arith.constant 0 : i32
    %c0_i32_0 = arith.constant 0 : i32
    %c0_i32_1 = arith.constant 0 : i32
    return %arg0, %c0_i32, %c0_i32_0 : i32, i32, i32
  }
  func.func @transform_4(%arg0: i32, %arg1: i32) -> (i32, i32) {
    %c0_i32 = arith.constant 0 : i32
    %c0_i32_0 = arith.constant 0 : i32
    %c0_i32_1 = arith.constant 0 : i32
    return %c0_i32, %c0_i32_0 : i32, i32
  }
  func.func @transform_5(%arg0: i32, %arg1: i32) -> (i32, i32, i32) {
    %c0_i32 = arith.constant 0 : i32
    %c0_i32_0 = arith.constant 0 : i32
    return %arg0, %arg1, %c0_i32 : i32, i32, i32
  }
}

module attributes {stable_mosaic.version = 11 : i64} {
  func.func @_mm_kernel(%arg0: i32, %arg1: i32, %arg2: memref<1x16x16xbf16, #tpu.memory_space<vmem>>, %arg3: memref<1x16x512xbf16, #tpu.memory_space<vmem>>, %arg4: memref<1x512xf32, #tpu.memory_space<vmem>>, %arg5: memref<1x16x512xbf16, #tpu.memory_space<vmem>>) attributes {dimension_semantics = [#tpu.dimension_semantics<parallel>, #tpu.dimension_semantics<parallel>], iteration_bounds = array<i64: 1, 1>, scalar_prefetch = 0 : i64, scratch_operands = 0 : i64, tpu.core_type = #tpu.core_type<tc>, window_params = [{transform_indices = @transform_0, window_bounds = array<i64: 1, 16, 16>}, {transform_indices = @transform_1, window_bounds = array<i64: 1, 16, 512>}, {pipeline_mode = #tpu.pipeline_mode<synchronous>, transform_indices = @transform_2, window_bounds = array<i64: 1, 512>}, {transform_indices = @transform_3, window_bounds = array<i64: 1, 16, 512>}]} {
    %c0 = arith.constant 0 : index
    %c0_0 = arith.constant 0 : index
    %c0_1 = arith.constant 0 : index
    %0 = vector.load %arg2[%c0, %c0_0, %c0_1] : memref<1x16x16xbf16, #tpu.memory_space<vmem>>, vector<1x16x16xbf16>
    %1 = vector.shape_cast %0 : vector<1x16x16xbf16> to vector<16x16xbf16>
    %c0_2 = arith.constant 0 : index
    %c0_3 = arith.constant 0 : index
    %c0_4 = arith.constant 0 : index
    %2 = vector.load %arg3[%c0_2, %c0_3, %c0_4] : memref<1x16x512xbf16, #tpu.memory_space<vmem>>, vector<1x16x512xbf16>
    %3 = vector.shape_cast %2 : vector<1x16x512xbf16> to vector<16x512xbf16>
    %cst = arith.constant dense<0.000000e+00> : vector<16x512xf32>
    %4 = tpu.matmul %1, %3, %cst {dimension_numbers = #tpu.dot_dimension_numbers<[1], [0], [0], [1], [0, 0, 1, 1], [], []>} : vector<16x16xbf16>, vector<16x512xbf16>, vector<16x512xf32> -> vector<16x512xf32>
    %c0_5 = arith.constant 0 : index
    %c0_6 = arith.constant 0 : index
    %5 = vector.load %arg4[%c0_5, %c0_6] : memref<1x512xf32, #tpu.memory_space<vmem>>, vector<1x512xf32>
    %6 = vector.broadcast %5 : vector<1x512xf32> to vector<16x512xf32>
    %7 = arith.addf %4, %6 : vector<16x512xf32>
    %cst_7 = arith.constant 0.000000e+00 : f32
    %8 = vector.broadcast %cst_7 : f32 to vector<16x512xf32>
    %9 = arith.cmpf oge, %7, %8 : vector<16x512xf32>
    %cst_8 = arith.constant 2.000000e-01 : f32
    %10 = vector.broadcast %cst_8 : f32 to vector<16x512xf32>
    %11 = arith.mulf %10, %7 : vector<16x512xf32>
    %12 = arith.select %9, %7, %11 : vector<16x512xi1>, vector<16x512xf32>
    %13 = arith.truncf %12 : vector<16x512xf32> to vector<16x512xbf16>
    %c0_9 = arith.constant 0 : index
    %c0_10 = arith.constant 0 : index
    %c0_11 = arith.constant 0 : index
    %14 = vector.load %arg5[%c0_9, %c0_10, %c0_11] : memref<1x16x512xbf16, #tpu.memory_space<vmem>>, vector<1x16x512xbf16>
    %15 = vector.shape_cast %14 : vector<1x16x512xbf16> to vector<16x512xbf16>
    %16 = vector.shape_cast %13 : vector<16x512xbf16> to vector<1x16x512xbf16>
    tpu.vector_store %arg5[%c0_9, %c0_10, %c0_11], %16 {strides = array<i32>} : memref<1x16x512xbf16, #tpu.memory_space<vmem>>, vector<1x16x512xbf16>,
    return
  }
  func.func @transform_0(%arg0: i32, %arg1: i32) -> (i32, i32, i32) {
    %c0_i32 = arith.constant 0 : i32
    %c0_i32_0 = arith.constant 0 : i32
    return %arg0, %arg1, %c0_i32 : i32, i32, i32
  }
  func.func @transform_1(%arg0: i32, %arg1: i32) -> (i32, i32, i32) {
    %c0_i32 = arith.constant 0 : i32
    %c0_i32_0 = arith.constant 0 : i32
    %c0_i32_1 = arith.constant 0 : i32
    return %arg0, %c0_i32, %c0_i32_0 : i32, i32, i32
  }
  func.func @transform_2(%arg0: i32, %arg1: i32) -> (i32, i32) {
    %c0_i32 = arith.constant 0 : i32
    %c0_i32_0 = arith.constant 0 : i32
    %c0_i32_1 = arith.constant 0 : i32
    return %c0_i32, %c0_i32_0 : i32, i32
  }
  func.func @transform_3(%arg0: i32, %arg1: i32) -> (i32, i32, i32) {
    %c0_i32 = arith.constant 0 : i32
    %c0_i32_0 = arith.constant 0 : i32
    return %arg0, %arg1, %c0_i32 : i32, i32, i32
  }
}

module attributes {stable_mosaic.version = 11 : i64} {
  func.func @_mm_kernel(%arg0: i32, %arg1: i32, %arg2: memref<1x32x128xbf16, #tpu.memory_space<vmem>>, %arg3: memref<1x128x128xbf16, #tpu.memory_space<vmem>>, %arg4: memref<1x32x128xbf16, #tpu.memory_space<vmem>>, %arg5: memref<1x1x8x128xf32, #tpu.memory_space<vmem>>) attributes {dimension_semantics = [#tpu.dimension_semantics<parallel>, #tpu.dimension_semantics<parallel>], iteration_bounds = array<i64: 4, 1>, scalar_prefetch = 0 : i64, scratch_operands = 0 : i64, tpu.core_type = #tpu.core_type<tc>, window_params = [{transform_indices = @transform_0, window_bounds = array<i64: 1, 32, 128>}, {transform_indices = @transform_1, window_bounds = array<i64: 1, 128, 128>}, {transform_indices = @transform_2, window_bounds = array<i64: 1, 32, 128>}, {transform_indices = @transform_3, window_bounds = array<i64: 1, 1, 8, 128>}]} {
    %c0 = arith.constant 0 : index
    %c0_0 = arith.constant 0 : index
    %c0_1 = arith.constant 0 : index
    %0 = vector.load %arg2[%c0, %c0_0, %c0_1] : memref<1x32x128xbf16, #tpu.memory_space<vmem>>, vector<1x32x128xbf16>
    %1 = vector.shape_cast %0 : vector<1x32x128xbf16> to vector<32x128xbf16>
    %c0_2 = arith.constant 0 : index
    %c0_3 = arith.constant 0 : index
    %c0_4 = arith.constant 0 : index
    %2 = vector.load %arg3[%c0_2, %c0_3, %c0_4] : memref<1x128x128xbf16, #tpu.memory_space<vmem>>, vector<1x128x128xbf16>
    %3 = vector.shape_cast %2 : vector<1x128x128xbf16> to vector<128x128xbf16>
    %cst = arith.constant dense<0.000000e+00> : vector<32x128xf32>
    %4 = tpu.matmul %1, %3, %cst {dimension_numbers = #tpu.dot_dimension_numbers<[1], [0], [0], [1], [0, 0, 1, 1], [], []>} : vector<32x128xbf16>, vector<128x128xbf16>, vector<32x128xf32> -> vector<32x128xf32>
    %cst_5 = arith.constant dense<0.000000e+00> : vector<128xf32>
    %5 = vector.multi_reduction <add>, %4, %cst_5 [0] : vector<32x128xf32> to vector<128xf32>
    %6 = vector.shape_cast %5 : vector<128xf32> to vector<1x128xf32>
    %7 = arith.mulf %4, %4 : vector<32x128xf32>
    %cst_6 = arith.constant dense<0.000000e+00> : vector<128xf32>
    %8 = vector.multi_reduction <add>, %7, %cst_6 [0] : vector<32x128xf32> to vector<128xf32>
    %9 = vector.shape_cast %8 : vector<128xf32> to vector<1x128xf32>
    %10 = tpu.iota {dimensions = array<i32: 0>} : vector<8x128xi32>
    %c0_i32 = arith.constant 0 : i32
    %11 = vector.broadcast %c0_i32 : i32 to vector<8x128xi32>
    %12 = arith.cmpi eq, %10, %11 : vector<8x128xi32>
    %c1_i32 = arith.constant 1 : i32
    %13 = vector.broadcast %c1_i32 : i32 to vector<8x128xi32>
    %14 = arith.cmpi eq, %10, %13 : vector<8x128xi32>
    %cst_7 = arith.constant 0.000000e+00 : f32
    %15 = vector.shape_cast %9 : vector<1x128xf32> to vector<1x128xf32>
    %16 = vector.broadcast %15 : vector<1x128xf32> to vector<8x128xf32>
    %17 = vector.broadcast %cst_7 : f32 to vector<8x128xf32>
    %18 = arith.select %14, %16, %17 : vector<8x128xi1>, vector<8x128xf32>
    %19 = vector.shape_cast %6 : vector<1x128xf32> to vector<1x128xf32>
    %20 = vector.broadcast %19 : vector<1x128xf32> to vector<8x128xf32>
    %21 = arith.select %12, %20, %18 : vector<8x128xi1>, vector<8x128xf32>
    %c0_8 = arith.constant 0 : index
    %c0_9 = arith.constant 0 : index
    %c0_10 = arith.constant 0 : index
    %c0_11 = arith.constant 0 : index
    %22 = vector.load %arg5[%c0_8, %c0_9, %c0_10, %c0_11] : memref<1x1x8x128xf32, #tpu.memory_space<vmem>>, vector<1x1x8x128xf32>
    %23 = vector.shape_cast %22 : vector<1x1x8x128xf32> to vector<8x128xf32>
    %24 = vector.shape_cast %21 : vector<8x128xf32> to vector<1x1x8x128xf32>
    tpu.vector_store %arg5[%c0_8, %c0_9, %c0_10, %c0_11], %24 {strides = array<i32>} : memref<1x1x8x128xf32, #tpu.memory_space<vmem>>, vector<1x1x8x128xf32>,
    %25 = arith.truncf %4 : vector<32x128xf32> to vector<32x128xbf16>
    %c0_12 = arith.constant 0 : index
    %c0_13 = arith.constant 0 : index
    %c0_14 = arith.constant 0 : index
    %26 = vector.load %arg4[%c0_12, %c0_13, %c0_14] : memref<1x32x128xbf16, #tpu.memory_space<vmem>>, vector<1x32x128xbf16>
    %27 = vector.shape_cast %26 : vector<1x32x128xbf16> to vector<32x128xbf16>
    %28 = vector.shape_cast %25 : vector<32x128xbf16> to vector<1x32x128xbf16>
    tpu.vector_store %arg4[%c0_12, %c0_13, %c0_14], %28 {strides = array<i32>} : memref<1x32x128xbf16, #tpu.memory_space<vmem>>, vector<1x32x128xbf16>,
    return
  }
  func.func @transform_0(%arg0: i32, %arg1: i32) -> (i32, i32, i32) {
    %c0_i32 = arith.constant 0 : i32
    %c0_i32_0 = arith.constant 0 : i32
    return %arg0, %arg1, %c0_i32 : i32, i32, i32
  }
  func.func @transform_1(%arg0: i32, %arg1: i32) -> (i32, i32, i32) {
    %c0_i32 = arith.constant 0 : i32
    %c0_i32_0 = arith.constant 0 : i32
    %c0_i32_1 = arith.constant 0 : i32
    return %arg0, %c0_i32, %c0_i32_0 : i32, i32, i32
  }
  func.func @transform_2(%arg0: i32, %arg1: i32) -> (i32, i32, i32) {
    %c0_i32 = arith.constant 0 : i32
    %c0_i32_0 = arith.constant 0 : i32
    return %arg0, %arg1, %c0_i32 : i32, i32, i32
  }
  func.func @transform_3(%arg0: i32, %arg1: i32) -> (i32, i32, i32, i32) {
    %c0_i32 = arith.constant 0 : i32
    %c0_i32_0 = arith.constant 0 : i32
    %c0_i32_1 = arith.constant 0 : i32
    return %arg0, %arg1, %c0_i32, %c0_i32_0 : i32, i32, i32, i32
  }
}

module attributes {stable_mosaic.version = 11 : i64} {
  func.func @_mm_kernel(%arg0: i32, %arg1: i32, %arg2: memref<1x128x64xbf16, #tpu.memory_space<vmem>>, %arg3: memref<1x64xf32, #tpu.memory_space<vmem>>, %arg4: memref<1x64xf32, #tpu.memory_space<vmem>>, %arg5: memref<1x64x128xbf16, #tpu.memory_space<vmem>>, %arg6: memref<1x128x128xbf16, #tpu.memory_space<vmem>>, %arg7: memref<1x1x8x128xf32, #tpu.memory_space<vmem>>) attributes {dimension_semantics = [#tpu.dimension_semantics<parallel>, #tpu.dimension_semantics<parallel>], iteration_bounds = array<i64: 4, 1>, scalar_prefetch = 0 : i64, scratch_operands = 0 : i64, tpu.core_type = #tpu.core_type<tc>, window_params = [{transform_indices = @transform_0, window_bounds = array<i64: 1, 128, 64>}, {pipeline_mode = #tpu.pipeline_mode<synchronous>, transform_indices = @transform_1, window_bounds = array<i64: 1, 64>}, {pipeline_mode = #tpu.pipeline_mode<synchronous>, transform_indices = @transform_2, window_bounds = array<i64: 1, 64>}, {transform_indices = @transform_3, window_bounds = array<i64: 1, 64, 128>}, {transform_indices = @transform_4, window_bounds = array<i64: 1, 128, 128>}, {transform_indices = @transform_5, window_bounds = array<i64: 1, 1, 8, 128>}]} {
    %c0 = arith.constant 0 : index
    %c0_0 = arith.constant 0 : index
    %c0_1 = arith.constant 0 : index
    %0 = vector.load %arg2[%c0, %c0_0, %c0_1] : memref<1x128x64xbf16, #tpu.memory_space<vmem>>, vector<1x128x64xbf16>
    %1 = vector.shape_cast %0 : vector<1x128x64xbf16> to vector<128x64xbf16>
    %2 = arith.extf %1 : vector<128x64xbf16> to vector<128x64xf32>
    %c0_2 = arith.constant 0 : index
    %c0_3 = arith.constant 0 : index
    %3 = vector.load %arg3[%c0_2, %c0_3] : memref<1x64xf32, #tpu.memory_space<vmem>>, vector<1x64xf32>
    %4 = vector.broadcast %3 : vector<1x64xf32> to vector<128x64xf32>
    %5 = arith.mulf %2, %4 : vector<128x64xf32>
    %c0_4 = arith.constant 0 : index
    %c0_5 = arith.constant 0 : index
    %6 = vector.load %arg4[%c0_4, %c0_5] : memref<1x64xf32, #tpu.memory_space<vmem>>, vector<1x64xf32>
    %7 = vector.broadcast %6 : vector<1x64xf32> to vector<128x64xf32>
    %8 = arith.addf %5, %7 : vector<128x64xf32>
    %cst = arith.constant 0.000000e+00 : f32
    %9 = vector.broadcast %cst : f32 to vector<128x64xf32>
    %10 = arith.cmpf oge, %8, %9 : vector<128x64xf32>
    %cst_6 = arith.constant 2.000000e-01 : f32
    %11 = vector.broadcast %cst_6 : f32 to vector<128x64xf32>
    %12 = arith.mulf %11, %8 : vector<128x64xf32>
    %13 = arith.select %10, %8, %12 : vector<128x64xi1>, vector<128x64xf32>
    %14 = arith.truncf %13 : vector<128x64xf32> to vector<128x64xbf16>
    %c0_7 = arith.constant 0 : index
    %c0_8 = arith.constant 0 : index
    %c0_9 = arith.constant 0 : index
    %15 = vector.load %arg5[%c0_7, %c0_8, %c0_9] : memref<1x64x128xbf16, #tpu.memory_space<vmem>>, vector<1x64x128xbf16>
    %16 = vector.shape_cast %15 : vector<1x64x128xbf16> to vector<64x128xbf16>
    %cst_10 = arith.constant dense<0.000000e+00> : vector<128x128xf32>
    %17 = tpu.matmul %14, %16, %cst_10 {dimension_numbers = #tpu.dot_dimension_numbers<[1], [0], [0], [1], [0, 0, 1, 1], [], []>} : vector<128x64xbf16>, vector<64x128xbf16>, vector<128x128xf32> -> vector<128x128xf32>
    %cst_11 = arith.constant dense<0.000000e+00> : vector<128xf32>
    %18 = vector.multi_reduction <add>, %17, %cst_11 [0] : vector<128x128xf32> to vector<128xf32>
    %19 = vector.shape_cast %18 : vector<128xf32> to vector<1x128xf32>
    %20 = arith.mulf %17, %17 : vector<128x128xf32>
    %cst_12 = arith.constant dense<0.000000e+00> : vector<128xf32>
    %21 = vector.multi_reduction <add>, %20, %cst_12 [0] : vector<128x128xf32> to vector<128xf32>
    %22 = vector.shape_cast %21 : vector<128xf32> to vector<1x128xf32>
    %23 = tpu.iota {dimensions = array<i32: 0>} : vector<8x128xi32>
    %c0_i32 = arith.constant 0 : i32
    %24 = vector.broadcast %c0_i32 : i32 to vector<8x128xi32>
    %25 = arith.cmpi eq, %23, %24 : vector<8x128xi32>
    %c1_i32 = arith.constant 1 : i32
    %26 = vector.broadcast %c1_i32 : i32 to vector<8x128xi32>
    %27 = arith.cmpi eq, %23, %26 : vector<8x128xi32>
    %cst_13 = arith.constant 0.000000e+00 : f32
    %28 = vector.shape_cast %22 : vector<1x128xf32> to vector<1x128xf32>
    %29 = vector.broadcast %28 : vector<1x128xf32> to vector<8x128xf32>
    %30 = vector.broadcast %cst_13 : f32 to vector<8x128xf32>
    %31 = arith.select %27, %29, %30 : vector<8x128xi1>, vector<8x128xf32>
    %32 = vector.shape_cast %19 : vector<1x128xf32> to vector<1x128xf32>
    %33 = vector.broadcast %32 : vector<1x128xf32> to vector<8x128xf32>
    %34 = arith.select %25, %33, %31 : vector<8x128xi1>, vector<8x128xf32>
    %c0_14 = arith.constant 0 : index
    %c0_15 = arith.constant 0 : index
    %c0_16 = arith.constant 0 : index
    %c0_17 = arith.constant 0 : index
    %35 = vector.load %arg7[%c0_14, %c0_15, %c0_16, %c0_17] : memref<1x1x8x128xf32, #tpu.memory_space<vmem>>, vector<1x1x8x128xf32>
    %36 = vector.shape_cast %35 : vector<1x1x8x128xf32> to vector<8x128xf32>
    %37 = vector.shape_cast %34 : vector<8x128xf32> to vector<1x1x8x128xf32>
    tpu.vector_store %arg7[%c0_14, %c0_15, %c0_16, %c0_17], %37 {strides = array<i32>} : memref<1x1x8x128xf32, #tpu.memory_space<vmem>>, vector<1x1x8x128xf32>,
    %38 = arith.truncf %17 : vector<128x128xf32> to vector<128x128xbf16>
    %c0_18 = arith.constant 0 : index
    %c0_19 = arith.constant 0 : index
    %c0_20 = arith.constant 0 : index
    %39 = vector.load %arg6[%c0_18, %c0_19, %c0_20] : memref<1x128x128xbf16, #tpu.memory_space<vmem>>, vector<1x128x128xbf16>
    %40 = vector.shape_cast %39 : vector<1x128x128xbf16> to vector<128x128xbf16>
    %41 = vector.shape_cast %38 : vector<128x128xbf16> to vector<1x128x128xbf16>
    tpu.vector_store %arg6[%c0_18, %c0_19, %c0_20], %41 {strides = array<i32>} : memref<1x128x128xbf16, #tpu.memory_space<vmem>>, vector<1x128x128xbf16>,
    return
  }
  func.func @transform_0(%arg0: i32, %arg1: i32) -> (i32, i32, i32) {
    %c0_i32 = arith.constant 0 : i32
    %c0_i32_0 = arith.constant 0 : i32
    return %arg0, %arg1, %c0_i32 : i32, i32, i32
  }
  func.func @transform_1(%arg0: i32, %arg1: i32) -> (i32, i32) {
    %c0_i32 = arith.constant 0 : i32
    %c0_i32_0 = arith.constant 0 : i32
    %c0_i32_1 = arith.constant 0 : i32
    return %c0_i32, %c0_i32_0 : i32, i32
  }
  func.func @transform_2(%arg0: i32, %arg1: i32) -> (i32, i32) {
    %c0_i32 = arith.constant 0 : i32
    %c0_i32_0 = arith.constant 0 : i32
    %c0_i32_1 = arith.constant 0 : i32
    return %c0_i32, %c0_i32_0 : i32, i32
  }
  func.func @transform_3(%arg0: i32, %arg1: i32) -> (i32, i32, i32) {
    %c0_i32 = arith.constant 0 : i32
    %c0_i32_0 = arith.constant 0 : i32
    %c0_i32_1 = arith.constant 0 : i32
    return %arg0, %c0_i32, %c0_i32_0 : i32, i32, i32
  }
  func.func @transform_4(%arg0: i32, %arg1: i32) -> (i32, i32, i32) {
    %c0_i32 = arith.constant 0 : i32
    %c0_i32_0 = arith.constant 0 : i32
    return %arg0, %arg1, %c0_i32 : i32, i32, i32
  }
  func.func @transform_5(%arg0: i32, %arg1: i32) -> (i32, i32, i32, i32) {
    %c0_i32 = arith.constant 0 : i32
    %c0_i32_0 = arith.constant 0 : i32
    %c0_i32_1 = arith.constant 0 : i32
    return %arg0, %arg1, %c0_i32, %c0_i32_0 : i32, i32, i32, i32
  }
}

module attributes {stable_mosaic.version = 11 : i64} {
  func.func @_mm_kernel(%arg0: i32, %arg1: i32, %arg2: memref<1x512x32xbf16, #tpu.memory_space<vmem>>, %arg3: memref<1x32xf32, #tpu.memory_space<vmem>>, %arg4: memref<1x32xf32, #tpu.memory_space<vmem>>, %arg5: memref<1x32x128xbf16, #tpu.memory_space<vmem>>, %arg6: memref<1x128xf32, #tpu.memory_space<vmem>>, %arg7: memref<1x512x128xbf16, #tpu.memory_space<vmem>>) attributes {dimension_semantics = [#tpu.dimension_semantics<parallel>, #tpu.dimension_semantics<parallel>], iteration_bounds = array<i64: 4, 1>, scalar_prefetch = 0 : i64, scratch_operands = 0 : i64, tpu.core_type = #tpu.core_type<tc>, window_params = [{transform_indices = @transform_0, window_bounds = array<i64: 1, 512, 32>}, {pipeline_mode = #tpu.pipeline_mode<synchronous>, transform_indices = @transform_1, window_bounds = array<i64: 1, 32>}, {pipeline_mode = #tpu.pipeline_mode<synchronous>, transform_indices = @transform_2, window_bounds = array<i64: 1, 32>}, {transform_indices = @transform_3, window_bounds = array<i64: 1, 32, 128>}, {pipeline_mode = #tpu.pipeline_mode<synchronous>, transform_indices = @transform_4, window_bounds = array<i64: 1, 128>}, {transform_indices = @transform_5, window_bounds = array<i64: 1, 512, 128>}]} {
    %c0 = arith.constant 0 : index
    %c0_0 = arith.constant 0 : index
    %c0_1 = arith.constant 0 : index
    %0 = vector.load %arg2[%c0, %c0_0, %c0_1] : memref<1x512x32xbf16, #tpu.memory_space<vmem>>, vector<1x512x32xbf16>
    %1 = vector.shape_cast %0 : vector<1x512x32xbf16> to vector<512x32xbf16>
    %2 = arith.extf %1 : vector<512x32xbf16> to vector<512x32xf32>
    %c0_2 = arith.constant 0 : index
    %c0_3 = arith.constant 0 : index
    %3 = vector.load %arg3[%c0_2, %c0_3] : memref<1x32xf32, #tpu.memory_space<vmem>>, vector<1x32xf32>
    %4 = vector.broadcast %3 : vector<1x32xf32> to vector<512x32xf32>
    %5 = arith.mulf %2, %4 : vector<512x32xf32>
    %c0_4 = arith.constant 0 : index
    %c0_5 = arith.constant 0 : index
    %6 = vector.load %arg4[%c0_4, %c0_5] : memref<1x32xf32, #tpu.memory_space<vmem>>, vector<1x32xf32>
    %7 = vector.broadcast %6 : vector<1x32xf32> to vector<512x32xf32>
    %8 = arith.addf %5, %7 : vector<512x32xf32>
    %cst = arith.constant 0.000000e+00 : f32
    %9 = vector.broadcast %cst : f32 to vector<512x32xf32>
    %10 = arith.cmpf oge, %8, %9 : vector<512x32xf32>
    %cst_6 = arith.constant 2.000000e-01 : f32
    %11 = vector.broadcast %cst_6 : f32 to vector<512x32xf32>
    %12 = arith.mulf %11, %8 : vector<512x32xf32>
    %13 = arith.select %10, %8, %12 : vector<512x32xi1>, vector<512x32xf32>
    %14 = arith.truncf %13 : vector<512x32xf32> to vector<512x32xbf16>
    %c0_7 = arith.constant 0 : index
    %c0_8 = arith.constant 0 : index
    %c0_9 = arith.constant 0 : index
    %15 = vector.load %arg5[%c0_7, %c0_8, %c0_9] : memref<1x32x128xbf16, #tpu.memory_space<vmem>>, vector<1x32x128xbf16>
    %16 = vector.shape_cast %15 : vector<1x32x128xbf16> to vector<32x128xbf16>
    %cst_10 = arith.constant dense<0.000000e+00> : vector<512x128xf32>
    %17 = tpu.matmul %14, %16, %cst_10 {dimension_numbers = #tpu.dot_dimension_numbers<[1], [0], [0], [1], [0, 0, 1, 1], [], []>} : vector<512x32xbf16>, vector<32x128xbf16>, vector<512x128xf32> -> vector<512x128xf32>
    %c0_11 = arith.constant 0 : index
    %c0_12 = arith.constant 0 : index
    %18 = vector.load %arg6[%c0_11, %c0_12] : memref<1x128xf32, #tpu.memory_space<vmem>>, vector<1x128xf32>
    %19 = vector.broadcast %18 : vector<1x128xf32> to vector<512x128xf32>
    %20 = arith.addf %17, %19 : vector<512x128xf32>
    %cst_13 = arith.constant 0.000000e+00 : f32
    %21 = vector.broadcast %cst_13 : f32 to vector<512x128xf32>
    %22 = arith.subf %21, %20 : vector<512x128xf32>
    %23 = math.exp %22 : vector<512x128xf32>
    %cst_14 = arith.constant 1.000000e+00 : f32
    %24 = vector.broadcast %cst_14 : f32 to vector<512x128xf32>
    %25 = arith.addf %24, %23 : vector<512x128xf32>
    %cst_15 = arith.constant 1.000000e+00 : f32
    %26 = vector.broadcast %cst_15 : f32 to vector<512x128xf32>
    %27 = arith.divf %26, %25 : vector<512x128xf32>
    %28 = arith.truncf %27 : vector<512x128xf32> to vector<512x128xbf16>
    %c0_16 = arith.constant 0 : index
    %c0_17 = arith.constant 0 : index
    %c0_18 = arith.constant 0 : index
    %29 = vector.load %arg7[%c0_16, %c0_17, %c0_18] : memref<1x512x128xbf16, #tpu.memory_space<vmem>>, vector<1x512x128xbf16>
    %30 = vector.shape_cast %29 : vector<1x512x128xbf16> to vector<512x128xbf16>
    %31 = vector.shape_cast %28 : vector<512x128xbf16> to vector<1x512x128xbf16>
    tpu.vector_store %arg7[%c0_16, %c0_17, %c0_18], %31 {strides = array<i32>} : memref<1x512x128xbf16, #tpu.memory_space<vmem>>, vector<1x512x128xbf16>,
    return
  }
  func.func @transform_0(%arg0: i32, %arg1: i32) -> (i32, i32, i32) {
    %c0_i32 = arith.constant 0 : i32
    %c0_i32_0 = arith.constant 0 : i32
    return %arg0, %arg1, %c0_i32 : i32, i32, i32
  }
  func.func @transform_1(%arg0: i32, %arg1: i32) -> (i32, i32) {
    %c0_i32 = arith.constant 0 : i32
    %c0_i32_0 = arith.constant 0 : i32
    %c0_i32_1 = arith.constant 0 : i32
    return %c0_i32, %c0_i32_0 : i32, i32
  }
  func.func @transform_2(%arg0: i32, %arg1: i32) -> (i32, i32) {
    %c0_i32 = arith.constant 0 : i32
    %c0_i32_0 = arith.constant 0 : i32
    %c0_i32_1 = arith.constant 0 : i32
    return %c0_i32, %c0_i32_0 : i32, i32
  }
  func.func @transform_3(%arg0: i32, %arg1: i32) -> (i32, i32, i32) {
    %c0_i32 = arith.constant 0 : i32
    %c0_i32_0 = arith.constant 0 : i32
    %c0_i32_1 = arith.constant 0 : i32
    return %arg0, %c0_i32, %c0_i32_0 : i32, i32, i32
  }
  func.func @transform_4(%arg0: i32, %arg1: i32) -> (i32, i32) {
    %c0_i32 = arith.constant 0 : i32
    %c0_i32_0 = arith.constant 0 : i32
    %c0_i32_1 = arith.constant 0 : i32
    return %c0_i32, %c0_i32_0 : i32, i32
  }
  func.func @transform_5(%arg0: i32, %arg1: i32) -> (i32, i32, i32) {
    %c0_i32 = arith.constant 0 : i32
    %c0_i32_0 = arith.constant 0 : i32
    return %arg0, %arg1, %c0_i32 : i32, i32, i32
  }
}

</mosaic_0001>

<bundles_post_ra>
// kernel: vae_forward.8
= control target key start
LH: loop header
LB: loop body
LE: loop exit
PB: predicated region body
PF: predicated region fallthrough
CT: control target
= control target key end

     0   :  { %s1148_s12 = smov 0   ;;  %s1150_s13 = smov 0   ;;  %s1371_s0 = inlined_call_operand.vmem [shape: bf16[1,512,48], index: 0, kind: input, shape index: {}]   ;;  %s1372_s1 = inlined_call_operand.vmem [shape: bf16[1,48,128], index: 1, kind: input, shape index: {}]   ;;  %s1373_s2 = inlined_call_operand.vmem [shape: bf16[1,512,128], index: 2, kind: output, shape index: {0}]   ;;  %s1374_s3 = inlined_call_operand.vmem [shape: f32[1,2,8,128], index: 3, kind: output, shape index: {1}]  }
   0x1   :  { %s1152_s14 = smov 0  }
   0x2 LB: > { %s23_s15 = sadd.s32 1, %s1122_s13  ;;  %p857_p0 = scmp.ge.s32.totalorder %s1126_s14, 1  ;;  %s1126_s14 = sphi %s1152_s14, %s14_s14   ;;  %s1122_s13 = sphi %s1150_s13, %s1376_s13   ;;  %s1118_s12 = sphi %s1148_s12, %s1375_s12  }
   0x3   : > { %p24_p1 = scmp.ge.s32.totalorder %s23_s15, 2  ;;  %p173_p2 = scmp.lt.s32.totalorder %s1126_s14, 3 }
   0x5   : > { %s1378_s15 = smov (%p24_p1, %s23_s15), 0  ;;  %p174_p3 = pnand %p857_p0, %p173_p2 }
   0x6   : > { %s858_s18 = sshll.u32 (!%p174_p3), %s1118_s12, 5  ;;  %p245_p5 = scmp.lt.s32.totalorder (!%p174_p3), %s1118_s12, 1 }
   0x7   : > { %177 = sbr.rel (%p174_p3) target bundleno = 273 (0x111), region = 28  ;;  %p221_p4 = scmp.lt.s32.totalorder (!%p174_p3), %s858_s18, 63 }
   0xc   : > { %v975_v0 = vld [vmem:[%s1372_s1 + $0x10] sm:$0xff]  ;;  %v974_v1 = vld [vmem:[%s1372_s1 + $0x8] sm:$0xff]  ;;  %s1380_s18 = smov (!%p221_p4, %s858_s18), 63  ;;  %v973_v2 = vld [vmem:[%s1372_s1] sm:$0xff]  ;;  %vm388_vm0 = vcmask 392192   ;;  %s1382_s12 = smov (!%p245_p5, %s1118_s12), 1 }
   0xd   : > { %442 = vmatpush.bf16.msra.mxu0 %v975_v0  ;;  %1071 = vmatpush.bf16.msra.mxu1 %v975_v0  ;;  %s859_s21 = sshll.u32 %s1380_s18, 2  ;;  %s862_s30 = sshll.u32 %s1382_s12, 3 }
   0xe   : > { %1072 = vmatpush.bf16.msra.mxu2 %v975_v0  ;;  %1073 = vmatpush.bf16.msra.mxu3 %v975_v0  ;;  %s1186_s26 = scalar_lea.vmem %s1371_s0, %s859_s21  ;;  %s1229_s29 = scalar_lea.vmem %s1373_s2, %s859_s21 }
   0xf   : > { %v957_v3 = vld [vmem:[%s1186_s26] sm:$0xff]  ;;  %v958_v7 = vld [vmem:[%s1186_s26 + $0x8] sm:$0xff]  ;;  %v959_v11 = vld [vmem:[%s1186_s26 + $0x10] sm:$0xff]  ;;  %s250_s6 = scalar_lea.vmem %s1374_s3, %s862_s30 }
  0x10   : > { %v961_v4 = vld [vmem:[%s1186_s26 + $0x20] sm:$0xff]  ;;  %v962_v8 = vld [vmem:[%s1186_s26 + $0x28] sm:$0xff]  ;;  %v963_v12 = vld [vmem:[%s1186_s26 + $0x30] sm:$0xff] }
  0x11   : > { %443 = vmatpush.bf16.msra.mxu0 %v974_v1  ;;  %1074 = vmatpush.bf16.msra.mxu1 %v974_v1  ;;  %v965_v5 = vld [vmem:[%s1186_s26 + $0x40] sm:$0xff]  ;;  %v966_v9 = vld [vmem:[%s1186_s26 + $0x48] sm:$0xff]  ;;  %v967_v13 = vld [vmem:[%s1186_s26 + $0x50] sm:$0xff] }
  0x12   : > { %1075 = vmatpush.bf16.msra.mxu2 %v974_v1  ;;  %1076 = vmatpush.bf16.msra.mxu3 %v974_v1  ;;  %v969_v6 = vld [vmem:[%s1186_s26 + $0x60] sm:$0xff]  ;;  %v970_v10 = vld [vmem:[%s1186_s26 + $0x68] sm:$0xff]  ;;  %v971_v14 = vld [vmem:[%s1186_s26 + $0x70] sm:$0xff] }
  0x13   : > { %v960_v15 = vld [vmem:[%s1186_s26 + $0x18] sm:$0xff] }
  0x14   : > { %v964_v16 = vld [vmem:[%s1186_s26 + $0x38] sm:$0xff] }
  0x15   : > { %444 = vmatpush.bf16.msra.mxu0 %v973_v2  ;;  %1077 = vmatpush.bf16.msra.mxu1 %v973_v2  ;;  %v968_v17 = vld [vmem:[%s1186_s26 + $0x58] sm:$0xff] }
  0x16   : > { %1078 = vmatpush.bf16.msra.mxu2 %v973_v2  ;;  %1079 = vmatpush.bf16.msra.mxu3 %v973_v2  ;;  %v972_v18 = vld [vmem:[%s1186_s26 + $0x78] sm:$0xff] }
  0x18   : > { %939 = vmatmul.msk.bf16.vlgmr.msra.gmra.mxu0 %vm388_vm0, %v957_v3  ;;  %943 = vmatmul.msk.bf16.vlgmr.msra.gmra.mxu1 %vm388_vm0, %v961_v4 }
  0x19   : > { %947 = vmatmul.msk.bf16.vlgmr.msra.gmra.mxu2 %vm388_vm0, %v965_v5  ;;  %951 = vmatmul.msk.bf16.vlgmr.msra.gmra.mxu3 %vm388_vm0, %v969_v6 }
  0x28   : > { %940 = vmatmul.msk.bf16.gmra.mxu0 %vm388_vm0, %v958_v7  ;;  %944 = vmatmul.msk.bf16.gmra.mxu1 %vm388_vm0, %v962_v8 }
  0x29   : > { %948 = vmatmul.msk.bf16.gmra.mxu2 %vm388_vm0, %v966_v9  ;;  %952 = vmatmul.msk.bf16.gmra.mxu3 %vm388_vm0, %v970_v10 }
  0x38   : > { %941 = vmatmul.msk.bf16.gmra.mxu0 %vm388_vm0, %v959_v11  ;;  %945 = vmatmul.msk.bf16.gmra.mxu1 %vm388_vm0, %v963_v12 }
  0x39   : > { %949 = vmatmul.msk.bf16.gmra.mxu2 %vm388_vm0, %v967_v13  ;;  %953 = vmatmul.msk.bf16.gmra.mxu3 %vm388_vm0, %v971_v14 }
  0x48   : > { %942 = vmatmul.msk.bf16.gmra.mxu0 %vm388_vm0, %v960_v15  ;;  %946 = vmatmul.msk.bf16.gmra.mxu1 %vm388_vm0, %v964_v16 }
  0x49   : > { %950 = vmatmul.msk.bf16.gmra.mxu2 %vm388_vm0, %v968_v17  ;;  %954 = vmatmul.msk.bf16.gmra.mxu3 %vm388_vm0, %v972_v18 }
  0x95   : > { %v446_v19 = vpop.f32.mrf.mxu0  ;;  %v1220_v20 = vpop.f32.mrf.mxu1 }
  0x96   : > { %v563_v52 = vmul.f32 %v446_v19, %v446_v19 }
  0x9c   : > { %v1222_v21 = vpop.f32.mrf.mxu2  ;;  %v1233_v25 = vpop.f32.mrf.mxu3 }
  0x9d   : > { %v448_v22 = vpop.f32.mrf.mxu0  ;;  %v1231_v23 = vpop.f32.mrf.mxu1 }
  0x9e   : > { %v979_v24 = vpack.c.bf16 %v448_v22, %v446_v19  ;;  %v999_v26 = vpack.c.bf16 %v1231_v23, %v1220_v20  ;;  %v564_v51 = vmul.f32 %v448_v22, %v448_v22  ;;  %v526_v53 = vadd.f32 %v448_v22, %v446_v19 }
  0x9f   : > { %v571_v22 = vmul.f32 %v1220_v20, %v1220_v20 }
  0xa0   : > { %980 = vst [vmem:[%s1229_s29] sm:$0xff] %v979_v24   ;;  %v595_v55 = vadd.f32 %v564_v51, %v563_v52 }
  0xa1   : > { %1059 = vst [vmem:[%s1229_s29 + $0x20] sm:$0xff] %v999_v26  }
  0xa4   : > { %v1239_v27 = vpop.f32.mrf.mxu2  ;;  %v1245_v31 = vpop.f32.mrf.mxu3 }
  0xa5   : > { %v451_v28 = vpop.f32.mrf.mxu0  ;;  %v1241_v29 = vpop.f32.mrf.mxu1  ;;  %v1019_v30 = vpack.c.bf16 %v1239_v27, %v1222_v21  ;;  %v1039_v32 = vpack.c.bf16 %v1245_v31, %v1233_v25 }
  0xa6   : > { %v565_v54 = vmul.f32 %v451_v28, %v451_v28  ;;  %v527_v56 = vadd.f32 %v526_v53, %v451_v28 }
  0xa7   : > { %1063 = vst [vmem:[%s1229_s29 + $0x40] sm:$0xff] %v1019_v30  }
  0xa8   : > { %1067 = vst [vmem:[%s1229_s29 + $0x60] sm:$0xff] %v1039_v32   ;;  %v596_v62 = vadd.f32 %v595_v55, %v565_v54 }
  0xac   : > { %v1251_v33 = vpop.f32.mrf.mxu2  ;;  %v1255_v37 = vpop.f32.mrf.mxu3 }
  0xad   : > { %v453_v34 = vpop.f32.mrf.mxu0  ;;  %v1253_v35 = vpop.f32.mrf.mxu1 }
  0xae   : > { %v984_v36 = vpack.c.bf16 %v453_v34, %v451_v28  ;;  %v1004_v38 = vpack.c.bf16 %v1253_v35, %v1241_v29  ;;  %v566_v57 = vmul.f32 %v453_v34, %v453_v34  ;;  %v528_v63 = vadd.f32 %v527_v56, %v453_v34 }
  0xaf   : > { %v572_v28 = vmul.f32 %v1231_v23, %v1231_v23  ;;  %v573_v34 = vmul.f32 %v1241_v29, %v1241_v29 }
  0xb0   : > { %1056 = vst [vmem:[%s1229_s29 + $0x8] sm:$0xff] %v984_v36   ;;  %v597_v3 = vadd.f32 %v596_v62, %v566_v57  ;;  %v579_v62 = vmul.f32 %v1222_v21, %v1222_v21 }
  0xb1   : > { %1060 = vst [vmem:[%s1229_s29 + $0x28] sm:$0xff] %v1004_v38  }
  0xb4   : > { %v1261_v39 = vpop.f32.mrf.mxu2  ;;  %v1267_v43 = vpop.f32.mrf.mxu3 }
  0xb5   : > { %v456_v40 = vpop.f32.mrf.mxu0  ;;  %v1263_v41 = vpop.f32.mrf.mxu1  ;;  %v1024_v42 = vpack.c.bf16 %v1261_v39, %v1251_v33  ;;  %v1044_v44 = vpack.c.bf16 %v1267_v43, %v1255_v37 }
  0xb6   : > { %v567_v0 = vmul.f32 %v456_v40, %v456_v40  ;;  %v529_v4 = vadd.f32 %v528_v63, %v456_v40 }
  0xb7   : > { %1064 = vst [vmem:[%s1229_s29 + $0x48] sm:$0xff] %v1024_v42  }
  0xb8   : > { %1068 = vst [vmem:[%s1229_s29 + $0x68] sm:$0xff] %v1044_v44   ;;  %v598_v6 = vadd.f32 %v597_v3, %v567_v0  ;;  %v580_v0 = vmul.f32 %v1239_v27, %v1239_v27 }
  0xbc   : > { %v1273_v45 = vpop.f32.mrf.mxu2  ;;  %v1277_v49 = vpop.f32.mrf.mxu3 }
  0xbd   : > { %v458_v46 = vpop.f32.mrf.mxu0  ;;  %v1275_v47 = vpop.f32.mrf.mxu1 }
  0xbe   : > { %v989_v48 = vpack.c.bf16 %v458_v46, %v456_v40  ;;  %v1009_v50 = vpack.c.bf16 %v1275_v47, %v1263_v41  ;;  %v568_v5 = vmul.f32 %v458_v46, %v458_v46  ;;  %v530_v7 = vadd.f32 %v529_v4, %v458_v46 }
  0xc0   : > { %1057 = vst [vmem:[%s1229_s29 + $0x10] sm:$0xff] %v989_v48   ;;  %v599_v9 = vadd.f32 %v598_v6, %v568_v5  ;;  %v582_v5 = vmul.f32 %v1261_v39, %v1261_v39 }
  0xc1   : > { %1061 = vst [vmem:[%s1229_s29 + $0x30] sm:$0xff] %v1009_v50   ;;  %v575_v50 = vmul.f32 %v1263_v41, %v1263_v41 }
  0xc4   : > { %v1283_v58 = vpop.f32.mrf.mxu2  ;;  %v1287_v1 = vpop.f32.mrf.mxu3 }
  0xc5   : > { %v461_v59 = vpop.f32.mrf.mxu0  ;;  %v481_v60 = vpop.f32.mrf.mxu1  ;;  %v1029_v61 = vpack.c.bf16 %v1283_v58, %v1273_v45  ;;  %v1049_v2 = vpack.c.bf16 %v1287_v1, %v1277_v49 }
  0xc6   : > { %v569_v8 = vmul.f32 %v461_v59, %v461_v59  ;;  %v531_v10 = vadd.f32 %v530_v7, %v461_v59  ;;  %v577_v56 = vmul.f32 %v481_v60, %v481_v60 }
  0xc7   : > { %1065 = vst [vmem:[%s1229_s29 + $0x50] sm:$0xff] %v1029_v61  }
  0xc8   : > { %1069 = vst [vmem:[%s1229_s29 + $0x70] sm:$0xff] %v1049_v2   ;;  %v600_v14 = vadd.f32 %v599_v9, %v569_v8 }
  0xcc   : > { %v501_v11 = vpop.f32.mrf.mxu2  ;;  %v1293_v18 = vpop.f32.mrf.mxu3 }
  0xcd   : > { %v463_v12 = vpop.f32.mrf.mxu0  ;;  %v483_v13 = vpop.f32.mrf.mxu1 }
  0xce   : > { %v532_v15 = vadd.f32 %v531_v10, %v463_v12  ;;  %v570_v16 = vmul.f32 %v463_v12, %v463_v12  ;;  %v994_v17 = vpack.c.bf16 %v463_v12, %v461_v59  ;;  %v1014_v19 = vpack.c.bf16 %v483_v13, %v481_v60 }
  0xcf   : > { %v578_v61 = vmul.f32 %v483_v13, %v483_v13  ;;  %v584_v10 = vmul.f32 %v1283_v58, %v1283_v58 }
  0xd0   : > { %v533_v24 = vadd.f32 %v532_v15, %v1220_v20  ;;  %v601_v26 = vadd.f32 %v600_v14, %v570_v16  ;;  %1058 = vst [vmem:[%s1229_s29 + $0x18] sm:$0xff] %v994_v17   ;;  %v574_v20 = vmul.f32 %v1253_v35, %v1253_v35  ;;  %v585_v14 = vmul.f32 %v501_v11, %v501_v11 }
  0xd1   : > { %1062 = vst [vmem:[%s1229_s29 + $0x38] sm:$0xff] %v1014_v19  }
  0xd2   : > { %v534_v30 = vadd.f32 %v533_v24, %v1231_v23  ;;  %v602_v32 = vadd.f32 %v601_v26, %v571_v22 }
  0xd4   : > { %v535_v36 = vadd.f32 %v534_v30, %v1241_v29  ;;  %v603_v38 = vadd.f32 %v602_v32, %v572_v28  ;;  %v503_v40 = vpop.f32.mrf.mxu2  ;;  %v523_v48 = vpop.f32.mrf.mxu3  ;;  %v576_v29 = vmul.f32 %v1275_v47, %v1275_v47  ;;  %v590_v30 = vmul.f32 %v1267_v43, %v1267_v43 }
  0xd5   : > { %v1034_v42 = vpack.c.bf16 %v503_v40, %v501_v11  ;;  %v1054_v23 = vpack.c.bf16 %v523_v48, %v1293_v18  ;;  %v586_v17 = vmul.f32 %v503_v40, %v503_v40 }
  0xd6   : > { %v604_v44 = vadd.f32 %v603_v38, %v573_v34  ;;  %v536_v46 = vadd.f32 %v535_v36, %v1253_v35  ;;  %v591_v34 = vmul.f32 %v1277_v49, %v1277_v49 }
  0xd7   : > { %1066 = vst [vmem:[%s1229_s29 + $0x58] sm:$0xff] %v1034_v42  }
  0xd8   : > { %v537_v51 = vadd.f32 %v536_v46, %v1263_v41  ;;  %v605_v52 = vadd.f32 %v604_v44, %v574_v20  ;;  %1070 = vst [vmem:[%s1229_s29 + $0x78] sm:$0xff] %v1054_v23   ;;  %v593_v44 = vmul.f32 %v1293_v18, %v1293_v18  ;;  %v594_v23 = vmul.f32 %v523_v48, %v523_v48 }
  0xda   : > { %v538_v53 = vadd.f32 %v537_v51, %v1275_v47  ;;  %v606_v54 = vadd.f32 %v605_v52, %v575_v50  ;;  %v581_v47 = vmul.f32 %v1251_v33, %v1251_v33 }
  0xdc   : > { %v539_v55 = vadd.f32 %v538_v53, %v481_v60  ;;  %v607_v35 = vadd.f32 %v606_v54, %v576_v29  ;;  %v632_v29 = vlaneseq }
  0xde   : > { %v608_v57 = vadd.f32 %v607_v35, %v577_v56  ;;  %v540_v59 = vadd.f32 %v539_v55, %v483_v13  ;;  %v633_v56 = vshrl.u32 %v632_v29, 7 }
  0xe0   : > { %v541_v63 = vadd.f32 %v540_v59, %v1222_v21  ;;  %v609_v41 = vadd.f32 %v608_v57, %v578_v61  ;;  %v583_v21 = vmul.f32 %v1273_v45, %v1273_v45  ;;  %vm635_vm1 = vcmp.eq.s32.totalorder %v633_v56, 1 }
  0xe1   : > { %vm634_vm2 = vcmp.eq.s32.totalorder %v633_v56, 0 }
  0xe2   : > { %v542_v2 = vadd.f32 %v541_v63, %v1239_v27  ;;  %v610_v3 = vadd.f32 %v609_v41, %v579_v62 }
  0xe4   : > { %v543_v60 = vadd.f32 %v542_v2, %v1251_v33  ;;  %v611_v4 = vadd.f32 %v610_v3, %v580_v0 }
  0xe6   : > { %v612_v6 = vadd.f32 %v611_v4, %v581_v47  ;;  %v544_v7 = vadd.f32 %v543_v60, %v1261_v39  ;;  %v587_v39 = vmul.f32 %v1233_v25, %v1233_v25 }
  0xe8   : > { %v545_v8 = vadd.f32 %v544_v7, %v1273_v45  ;;  %v613_v9 = vadd.f32 %v612_v6, %v582_v5  ;;  %v588_v45 = vmul.f32 %v1245_v31, %v1245_v31 }
  0xea   : > { %v546_v27 = vadd.f32 %v545_v8, %v1283_v58  ;;  %v614_v12 = vadd.f32 %v613_v9, %v583_v21  ;;  %v589_v58 = vmul.f32 %v1255_v37, %v1255_v37 }
  0xec   : > { %v615_v33 = vadd.f32 %v614_v12, %v584_v10  ;;  %v547_v13 = vadd.f32 %v546_v27, %v501_v11 }
  0xee   : > { %v616_v15 = vadd.f32 %v615_v33, %v585_v14  ;;  %v548_v16 = vadd.f32 %v547_v13, %v503_v40  ;;  %v592_v40 = vmul.f32 %v1287_v1, %v1287_v1 }
  0xf0   : > { %v549_v19 = vadd.f32 %v548_v16, %v1233_v25  ;;  %v617_v22 = vadd.f32 %v616_v15, %v586_v17 }
  0xf2   : > { %v550_v24 = vadd.f32 %v549_v19, %v1245_v31  ;;  %v618_v26 = vadd.f32 %v617_v22, %v587_v39 }
  0xf4   : > { %v551_v11 = vadd.f32 %v550_v24, %v1255_v37  ;;  %v619_v28 = vadd.f32 %v618_v26, %v588_v45 }
  0xf6   : > { %v620_v32 = vadd.f32 %v619_v28, %v589_v58  ;;  %v552_v25 = vadd.f32 %v551_v11, %v1267_v43 }
  0xf8   : > { %v553_v36 = vadd.f32 %v552_v25, %v1277_v49  ;;  %v621_v31 = vadd.f32 %v620_v32, %v590_v30 }
  0xfa   : > { %v554_v38 = vadd.f32 %v553_v36, %v1287_v1  ;;  %v622_v37 = vadd.f32 %v621_v31, %v591_v34 }
  0xfc   : > { %v623_v42 = vadd.f32 %v622_v37, %v592_v40  ;;  %v555_v20 = vadd.f32 %v554_v38, %v1293_v18 }
  0xfe   : > { %v624_v43 = vadd.f32 %v623_v42, %v593_v44  ;;  %v556_v46 = vadd.f32 %v555_v20, %v523_v48 }
 0x100   : > { %v557_v50 = vrot.slane %v556_v46, 4  ;;  %v625_v51 = vadd.f32 %v624_v43, %v594_v23 }
 0x102   : > { %v558_v49 = vadd.f32 %v557_v50, %v556_v46  ;;  %v626_v52 = vrot.slane %v625_v51, 4 }
 0x104   : > { %v559_v53 = vrot.slane %v558_v49, 2  ;;  %v627_v54 = vadd.f32 %v626_v52, %v625_v51 }
 0x106   : > { %v560_v1 = vadd.f32 %v559_v53, %v558_v49  ;;  %v628_v55 = vrot.slane %v627_v54, 2 }
 0x108   : > { %v629_v35 = vadd.f32 %v628_v55, %v627_v54  ;;  %v561_v57 = vrot.slane %v560_v1, 1 }
 0x10a   : > { %v630_v59 = vrot.slane %v629_v35, 1  ;;  %v562_v48 = vadd.f32 %v561_v57, %v560_v1 }
 0x10c   : > { %v631_v18 = vadd.f32 %v630_v59, %v629_v35 }
 0x10e   : > { %v636_v61 = vsel %vm635_vm1, %v631_v18, 0.0 }
 0x10f   : > { %v637_v62 = vsel %vm634_vm2, %v562_v48, %v636_v61 }
 0x110   : > { %638 = vst [vmem:[%s250_s6] sm:$0xff] %v637_v62 }
 0x111 PF: > { %s14_s14 = sadd.s32 1, %s1126_s14   ;;  %s1375_s12 = smov %s1122_s13 }
 0x112   : > { %p11_p6 = scmp.ge.s32.totalorder %s14_s14, 4   ;;  %s1376_s13 = smov %s1378_s15 }
 0x114   :  { %13 = sbr.rel (!%p11_p6) target bundleno = 2 (0x2), region = 73 }

// kernel: tile.43
= control target key start
LH: loop header
LB: loop body
LE: loop exit
PB: predicated region body
PF: predicated region fallthrough
CT: control target
= control target key end

     0   :  { %s28_s0 = inlined_call_operand.vmem [shape: f32[8], index: 0, kind: input, shape index: {}]   ;;  %s29_s1 = inlined_call_operand.vmem [shape: f32[16,8], index: 1, kind: output, shape index: {}]  }
   0x1   :  { %v4_v0 = vld [vmem:[%s28_s0] ss:$0 sm:$0xff] }
   0x2   :  { %5 = vst [vmem:[%s29_s1] sm:$0xff] %v4_v0 }
   0x3   :  { %8 = vst [vmem:[%s29_s1 + $0x8] sm:$0xff] %v4_v0 }

// kernel: tile.48
= control target key start
LH: loop header
LB: loop body
LE: loop exit
PB: predicated region body
PF: predicated region fallthrough
CT: control target
= control target key end

     0   :  { %s131_s10 = smov 120   ;;  %s132_s11 = smov 104   ;;  %vm3_vm0 = vcmask 64512   ;;  %vm9_vm1 = vcmask 1048512   ;;  %vm15_vm2 = vcmask 982912   ;;  %vm21_vm3 = vcmask 917312   ;;  %s207_s0 = inlined_call_operand.vmem [shape: f32[16,8], index: 0, kind: input, shape index: {}]   ;;  %s208_s1 = inlined_call_operand.vmem [shape: f32[1,128], index: 1, kind: output, shape index: {}]  }
   0x1   :  { %v101_v0 = vld [vmem:[%s207_s0 + $0xf] sm:$0x1]   ;;  %v103_v1 = vld [vmem:[%s207_s0 + $0xd] sm:$0x1]   ;;  %v105_v2 = vld [vmem:[%s207_s0 + $0xb] sm:$0x1]  }
   0x2   :  { %7 = vrot.lane.b32.xlu0 %v101_v0, %s131_s10  ;;  %19 = vrot.lane.b32.xlu1 %v103_v1, %s132_s11  ;;  %s133_s14 = smov 88   ;;  %v102_v3 = vld [vmem:[%s207_s0 + $0xe] sm:$0x1]   ;;  %v104_v4 = vld [vmem:[%s207_s0 + $0xc] sm:$0x1]   ;;  %s134_s19 = smov 112  }
   0x3   :  { %31 = vrot.lane.b32.xlu2 %v105_v2, %s133_s14  ;;  %s135_s20 = smov 96   ;;  %v106_v5 = vld [vmem:[%s207_s0 + $0xa] sm:$0x1]   ;;  %s136_s23 = smov 80   ;;  %v107_v6 = vld [vmem:[%s207_s0 + $0x9] sm:$0x1]  }
   0x4   :  { %v108_v7 = vld [vmem:[%s207_s0 + $0x8] sm:$0x1]   ;;  %s137_s28 = smov 72   ;;  %s138_s29 = smov 64   ;;  %v109_v8 = vld [vmem:[%s207_s0 + $0x7] sm:$0x1]  }
   0x5   :  { %s139_s3 = smov 56   ;;  %v110_v9 = vld [vmem:[%s207_s0 + $0x6] sm:$0x1]   ;;  %v111_v10 = vld [vmem:[%s207_s0 + $0x5] sm:$0x1]   ;;  %s140_s8 = smov 48  }
   0x6   :  { %s141_s9 = smov 40   ;;  %v112_v11 = vld [vmem:[%s207_s0 + $0x4] sm:$0x1]   ;;  %s142_s12 = smov 32   ;;  %v113_v12 = vld [vmem:[%s207_s0 + $0x3] sm:$0x1]  }
   0x7   :  { %v114_v13 = vld [vmem:[%s207_s0 + $0x2] sm:$0x1]   ;;  %s143_s17 = smov 24   ;;  %s144_s18 = smov 16   ;;  %v115_v14 = vld [vmem:[%s207_s0 + $0x1] sm:$0x1]  }
   0x8   :  { %s145_s21 = smov 8   ;;  %v2_v15 = vld [vmem:[%s207_s0] sm:$0x1]   ;;  %vm27_vm4 = vcmask 851712   ;;  %vm33_vm5 = vcmask 786112   ;;  %vm39_vm6 = vcmask 720512  }
   0x9   :  { %4 = vst.msk [vmem:[#allocation0] sm:$0x1] %vm3_vm0, %v2_v15   ;;  %vm45_vm7 = vcmask 654912   ;;  %vm51_vm8 = vcmask 589312   ;;  %vm57_vm9 = vcmask 523712   ;;  %vm63_vm10 = vcmask 458112  }
   0xa   :  { %13 = vrot.lane.b32.xlu0 %v102_v3, %s134_s19  ;;  %25 = vrot.lane.b32.xlu1 %v104_v4, %s135_s20  ;;  %vm69_vm11 = vcmask 392512   ;;  %vm75_vm12 = vcmask 326912   ;;  %vm81_vm13 = vcmask 261312   ;;  %vm87_vm14 = vcmask 195712  }
   0xb   :  { %37 = vrot.lane.b32.xlu2 %v106_v5, %s136_s23  ;;  %vm93_vm15 = vcmask 130112  }
  0x12   :  { %43 = vrot.lane.b32.xlu0 %v107_v6, %s137_s28  ;;  %49 = vrot.lane.b32.xlu1 %v108_v7, %s138_s29 }
  0x13   :  { %55 = vrot.lane.b32.xlu2 %v109_v8, %s139_s3 }
  0x1a   :  { %61 = vrot.lane.b32.xlu0 %v110_v9, %s140_s8  ;;  %67 = vrot.lane.b32.xlu1 %v111_v10, %s141_s9 }
  0x1b   :  { %73 = vrot.lane.b32.xlu2 %v112_v11, %s142_s12 }
  0x22   :  { %79 = vrot.lane.b32.xlu0 %v113_v12, %s143_s17  ;;  %85 = vrot.lane.b32.xlu1 %v114_v13, %s144_s18 }
  0x23   :  { %91 = vrot.lane.b32.xlu2 %v115_v14, %s145_s21 }
  0x5d   :  { %v32_v16 = vpop.permute.xlu2 %31  }
  0x65   :  { %v38_v17 = vpop.permute.xlu2 %37  }
  0x6d   :  { %v56_v18 = vpop.permute.xlu2 %55  }
  0x74   :  { %v8_v19 = vpop.permute.xlu0 %7   ;;  %v20_v20 = vpop.permute.xlu1 %19  }
  0x75   :  { %10 = vst.msk [vmem:[#allocation0] sm:$0x1] %vm9_vm1, %v8_v19   ;;  %v74_v21 = vpop.permute.xlu2 %73  }
  0x7c   :  { %v14_v22 = vpop.permute.xlu0 %13   ;;  %v26_v23 = vpop.permute.xlu1 %25  }
  0x7d   :  { %16 = vst.msk [vmem:[#allocation0] sm:$0x1] %vm15_vm2, %v14_v22   ;;  %v92_v24 = vpop.permute.xlu2 %91  }
  0x7e   :  { %22 = vst.msk [vmem:[#allocation0] sm:$0x1] %vm21_vm3, %v20_v20  }
  0x7f   :  { %28 = vst.msk [vmem:[#allocation0] sm:$0x1] %vm27_vm4, %v26_v23  }
  0x80   :  { %34 = vst.msk [vmem:[#allocation0] sm:$0x1] %vm33_vm5, %v32_v16  }
  0x81   :  { %40 = vst.msk [vmem:[#allocation0] sm:$0x1] %vm39_vm6, %v38_v17  }
  0x84   :  { %v44_v25 = vpop.permute.xlu0 %43   ;;  %v50_v26 = vpop.permute.xlu1 %49  }
  0x85   :  { %46 = vst.msk [vmem:[#allocation0] sm:$0x1] %vm45_vm7, %v44_v25  }
  0x86   :  { %52 = vst.msk [vmem:[#allocation0] sm:$0x1] %vm51_vm8, %v50_v26  }
  0x87   :  { %58 = vst.msk [vmem:[#allocation0] sm:$0x1] %vm57_vm9, %v56_v18  }
  0x8c   :  { %v62_v27 = vpop.permute.xlu0 %61   ;;  %v68_v28 = vpop.permute.xlu1 %67  }
  0x8d   :  { %64 = vst.msk [vmem:[#allocation0] sm:$0x1] %vm63_vm10, %v62_v27  }
  0x8e   :  { %70 = vst.msk [vmem:[#allocation0] sm:$0x1] %vm69_vm11, %v68_v28  }
  0x8f   :  { %76 = vst.msk [vmem:[#allocation0] sm:$0x1] %vm75_vm12, %v74_v21  }
  0x94   :  { %v80_v29 = vpop.permute.xlu0 %79   ;;  %v86_v30 = vpop.permute.xlu1 %85  }
  0x95   :  { %82 = vst.msk [vmem:[#allocation0] sm:$0x1] %vm81_vm13, %v80_v29  }
  0x96   :  { %88 = vst.msk [vmem:[#allocation0] sm:$0x1] %vm87_vm14, %v86_v30  }
  0x97   :  { %94 = vst.msk [vmem:[#allocation0] sm:$0x1] %vm93_vm15, %v92_v24  }
  0x9e   :  { %v97_v31 = vld [vmem:[#allocation0] sm:$0x1] }
  0x9f   :  { %100 = vst [vmem:[%s208_s1] sm:$0x1] %v97_v31 }

// kernel: vae_forward.9
= control target key start
LH: loop header
LB: loop body
LE: loop exit
PB: predicated region body
PF: predicated region fallthrough
CT: control target
= control target key end

     0   :  { %s638_s3 = inlined_call_operand.vmem [shape: bf16[1,128,128], index: 3, kind: input, shape index: {}]   ;;  %s639_s1 = inlined_call_operand.vmem [shape: f32[1,128], index: 1, kind: input, shape index: {}]   ;;  %s640_s2 = inlined_call_operand.vmem [shape: f32[1,128], index: 2, kind: input, shape index: {}]   ;;  %s641_s0 = inlined_call_operand.vmem [shape: bf16[1,128,128], index: 0, kind: input, shape index: {}]   ;;  %s642_s4 = inlined_call_operand.vmem [shape: bf16[1,128,128], index: 4, kind: output, shape index: {0}]   ;;  %s643_s5 = inlined_call_operand.vmem [shape: f32[1,1,8,128], index: 5, kind: output, shape index: {1}]  }
   0x1   :  { %v372_v0 = vld [vmem:[%s638_s3 + $0x38] sm:$0xff]  ;;  %v371_v1 = vld [vmem:[%s638_s3 + $0x30] sm:$0xff]  ;;  %v370_v2 = vld [vmem:[%s638_s3 + $0x28] sm:$0xff] }
   0x2   :  { %179 = vmatpush.bf16.msra.mxu0 %v372_v0  ;;  %459 = vmatpush.bf16.msra.mxu1 %v372_v0  ;;  %v374_v3 = vld [vmem:[%s641_s0] sm:$0xff]   ;;  %v446_v5 = vld [vmem:[%s641_s0 + $0x10] sm:$0xff]   ;;  %v368_v15 = vld [vmem:[%s638_s3 + $0x18] sm:$0xff] }
   0x3   :  { %460 = vmatpush.bf16.msra.mxu2 %v372_v0  ;;  %461 = vmatpush.bf16.msra.mxu3 %v372_v0  ;;  %v369_v4 = vld [vmem:[%s638_s3 + $0x20] sm:$0xff]  ;;  %v450_v7 = vld [vmem:[%s641_s0 + $0x30] sm:$0xff]   ;;  %v375_v8 = vunpack.c.l.bf16 %v374_v3  ;;  %v376_v9 = vunpack.c.h.bf16 %v374_v3  ;;  %v383_v11 = vunpack.c.l.bf16 %v446_v5  ;;  %v384_v12 = vunpack.c.h.bf16 %v446_v5  ;;  %v366_v34 = vld [vmem:[%s638_s3 + $0x8] sm:$0xff] }
   0x4   :  { %v448_v6 = vld [vmem:[%s641_s0 + $0x20] sm:$0xff]   ;;  %v399_v16 = vunpack.c.l.bf16 %v450_v7  ;;  %v400_v17 = vunpack.c.h.bf16 %v450_v7  ;;  %v367_v25 = vld [vmem:[%s638_s3 + $0x10] sm:$0xff]  ;;  %v445_v43 = vld [vmem:[%s641_s0 + $0x8] sm:$0xff]  }
   0x5   :  { %v542_v10 = vld [vmem:[%s639_s1] ss:$0 sm:$0xff]  ;;  %v391_v13 = vunpack.c.l.bf16 %v448_v6  ;;  %v392_v14 = vunpack.c.h.bf16 %v448_v6  ;;  %v447_v44 = vld [vmem:[%s641_s0 + $0x18] sm:$0xff]   ;;  %v449_v48 = vld [vmem:[%s641_s0 + $0x28] sm:$0xff]   ;;  %v379_v51 = vunpack.c.l.bf16 %v445_v43  ;;  %v380_v52 = vunpack.c.h.bf16 %v445_v43 }
   0x6   :  { %180 = vmatpush.bf16.msra.mxu0 %v371_v1  ;;  %462 = vmatpush.bf16.msra.mxu1 %v371_v1  ;;  %v55_v18 = vmul.f32 %v542_v10, %v375_v8  ;;  %v56_v19 = vmul.f32 %v542_v10, %v376_v9  ;;  %v552_v20 = vld [vmem:[%s640_s2] ss:$0 sm:$0xff]  ;;  %v59_v21 = vmul.f32 %v542_v10, %v383_v11  ;;  %v451_v49 = vld [vmem:[%s641_s0 + $0x38] sm:$0xff]   ;;  %v387_v53 = vunpack.c.l.bf16 %v447_v44 }
   0x7   :  { %463 = vmatpush.bf16.msra.mxu2 %v371_v1  ;;  %464 = vmatpush.bf16.msra.mxu3 %v371_v1  ;;  %v60_v22 = vmul.f32 %v542_v10, %v384_v12  ;;  %v63_v23 = vmul.f32 %v542_v10, %v391_v13  ;;  %v64_v24 = vmul.f32 %v542_v10, %v392_v14  ;;  %v365_v45 = vld [vmem:[%s638_s3] sm:$0xff]  ;;  %v388_v56 = vunpack.c.h.bf16 %v447_v44 }
   0x8   :  { %v67_v26 = vmul.f32 %v542_v10, %v399_v16  ;;  %v68_v27 = vmul.f32 %v542_v10, %v400_v17  ;;  %v75_v28 = vadd.f32 %v552_v20, %v55_v18  ;;  %v76_v29 = vadd.f32 %v552_v20, %v56_v19 }
   0x9   :  { %v79_v30 = vadd.f32 %v552_v20, %v59_v21  ;;  %v80_v31 = vadd.f32 %v552_v20, %v60_v22  ;;  %v83_v32 = vadd.f32 %v552_v20, %v63_v23  ;;  %v84_v33 = vadd.f32 %v552_v20, %v64_v24 }
   0xa   :  { %181 = vmatpush.bf16.msra.mxu0 %v370_v2  ;;  %465 = vmatpush.bf16.msra.mxu1 %v370_v2  ;;  %v87_v35 = vadd.f32 %v552_v20, %v67_v26  ;;  %v88_v36 = vadd.f32 %v552_v20, %v68_v27  ;;  %v91_v37 = vmax.f32 %v75_v28, 0.0  ;;  %v92_v38 = vmax.f32 %v76_v29, 0.0 }
   0xb   :  { %466 = vmatpush.bf16.msra.mxu2 %v370_v2  ;;  %467 = vmatpush.bf16.msra.mxu3 %v370_v2  ;;  %v95_v39 = vmax.f32 %v79_v30, 0.0  ;;  %v96_v40 = vmax.f32 %v80_v31, 0.0  ;;  %v99_v41 = vmax.f32 %v83_v32, 0.0  ;;  %v100_v42 = vmax.f32 %v84_v33, 0.0 }
   0xc   :  { %v103_v46 = vmax.f32 %v87_v35, 0.0  ;;  %v104_v47 = vmax.f32 %v88_v36, 0.0  ;;  %v107_v50 = vpack.c.bf16 %v92_v38, %v91_v37  ;;  %v395_v57 = vunpack.c.l.bf16 %v449_v48 }
   0xd   :  { %v109_v54 = vpack.c.bf16 %v96_v40, %v95_v39  ;;  %v111_v55 = vpack.c.bf16 %v100_v42, %v99_v41  ;;  %v396_v59 = vunpack.c.h.bf16 %v449_v48  ;;  %v403_v60 = vunpack.c.l.bf16 %v451_v49 }
   0xe   :  { %182 = vmatpush.bf16.msra.mxu0 %v369_v4  ;;  %468 = vmatpush.bf16.msra.mxu1 %v369_v4  ;;  %v113_v58 = vpack.c.bf16 %v104_v47, %v103_v46  ;;  %v404_v61 = vunpack.c.h.bf16 %v451_v49  ;;  %v57_v62 = vmul.f32 %v542_v10, %v379_v51  ;;  %v58_v63 = vmul.f32 %v542_v10, %v380_v52 }
   0xf   :  { %469 = vmatpush.bf16.msra.mxu2 %v369_v4  ;;  %470 = vmatpush.bf16.msra.mxu3 %v369_v4  ;;  %v61_v0 = vmul.f32 %v542_v10, %v387_v53  ;;  %v62_v1 = vmul.f32 %v542_v10, %v388_v56  ;;  %v65_v2 = vmul.f32 %v542_v10, %v395_v57 }
  0x10   :  { %v66_v3 = vmul.f32 %v542_v10, %v396_v59  ;;  %v69_v4 = vmul.f32 %v542_v10, %v403_v60  ;;  %v70_v5 = vmul.f32 %v542_v10, %v404_v61  ;;  %v77_v6 = vadd.f32 %v552_v20, %v57_v62 }
  0x11   :  { %v78_v7 = vadd.f32 %v552_v20, %v58_v63  ;;  %v81_v8 = vadd.f32 %v552_v20, %v61_v0  ;;  %v82_v9 = vadd.f32 %v552_v20, %v62_v1  ;;  %v85_v11 = vadd.f32 %v552_v20, %v65_v2 }
  0x12   :  { %183 = vmatpush.bf16.msra.mxu0 %v368_v15  ;;  %471 = vmatpush.bf16.msra.mxu1 %v368_v15  ;;  %v86_v12 = vadd.f32 %v552_v20, %v66_v3  ;;  %v89_v13 = vadd.f32 %v552_v20, %v69_v4  ;;  %v90_v14 = vadd.f32 %v552_v20, %v70_v5 }
  0x13   :  { %472 = vmatpush.bf16.msra.mxu2 %v368_v15  ;;  %473 = vmatpush.bf16.msra.mxu3 %v368_v15  ;;  %v93_v15 = vmax.f32 %v77_v6, 0.0  ;;  %v94_v16 = vmax.f32 %v78_v7, 0.0  ;;  %v97_v17 = vmax.f32 %v81_v8, 0.0  ;;  %v98_v10 = vmax.f32 %v82_v9, 0.0 }
  0x14   :  { %v101_v18 = vmax.f32 %v85_v11, 0.0  ;;  %v102_v19 = vmax.f32 %v86_v12, 0.0  ;;  %v105_v21 = vmax.f32 %v89_v13, 0.0  ;;  %v106_v22 = vmax.f32 %v90_v14, 0.0 }
  0x15   :  { %v108_v23 = vpack.c.bf16 %v94_v16, %v93_v15  ;;  %v110_v24 = vpack.c.bf16 %v98_v10, %v97_v17 }
  0x16   :  { %184 = vmatpush.bf16.msra.mxu0 %v367_v25  ;;  %474 = vmatpush.bf16.msra.mxu1 %v367_v25  ;;  %v114_v26 = vpack.c.bf16 %v106_v22, %v105_v21 }
  0x17   :  { %475 = vmatpush.bf16.msra.mxu2 %v367_v25  ;;  %476 = vmatpush.bf16.msra.mxu3 %v367_v25  ;;  %v112_v25 = vpack.c.bf16 %v102_v19, %v101_v18 }
  0x1a   :  { %185 = vmatpush.bf16.msra.mxu0 %v366_v34  ;;  %477 = vmatpush.bf16.msra.mxu1 %v366_v34 }
  0x1b   :  { %478 = vmatpush.bf16.msra.mxu2 %v366_v34  ;;  %479 = vmatpush.bf16.msra.mxu3 %v366_v34 }
  0x1e   :  { %186 = vmatpush.bf16.msra.mxu0 %v365_v45  ;;  %480 = vmatpush.bf16.msra.mxu1 %v365_v45 }
  0x1f   :  { %481 = vmatpush.bf16.msra.mxu2 %v365_v45  ;;  %482 = vmatpush.bf16.msra.mxu3 %v365_v45 }
  0x21   :  { %187 = vmatmul.bf16.vlgmr.msra.gmra.mxu0 %v107_v50  ;;  %197 = vmatmul.bf16.vlgmr.msra.gmra.mxu1 %v109_v54 }
  0x22   :  { %207 = vmatmul.bf16.vlgmr.msra.gmra.mxu2 %v111_v55  ;;  %217 = vmatmul.bf16.vlgmr.msra.gmra.mxu3 %v113_v58 }
  0x31   :  { %192 = vmatmul.bf16.gmra.mxu0 %v108_v23  ;;  %202 = vmatmul.bf16.gmra.mxu1 %v110_v24 }
  0x32   :  { %212 = vmatmul.bf16.gmra.mxu2 %v112_v25  ;;  %222 = vmatmul.bf16.gmra.mxu3 %v114_v26 }
  0x9e   :  { %v188_v27 = vpop.f32.mrf.mxu0  ;;  %v198_v28 = vpop.f32.mrf.mxu1 }
  0x9f   :  { %v249_v41 = vmul.f32 %v188_v27, %v188_v27  ;;  %v253_v55 = vmul.f32 %v198_v28, %v198_v28 }
  0xa5   :  { %v208_v29 = vpop.f32.mrf.mxu2  ;;  %v605_v20 = vpop.f32.mrf.mxu3 }
  0xa6   :  { %v190_v30 = vpop.f32.mrf.mxu0  ;;  %v200_v31 = vpop.f32.mrf.mxu1  ;;  %v257_v7 = vmul.f32 %v208_v29, %v208_v29  ;;  %v261_v19 = vmul.f32 %v605_v20, %v605_v20 }
  0xa7   :  { %v408_v32 = vpack.c.bf16 %v190_v30, %v188_v27  ;;  %v418_v33 = vpack.c.bf16 %v200_v31, %v198_v28  ;;  %v250_v40 = vmul.f32 %v190_v30, %v190_v30  ;;  %v228_v42 = vadd.f32 %v190_v30, %v188_v27 }
  0xa8   :  { %v254_v58 = vmul.f32 %v200_v31, %v200_v31 }
  0xa9   :  { %409 = vst [vmem:[%s642_s4] sm:$0xff] %v408_v32   ;;  %v265_v44 = vadd.f32 %v250_v40, %v249_v41 }
  0xaa   :  { %453 = vst [vmem:[%s642_s4 + $0x10] sm:$0xff] %v418_v33  }
  0xad   :  { %v210_v34 = vpop.f32.mrf.mxu2  ;;  %v220_v35 = vpop.f32.mrf.mxu3 }
  0xae   :  { %v193_v36 = vpop.f32.mrf.mxu0  ;;  %v203_v37 = vpop.f32.mrf.mxu1  ;;  %v428_v38 = vpack.c.bf16 %v210_v34, %v208_v29  ;;  %v438_v39 = vpack.c.bf16 %v220_v35, %v605_v20  ;;  %v258_v11 = vmul.f32 %v210_v34, %v210_v34  ;;  %v262_v23 = vmul.f32 %v220_v35, %v220_v35 }
  0xaf   :  { %v251_v43 = vmul.f32 %v193_v36, %v193_v36  ;;  %v229_v45 = vadd.f32 %v228_v42, %v193_v36  ;;  %v255_v61 = vmul.f32 %v203_v37, %v203_v37 }
  0xb0   :  { %455 = vst [vmem:[%s642_s4 + $0x20] sm:$0xff] %v428_v38  }
  0xb1   :  { %457 = vst [vmem:[%s642_s4 + $0x30] sm:$0xff] %v438_v39   ;;  %v266_v50 = vadd.f32 %v265_v44, %v251_v43 }
  0xb5   :  { %v213_v46 = vpop.f32.mrf.mxu2  ;;  %v223_v47 = vpop.f32.mrf.mxu3 }
  0xb6   :  { %v195_v48 = vpop.f32.mrf.mxu0  ;;  %v205_v49 = vpop.f32.mrf.mxu1  ;;  %v259_v15 = vmul.f32 %v213_v46, %v213_v46  ;;  %v263_v27 = vmul.f32 %v223_v47, %v223_v47 }
  0xb7   :  { %v230_v51 = vadd.f32 %v229_v45, %v195_v48  ;;  %v252_v52 = vmul.f32 %v195_v48, %v195_v48  ;;  %v413_v53 = vpack.c.bf16 %v195_v48, %v193_v36  ;;  %v423_v54 = vpack.c.bf16 %v205_v49, %v203_v37 }
  0xb8   :  { %v256_v5 = vmul.f32 %v205_v49, %v205_v49 }
  0xb9   :  { %v231_v56 = vadd.f32 %v230_v51, %v198_v28  ;;  %v267_v57 = vadd.f32 %v266_v50, %v252_v52  ;;  %452 = vst [vmem:[%s642_s4 + $0x8] sm:$0xff] %v413_v53  }
  0xba   :  { %454 = vst [vmem:[%s642_s4 + $0x18] sm:$0xff] %v423_v54  }
  0xbb   :  { %v268_v59 = vadd.f32 %v267_v57, %v253_v55  ;;  %v232_v60 = vadd.f32 %v231_v56, %v200_v31 }
  0xbd   :  { %v233_v62 = vadd.f32 %v232_v60, %v203_v37  ;;  %v269_v63 = vadd.f32 %v268_v59, %v254_v58  ;;  %v215_v0 = vpop.f32.mrf.mxu2  ;;  %v225_v1 = vpop.f32.mrf.mxu3  ;;  %v286_v37 = vlaneseq }
  0xbe   :  { %v433_v2 = vpack.c.bf16 %v215_v0, %v213_v46  ;;  %v443_v3 = vpack.c.bf16 %v225_v1, %v223_v47  ;;  %v260_v18 = vmul.f32 %v215_v0, %v215_v0  ;;  %v264_v31 = vmul.f32 %v225_v1, %v225_v1 }
  0xbf   :  { %v234_v4 = vadd.f32 %v233_v62, %v205_v49  ;;  %v270_v6 = vadd.f32 %v269_v63, %v255_v61 }
  0xc0   :  { %456 = vst [vmem:[%s642_s4 + $0x28] sm:$0xff] %v433_v2  }
  0xc1   :  { %v235_v8 = vadd.f32 %v234_v4, %v208_v29  ;;  %v271_v9 = vadd.f32 %v270_v6, %v256_v5  ;;  %458 = vst [vmem:[%s642_s4 + $0x38] sm:$0xff] %v443_v3  }
  0xc3   :  { %v272_v12 = vadd.f32 %v271_v9, %v257_v7  ;;  %v236_v13 = vadd.f32 %v235_v8, %v210_v34 }
  0xc5   :  { %v237_v14 = vadd.f32 %v236_v13, %v213_v46  ;;  %v273_v16 = vadd.f32 %v272_v12, %v258_v11 }
  0xc7   :  { %v274_v17 = vadd.f32 %v273_v16, %v259_v15  ;;  %v238_v10 = vadd.f32 %v237_v14, %v215_v0 }
  0xc9   :  { %v239_v21 = vadd.f32 %v238_v10, %v605_v20  ;;  %v275_v22 = vadd.f32 %v274_v17, %v260_v18  ;;  %v287_v20 = vshrl.u32 %v286_v37, 7 }
  0xcb   :  { %v276_v24 = vadd.f32 %v275_v22, %v261_v19  ;;  %v240_v25 = vadd.f32 %v239_v21, %v220_v35  ;;  %vm289_vm0 = vcmp.eq.s32.totalorder %v287_v20, 1  ;;  %vm288_vm1 = vcmp.eq.s32.totalorder %v287_v20, 0 }
  0xcd   :  { %v241_v26 = vadd.f32 %v240_v25, %v223_v47  ;;  %v277_v28 = vadd.f32 %v276_v24, %v262_v23 }
  0xcf   :  { %v278_v29 = vadd.f32 %v277_v28, %v263_v27  ;;  %v242_v30 = vadd.f32 %v241_v26, %v225_v1 }
  0xd1   :  { %v243_v32 = vrot.slane %v242_v30, 4  ;;  %v279_v33 = vadd.f32 %v278_v29, %v264_v31 }
  0xd3   :  { %v244_v34 = vadd.f32 %v243_v32, %v242_v30  ;;  %v280_v36 = vrot.slane %v279_v33, 4 }
  0xd5   :  { %v245_v38 = vrot.slane %v244_v34, 2  ;;  %v281_v39 = vadd.f32 %v280_v36, %v279_v33 }
  0xd7   :  { %v246_v40 = vadd.f32 %v245_v38, %v244_v34  ;;  %v282_v41 = vrot.slane %v281_v39, 2 }
  0xd9   :  { %v283_v42 = vadd.f32 %v282_v41, %v281_v39  ;;  %v247_v43 = vrot.slane %v246_v40, 1 }
  0xdb   :  { %v284_v44 = vrot.slane %v283_v42, 1  ;;  %v248_v45 = vadd.f32 %v247_v43, %v246_v40 }
  0xdd   :  { %v285_v35 = vadd.f32 %v284_v44, %v283_v42 }
  0xdf   :  { %v290_v46 = vsel %vm289_vm0, %v285_v35, 0.0 }
  0xe0   :  { %v291_v47 = vsel %vm288_vm1, %v248_v45, %v290_v46 }
  0xe1   :  { %292 = vst [vmem:[%s643_s5] sm:$0xff] %v291_v47 }

// kernel: tile.53
= control target key start
LH: loop header
LB: loop body
LE: loop exit
PB: predicated region body
PF: predicated region fallthrough
CT: control target
= control target key end

     0   :  { %s28_s0 = inlined_call_operand.vmem [shape: f32[16], index: 0, kind: input, shape index: {}]   ;;  %s29_s1 = inlined_call_operand.vmem [shape: f32[16,16], index: 1, kind: output, shape index: {}]  }
   0x1   :  { %v4_v0 = vld [vmem:[%s28_s0] ss:$0 sm:$0xff] }
   0x2   :  { %5 = vst [vmem:[%s29_s1] sm:$0xff] %v4_v0 }
   0x3   :  { %8 = vst [vmem:[%s29_s1 + $0x8] sm:$0xff] %v4_v0 }

// kernel: tile.58
= control target key start
LH: loop header
LB: loop body
LE: loop exit
PB: predicated region body
PF: predicated region fallthrough
CT: control target
= control target key end

     0   :  { %s7_s6 = smov 3  ;;  %s21_s9 = smov 3  ;;  %vm4_vm0 = vcmask 130048   ;;  %vm11_vm1 = vcmask 1048448   ;;  %vm18_vm2 = vcmask 917248   ;;  %vm25_vm3 = vcmask 786048   ;;  %s129_s0 = inlined_call_operand.vmem [shape: f32[16,16], index: 0, kind: input, shape index: {}]   ;;  %s130_s1 = inlined_call_operand.vmem [shape: f32[1,256], index: 1, kind: output, shape index: {}]  }
   0x1   :  { %v67_v0 = vld [vmem:[%s129_s0 + $0x7] ss:$8 sm:%s7_s6]   ;;  %s82_s10 = smov 112   ;;  %v69_v1 = vld [vmem:[%s129_s0 + $0x5] ss:$8 sm:%s21_s9]   ;;  %s83_s13 = smov 80  }
   0x2   :  { %9 = vrot.lane.b32.xlu0 %v67_v0, %s82_s10  ;;  %23 = vrot.lane.b32.xlu1 %v69_v1, %s83_s13  ;;  %s14_s14 = smov 3  ;;  %s28_s15 = smov 3  ;;  %vm32_vm4 = vcmask 654848   ;;  %vm39_vm5 = vcmask 523648   ;;  %vm46_vm6 = vcmask 392448   ;;  %vm53_vm7 = vcmask 261248  }
   0x3   :  { %s35_s16 = smov 3  ;;  %v68_v3 = vld [vmem:[%s129_s0 + $0x6] ss:$8 sm:%s14_s14]   ;;  %s84_s21 = smov 48   ;;  %v70_v4 = vld [vmem:[%s129_s0 + $0x4] ss:$8 sm:%s28_s15]  }
   0x4   :  { %v71_v2 = vld [vmem:[%s129_s0 + $0x3] ss:$8 sm:%s35_s16]   ;;  %s42_s24 = smov 3  ;;  %s85_s25 = smov 96  }
   0x5   :  { %37 = vrot.lane.b32.xlu2 %v71_v2, %s84_s21  ;;  %s86_s26 = smov 64   ;;  %s49_s27 = smov 3  ;;  %v72_v5 = vld [vmem:[%s129_s0 + $0x2] ss:$8 sm:%s42_s24]  }
   0x6   :  { %v73_v6 = vld [vmem:[%s129_s0 + $0x1] ss:$8 sm:%s49_s27]   ;;  %s87_s3 = smov 32   ;;  %s88_s4 = smov 16  }
   0x7   :  { %s2_s5 = smov 3 }
   0x8   :  { %v3_v7 = vld [vmem:[%s129_s0] ss:$8 sm:%s2_s5]  }
   0x9   :  { %5 = vst.msk [vmem:[#allocation0] ss:$8 sm:$0x3] %vm4_vm0, %v3_v7  }
   0xa   :  { %16 = vrot.lane.b32.xlu0 %v68_v3, %s85_s25  ;;  %30 = vrot.lane.b32.xlu1 %v70_v4, %s86_s26 }
   0xd   :  { %44 = vrot.lane.b32.xlu2 %v72_v5, %s87_s3 }
  0x12   :  { %51 = vrot.lane.b32.xlu0 %v73_v6, %s88_s4 }
  0x5f   :  { %v38_v8 = vpop.permute.xlu2 %37  }
  0x67   :  { %v45_v9 = vpop.permute.xlu2 %44  }
  0x74   :  { %v10_v10 = vpop.permute.xlu0 %9   ;;  %v24_v11 = vpop.permute.xlu1 %23  }
  0x75   :  { %12 = vst.msk [vmem:[#allocation0] ss:$8 sm:$0x3] %vm11_vm1, %v10_v10  }
  0x7c   :  { %v17_v12 = vpop.permute.xlu0 %16   ;;  %v31_v13 = vpop.permute.xlu1 %30  }
  0x7d   :  { %19 = vst.msk [vmem:[#allocation0] ss:$8 sm:$0x3] %vm18_vm2, %v17_v12  }
  0x7e   :  { %26 = vst.msk [vmem:[#allocation0] ss:$8 sm:$0x3] %vm25_vm3, %v24_v11  }
  0x7f   :  { %33 = vst.msk [vmem:[#allocation0] ss:$8 sm:$0x3] %vm32_vm4, %v31_v13  }
  0x80   :  { %40 = vst.msk [vmem:[#allocation0] ss:$8 sm:$0x3] %vm39_vm5, %v38_v8  }
  0x81   :  { %47 = vst.msk [vmem:[#allocation0] ss:$8 sm:$0x3] %vm46_vm6, %v45_v9  }
  0x84   :  { %v52_v14 = vpop.permute.xlu0 %51  }
  0x85   :  { %54 = vst.msk [vmem:[#allocation0] ss:$8 sm:$0x3] %vm53_vm7, %v52_v14  }
  0x8c   :  { %v57_v15 = vld [vmem:[#allocation0] sm:$0x1]  ;;  %v62_v16 = vld [vmem:[#allocation0 + $0x8] sm:$0x1] }
  0x8d   :  { %60 = vst [vmem:[%s130_s1] sm:$0x1] %v57_v15 }
  0x8e   :  { %74 = vst [vmem:[%s130_s1 + $0x1] sm:$0x1] %v62_v16 }

// kernel: vae_forward.10
= control target key start
LH: loop header
LB: loop body
LE: loop exit
PB: predicated region body
PF: predicated region fallthrough
CT: control target
= control target key end

     0   :  { %s494_s3 = inlined_call_operand.vmem [shape: bf16[1,256,128], index: 3, kind: input, shape index: {}]   ;;  %s495_s0 = inlined_call_operand.vmem [shape: bf16[1,32,256], index: 0, kind: input, shape index: {}]   ;;  %s496_s1 = inlined_call_operand.vmem [shape: f32[1,256], index: 1, kind: input, shape index: {}]   ;;  %s497_s2 = inlined_call_operand.vmem [shape: f32[1,256], index: 2, kind: input, shape index: {}]   ;;  %s498_s4 = inlined_call_operand.vmem [shape: bf16[1,32,128], index: 4, kind: output, shape index: {0}]   ;;  %s499_s5 = inlined_call_operand.vmem [shape: f32[1,1,8,128], index: 5, kind: output, shape index: {1}]  }
   0x1   :  { %v353_v0 = vld [vmem:[%s494_s3 + $0x38] sm:$0xff]  ;;  %v352_v2 = vld [vmem:[%s494_s3 + $0x30] sm:$0xff]  ;;  %v351_v4 = vld [vmem:[%s494_s3 + $0x28] sm:$0xff] }
   0x2   :  { %v361_v1 = vld [vmem:[%s494_s3 + $0x78] sm:$0xff]  ;;  %199 = vmatpush.bf16.msra.mxu0 %v353_v0  ;;  %373 = vmatpush.bf16.msra.mxu2 %v353_v0  ;;  %v360_v3 = vld [vmem:[%s494_s3 + $0x70] sm:$0xff]  ;;  %v359_v5 = vld [vmem:[%s494_s3 + $0x68] sm:$0xff] }
   0x3   :  { %218 = vmatpush.bf16.msra.mxu1 %v361_v1  ;;  %381 = vmatpush.bf16.msra.mxu3 %v361_v1  ;;  %v19_v6 = vld [vmem:[%s495_s0] sm:$0xff]  ;;  %v20_v7 = vld [vmem:[%s495_s0 + $0x8] sm:$0xff]  ;;  %v21_v10 = vld [vmem:[%s495_s0 + $0x10] sm:$0xff] }
   0x4   :  { %v31_v8 = vld [vmem:[%s496_s1] sm:$0x3]  ;;  %v22_v11 = vld [vmem:[%s495_s0 + $0x18] sm:$0xff]  ;;  %v23_v13 = vunpack.c.l.bf16 %v19_v6  ;;  %v25_v14 = vunpack.c.l.bf16 %v20_v7  ;;  %v27_v17 = vunpack.c.l.bf16 %v21_v10  ;;  %v24_v19 = vunpack.c.h.bf16 %v19_v6  ;;  %v348_v33 = vld [vmem:[%s494_s3 + $0x10] sm:$0xff] }
   0x5   :  { %v350_v9 = vld [vmem:[%s494_s3 + $0x20] sm:$0xff]  ;;  %v33_v15 = vperm.slane %v31_v8, 0  ;;  %v29_v18 = vunpack.c.l.bf16 %v22_v11  ;;  %v34_v20 = vperm.slane %v31_v8, 1  ;;  %v349_v21 = vld [vmem:[%s494_s3 + $0x18] sm:$0xff]  ;;  %v26_v22 = vunpack.c.h.bf16 %v20_v7  ;;  %v356_v37 = vld [vmem:[%s494_s3 + $0x50] sm:$0xff] }
   0x6   :  { %200 = vmatpush.bf16.msra.mxu0 %v352_v2  ;;  %374 = vmatpush.bf16.msra.mxu2 %v352_v2  ;;  %v358_v12 = vld [vmem:[%s494_s3 + $0x60] sm:$0xff]  ;;  %v28_v23 = vunpack.c.h.bf16 %v21_v10  ;;  %v30_v24 = vunpack.c.h.bf16 %v22_v11  ;;  %v357_v25 = vld [vmem:[%s494_s3 + $0x58] sm:$0xff]  ;;  %v347_v43 = vld [vmem:[%s494_s3 + $0x8] sm:$0xff] }
   0x7   :  { %219 = vmatpush.bf16.msra.mxu1 %v360_v3  ;;  %382 = vmatpush.bf16.msra.mxu3 %v360_v3  ;;  %v45_v16 = vld [vmem:[%s497_s2] sm:$0x3]  ;;  %v37_v26 = vmul.f32 %v33_v15, %v23_v13  ;;  %v39_v29 = vmul.f32 %v33_v15, %v25_v14  ;;  %v41_v30 = vmul.f32 %v33_v15, %v27_v17  ;;  %v355_v47 = vld [vmem:[%s494_s3 + $0x48] sm:$0xff] }
   0x8   :  { %v47_v27 = vperm.slane %v45_v16, 0  ;;  %v48_v28 = vperm.slane %v45_v16, 1  ;;  %v43_v31 = vmul.f32 %v33_v15, %v29_v18  ;;  %v38_v32 = vmul.f32 %v34_v20, %v24_v19  ;;  %v346_v52 = vld [vmem:[%s494_s3] sm:$0xff] }
   0x9   :  { %v40_v34 = vmul.f32 %v34_v20, %v26_v22  ;;  %v42_v35 = vmul.f32 %v34_v20, %v28_v23  ;;  %v44_v36 = vmul.f32 %v34_v20, %v30_v24  ;;  %v354_v57 = vld [vmem:[%s494_s3 + $0x40] sm:$0xff] }
   0xa   :  { %201 = vmatpush.bf16.msra.mxu0 %v351_v4  ;;  %375 = vmatpush.bf16.msra.mxu2 %v351_v4  ;;  %v51_v38 = vadd.f32 %v47_v27, %v37_v26  ;;  %v53_v39 = vadd.f32 %v47_v27, %v39_v29  ;;  %v55_v40 = vadd.f32 %v47_v27, %v41_v30 }
   0xb   :  { %220 = vmatpush.bf16.msra.mxu1 %v359_v5  ;;  %383 = vmatpush.bf16.msra.mxu3 %v359_v5  ;;  %v57_v41 = vadd.f32 %v47_v27, %v43_v31  ;;  %v52_v42 = vadd.f32 %v48_v28, %v38_v32  ;;  %v54_v44 = vadd.f32 %v48_v28, %v40_v34 }
   0xc   :  { %v56_v45 = vadd.f32 %v48_v28, %v42_v35  ;;  %v58_v46 = vadd.f32 %v48_v28, %v44_v36  ;;  %v59_v48 = vmax.f32 %v51_v38, 0.0  ;;  %v61_v49 = vmax.f32 %v53_v39, 0.0 }
   0xd   :  { %v63_v50 = vmax.f32 %v55_v40, 0.0  ;;  %v65_v51 = vmax.f32 %v57_v41, 0.0  ;;  %v60_v53 = vmax.f32 %v52_v42, 0.0  ;;  %v62_v54 = vmax.f32 %v54_v44, 0.0 }
   0xe   :  { %202 = vmatpush.bf16.msra.mxu0 %v350_v9  ;;  %376 = vmatpush.bf16.msra.mxu2 %v350_v9  ;;  %v64_v55 = vmax.f32 %v56_v45, 0.0  ;;  %v66_v56 = vmax.f32 %v58_v46, 0.0  ;;  %v67_v58 = vpack.c.bf16 %v61_v49, %v59_v48 }
   0xf   :  { %221 = vmatpush.bf16.msra.mxu1 %v358_v12  ;;  %384 = vmatpush.bf16.msra.mxu3 %v358_v12  ;;  %v69_v59 = vpack.c.bf16 %v65_v51, %v63_v50  ;;  %v68_v60 = vpack.c.bf16 %v62_v54, %v60_v53 }
  0x10   :  { %v70_v61 = vpack.c.bf16 %v66_v56, %v64_v55 }
  0x12   :  { %203 = vmatpush.bf16.msra.mxu0 %v349_v21  ;;  %377 = vmatpush.bf16.msra.mxu2 %v349_v21 }
  0x13   :  { %222 = vmatpush.bf16.msra.mxu1 %v357_v25  ;;  %385 = vmatpush.bf16.msra.mxu3 %v357_v25  ;;  %v259_v25 = vlaneseq }
  0x15   :  { %v260_v30 = vshrl.u32 %v259_v25, 7 }
  0x16   :  { %204 = vmatpush.bf16.msra.mxu0 %v348_v33  ;;  %378 = vmatpush.bf16.msra.mxu2 %v348_v33 }
  0x17   :  { %223 = vmatpush.bf16.msra.mxu1 %v356_v37  ;;  %386 = vmatpush.bf16.msra.mxu3 %v356_v37  ;;  %vm262_vm0 = vcmp.eq.s32.totalorder %v260_v30, 1  ;;  %vm261_vm1 = vcmp.eq.s32.totalorder %v260_v30, 0 }
  0x1a   :  { %205 = vmatpush.bf16.msra.mxu0 %v347_v43  ;;  %379 = vmatpush.bf16.msra.mxu2 %v347_v43 }
  0x1b   :  { %224 = vmatpush.bf16.msra.mxu1 %v355_v47  ;;  %387 = vmatpush.bf16.msra.mxu3 %v355_v47 }
  0x1e   :  { %206 = vmatpush.bf16.msra.mxu0 %v346_v52  ;;  %380 = vmatpush.bf16.msra.mxu2 %v346_v52 }
  0x1f   :  { %225 = vmatpush.bf16.msra.mxu1 %v354_v57  ;;  %388 = vmatpush.bf16.msra.mxu3 %v354_v57 }
  0x21   :  { %207 = vmatmul.bf16.vlgmr.msra.gmra.mxu0 %v67_v58  ;;  %212 = vmatmul.bf16.vlgmr.msra.gmra.mxu2 %v69_v59 }
  0x22   :  { %226 = vmatmul.bf16.vlgmr.msra.gmra.mxu1 %v68_v60  ;;  %231 = vmatmul.bf16.vlgmr.msra.gmra.mxu3 %v70_v61 }
  0x9e   :  { %v208_v62 = vpop.f32.mrf.mxu0 }
  0x9f   :  { %v227_v63 = vpop.f32.mrf.mxu1 }
  0xa0   :  { %v228_v1 = vadd.f32 %v227_v63, %v208_v62 }
  0xa2   :  { %v246_v6 = vmul.f32 %v228_v1, %v228_v1 }
  0xa4   :  { %v213_v0 = vpop.f32.mrf.mxu2 }
  0xa5   :  { %v232_v2 = vpop.f32.mrf.mxu3 }
  0xa6   :  { %v210_v3 = vpop.f32.mrf.mxu0  ;;  %v233_v7 = vadd.f32 %v232_v2, %v213_v0 }
  0xa7   :  { %v229_v4 = vpop.f32.mrf.mxu1 }
  0xa8   :  { %v230_v5 = vadd.f32 %v229_v4, %v210_v3  ;;  %v248_v14 = vmul.f32 %v233_v7, %v233_v7 }
  0xaa   :  { %v237_v8 = vadd.f32 %v230_v5, %v228_v1  ;;  %v247_v9 = vmul.f32 %v230_v5, %v230_v5  ;;  %v365_v10 = vpack.c.bf16 %v230_v5, %v228_v1 }
  0xac   :  { %v250_v11 = vadd.f32 %v247_v9, %v246_v6  ;;  %366 = vst [vmem:[%s498_s4] sm:$0xff] %v365_v10   ;;  %v215_v12 = vpop.f32.mrf.mxu2  ;;  %v238_v16 = vadd.f32 %v237_v8, %v233_v7 }
  0xad   :  { %v234_v13 = vpop.f32.mrf.mxu3 }
  0xae   :  { %v235_v15 = vadd.f32 %v234_v13, %v215_v12  ;;  %v251_v19 = vadd.f32 %v250_v11, %v248_v14 }
  0xb0   :  { %v239_v17 = vadd.f32 %v238_v16, %v235_v15  ;;  %v249_v18 = vmul.f32 %v235_v15, %v235_v15  ;;  %v370_v20 = vpack.c.bf16 %v235_v15, %v233_v7 }
  0xb2   :  { %v240_v21 = vrot.slane %v239_v17, 4  ;;  %v252_v22 = vadd.f32 %v251_v19, %v249_v18  ;;  %372 = vst [vmem:[%s498_s4 + $0x8] sm:$0xff] %v370_v20  }
  0xb4   :  { %v241_v23 = vadd.f32 %v240_v21, %v239_v17  ;;  %v253_v24 = vrot.slane %v252_v22, 4 }
  0xb6   :  { %v242_v26 = vrot.slane %v241_v23, 2  ;;  %v254_v27 = vadd.f32 %v253_v24, %v252_v22 }
  0xb8   :  { %v243_v28 = vadd.f32 %v242_v26, %v241_v23  ;;  %v255_v29 = vrot.slane %v254_v27, 2 }
  0xba   :  { %v256_v31 = vadd.f32 %v255_v29, %v254_v27  ;;  %v244_v32 = vrot.slane %v243_v28, 1 }
  0xbc   :  { %v257_v33 = vrot.slane %v256_v31, 1  ;;  %v245_v35 = vadd.f32 %v244_v32, %v243_v28 }
  0xbe   :  { %v258_v34 = vadd.f32 %v257_v33, %v256_v31 }
  0xc0   :  { %v263_v36 = vsel %vm262_vm0, %v258_v34, 0.0 }
  0xc1   :  { %v264_v37 = vsel %vm261_vm1, %v245_v35, %v263_v36 }
  0xc2   :  { %265 = vst [vmem:[%s499_s5] sm:$0xff] %v264_v37 }

// kernel: vae_forward.11
= control target key start
LH: loop header
LB: loop body
LE: loop exit
PB: predicated region body
PF: predicated region fallthrough
CT: control target
= control target key end

     0   :  { %s716_s3 = inlined_call_operand.vmem [shape: bf16[1,512,128], index: 3, kind: input, shape index: {}]   ;;  %s717_s0 = inlined_call_operand.vmem [shape: bf16[1,16,512], index: 0, kind: input, shape index: {}]   ;;  %s718_s1 = inlined_call_operand.vmem [shape: f32[1,512], index: 1, kind: input, shape index: {}]   ;;  %s719_s2 = inlined_call_operand.vmem [shape: f32[1,512], index: 2, kind: input, shape index: {}]   ;;  %s720_s4 = inlined_call_operand.vmem [shape: f32[1,128], index: 4, kind: input, shape index: {}]   ;;  %s721_s5 = inlined_call_operand.vmem [shape: f32[1,16,128], index: 5, kind: output, shape index: {}]  }
   0x1   :  { %v537_v0 = vld [vmem:[%s716_s3 + $0x38] sm:$0xff]  ;;  %v536_v4 = vld [vmem:[%s716_s3 + $0x30] sm:$0xff]  ;;  %v535_v8 = vld [vmem:[%s716_s3 + $0x28] sm:$0xff] }
   0x2   :  { %v545_v1 = vld [vmem:[%s716_s3 + $0x78] sm:$0xff]  ;;  %340 = vmatpush.bf16.msra.mxu0 %v537_v0  ;;  %v544_v5 = vld [vmem:[%s716_s3 + $0x70] sm:$0xff]  ;;  %v543_v9 = vld [vmem:[%s716_s3 + $0x68] sm:$0xff] }
   0x3   :  { %v553_v2 = vld [vmem:[%s716_s3 + $0xb8] sm:$0xff]  ;;  %354 = vmatpush.bf16.msra.mxu1 %v545_v1  ;;  %v552_v6 = vld [vmem:[%s716_s3 + $0xb0] sm:$0xff]  ;;  %v551_v10 = vld [vmem:[%s716_s3 + $0xa8] sm:$0xff] }
   0x4   :  { %v561_v3 = vld [vmem:[%s716_s3 + $0xf8] sm:$0xff]  ;;  %368 = vmatpush.bf16.msra.mxu2 %v553_v2  ;;  %v560_v7 = vld [vmem:[%s716_s3 + $0xf0] sm:$0xff]  ;;  %v559_v11 = vld [vmem:[%s716_s3 + $0xe8] sm:$0xff] }
   0x5   :  { %382 = vmatpush.bf16.msra.mxu3 %v561_v3  ;;  %v534_v12 = vld [vmem:[%s716_s3 + $0x20] sm:$0xff]  ;;  %v22_v17 = vld [vmem:[%s717_s0 + $0x10] sm:$0xff]  ;;  %v21_v23 = vld [vmem:[%s717_s0 + $0x8] sm:$0xff] }
   0x6   :  { %341 = vmatpush.bf16.msra.mxu0 %v536_v4  ;;  %v542_v13 = vld [vmem:[%s716_s3 + $0x60] sm:$0xff]  ;;  %v28_v21 = vunpack.c.l.bf16 %v22_v17  ;;  %v23_v24 = vld [vmem:[%s717_s0 + $0x18] sm:$0xff]  ;;  %v29_v26 = vunpack.c.h.bf16 %v22_v17  ;;  %v26_v28 = vunpack.c.l.bf16 %v21_v23  ;;  %v27_v36 = vunpack.c.h.bf16 %v21_v23  ;;  %v532_v46 = vld [vmem:[%s716_s3 + $0x10] sm:$0xff] }
   0x7   :  { %355 = vmatpush.bf16.msra.mxu1 %v544_v5  ;;  %v550_v14 = vld [vmem:[%s716_s3 + $0xa0] sm:$0xff]  ;;  %v533_v29 = vld [vmem:[%s716_s3 + $0x18] sm:$0xff]  ;;  %v30_v31 = vunpack.c.l.bf16 %v23_v24  ;;  %v31_v37 = vunpack.c.h.bf16 %v23_v24  ;;  %v540_v47 = vld [vmem:[%s716_s3 + $0x50] sm:$0xff] }
   0x8   :  { %369 = vmatpush.bf16.msra.mxu2 %v552_v6  ;;  %v558_v15 = vld [vmem:[%s716_s3 + $0xe0] sm:$0xff]  ;;  %v541_v30 = vld [vmem:[%s716_s3 + $0x58] sm:$0xff]  ;;  %v548_v50 = vld [vmem:[%s716_s3 + $0x90] sm:$0xff] }
   0x9   :  { %383 = vmatpush.bf16.msra.mxu3 %v560_v7  ;;  %v20_v16 = vld [vmem:[%s717_s0] sm:$0xff]  ;;  %v549_v33 = vld [vmem:[%s716_s3 + $0x98] sm:$0xff]  ;;  %v556_v51 = vld [vmem:[%s716_s3 + $0xd0] sm:$0xff] }
   0xa   :  { %342 = vmatpush.bf16.msra.mxu0 %v535_v8  ;;  %v32_v18 = vld [vmem:[%s718_s1] sm:$0xf]  ;;  %v24_v20 = vunpack.c.l.bf16 %v20_v16  ;;  %v25_v25 = vunpack.c.h.bf16 %v20_v16  ;;  %v557_v34 = vld [vmem:[%s716_s3 + $0xd8] sm:$0xff]  ;;  %v531_v59 = vld [vmem:[%s716_s3 + $0x8] sm:$0xff] }
   0xb   :  { %356 = vmatpush.bf16.msra.mxu1 %v543_v9  ;;  %v50_v19 = vld [vmem:[%s719_s2] sm:$0xf]  ;;  %v34_v22 = vperm.slane %v32_v18, 0  ;;  %v35_v27 = vperm.slane %v32_v18, 1  ;;  %v36_v32 = vperm.slane %v32_v18, 2  ;;  %v37_v45 = vperm.slane %v32_v18, 3 }
   0xc   :  { %370 = vmatpush.bf16.msra.mxu2 %v551_v10  ;;  %v52_v35 = vperm.slane %v50_v19, 0  ;;  %v53_v40 = vperm.slane %v50_v19, 1  ;;  %v54_v41 = vperm.slane %v50_v19, 2  ;;  %v55_v49 = vperm.slane %v50_v19, 3  ;;  %v539_v60 = vld [vmem:[%s716_s3 + $0x48] sm:$0xff]  ;;  %v530_v6 = vld [vmem:[%s716_s3] sm:$0xff] }
   0xd   :  { %384 = vmatpush.bf16.msra.mxu3 %v559_v11  ;;  %v42_v38 = vmul.f32 %v34_v22, %v24_v20  ;;  %v46_v39 = vmul.f32 %v34_v22, %v28_v21  ;;  %v43_v42 = vmul.f32 %v35_v27, %v25_v25  ;;  %v47_v43 = vmul.f32 %v35_v27, %v29_v26  ;;  %v547_v0 = vld [vmem:[%s716_s3 + $0x88] sm:$0xff]  ;;  %v538_v7 = vld [vmem:[%s716_s3 + $0x40] sm:$0xff] }
   0xe   :  { %343 = vmatpush.bf16.msra.mxu0 %v534_v12  ;;  %v44_v44 = vmul.f32 %v36_v32, %v26_v28  ;;  %v48_v48 = vmul.f32 %v36_v32, %v30_v31  ;;  %v45_v52 = vmul.f32 %v37_v45, %v27_v36  ;;  %v49_v53 = vmul.f32 %v37_v45, %v31_v37  ;;  %v555_v1 = vld [vmem:[%s716_s3 + $0xc8] sm:$0xff]  ;;  %v546_v12 = vld [vmem:[%s716_s3 + $0x80] sm:$0xff] }
   0xf   :  { %357 = vmatpush.bf16.msra.mxu1 %v542_v13  ;;  %v60_v54 = vadd.f32 %v52_v35, %v42_v38  ;;  %v64_v55 = vadd.f32 %v52_v35, %v46_v39  ;;  %v61_v56 = vadd.f32 %v53_v40, %v43_v42  ;;  %v65_v57 = vadd.f32 %v53_v40, %v47_v43  ;;  %v554_v13 = vld [vmem:[%s716_s3 + $0xc0] sm:$0xff] }
  0x10   :  { %371 = vmatpush.bf16.msra.mxu2 %v550_v14  ;;  %v62_v58 = vadd.f32 %v54_v41, %v44_v44  ;;  %v66_v61 = vadd.f32 %v54_v41, %v48_v48  ;;  %v63_v62 = vadd.f32 %v55_v49, %v45_v52  ;;  %v67_v63 = vadd.f32 %v55_v49, %v49_v53  ;;  %v562_v18 = vld [vmem:[%s720_s4] ss:$0 sm:$0xff] }
  0x11   :  { %385 = vmatpush.bf16.msra.mxu3 %v558_v15  ;;  %v68_v2 = vmax.f32 %v60_v54, 0.0  ;;  %v72_v3 = vmax.f32 %v64_v55, 0.0  ;;  %v69_v4 = vmax.f32 %v61_v56, 0.0  ;;  %v73_v5 = vmax.f32 %v65_v57, 0.0 }
  0x12   :  { %344 = vmatpush.bf16.msra.mxu0 %v533_v29  ;;  %v70_v8 = vmax.f32 %v62_v58, 0.0  ;;  %v74_v9 = vmax.f32 %v66_v61, 0.0  ;;  %v71_v10 = vmax.f32 %v63_v62, 0.0  ;;  %v75_v11 = vmax.f32 %v67_v63, 0.0 }
  0x13   :  { %358 = vmatpush.bf16.msra.mxu1 %v541_v30  ;;  %v76_v14 = vpack.c.bf16 %v72_v3, %v68_v2  ;;  %v77_v15 = vpack.c.bf16 %v73_v5, %v69_v4 }
  0x14   :  { %372 = vmatpush.bf16.msra.mxu2 %v549_v33  ;;  %v78_v16 = vpack.c.bf16 %v74_v9, %v70_v8  ;;  %v79_v17 = vpack.c.bf16 %v75_v11, %v71_v10 }
  0x15   :  { %386 = vmatpush.bf16.msra.mxu3 %v557_v34 }
  0x16   :  { %345 = vmatpush.bf16.msra.mxu0 %v532_v46 }
  0x17   :  { %359 = vmatpush.bf16.msra.mxu1 %v540_v47 }
  0x18   :  { %373 = vmatpush.bf16.msra.mxu2 %v548_v50 }
  0x19   :  { %387 = vmatpush.bf16.msra.mxu3 %v556_v51 }
  0x1a   :  { %346 = vmatpush.bf16.msra.mxu0 %v531_v59 }
  0x1b   :  { %360 = vmatpush.bf16.msra.mxu1 %v539_v60 }
  0x1c   :  { %374 = vmatpush.bf16.msra.mxu2 %v547_v0 }
  0x1d   :  { %388 = vmatpush.bf16.msra.mxu3 %v555_v1 }
  0x1e   :  { %347 = vmatpush.bf16.msra.mxu0 %v530_v6 }
  0x1f   :  { %361 = vmatpush.bf16.msra.mxu1 %v538_v7 }
  0x20   :  { %375 = vmatpush.bf16.msra.mxu2 %v546_v12 }
  0x21   :  { %389 = vmatpush.bf16.msra.mxu3 %v554_v13  ;;  %348 = vmatmul.bf16.vlgmr.msra.gmra.mxu0 %v76_v14 }
  0x22   :  { %362 = vmatmul.bf16.vlgmr.msra.gmra.mxu1 %v77_v15 }
  0x23   :  { %376 = vmatmul.bf16.vlgmr.msra.gmra.mxu2 %v78_v16 }
  0x24   :  { %390 = vmatmul.bf16.vlgmr.msra.gmra.mxu3 %v79_v17 }
  0x9e   :  { %v349_v19 = vpop.f32.mrf.mxu0 }
  0x9f   :  { %v350_v20 = vadd.f32 %v562_v18, %v349_v19  ;;  %v363_v21 = vpop.f32.mrf.mxu1 }
  0xa1   :  { %v364_v22 = vadd.f32 %v363_v21, %v350_v20 }
  0xa6   :  { %v377_v23 = vpop.f32.mrf.mxu2  ;;  %v351_v26 = vpop.f32.mrf.mxu0 }
  0xa7   :  { %v391_v24 = vpop.f32.mrf.mxu3  ;;  %v378_v25 = vadd.f32 %v377_v23, %v364_v22  ;;  %v352_v28 = vadd.f32 %v562_v18, %v351_v26  ;;  %v365_v29 = vpop.f32.mrf.mxu1 }
  0xa9   :  { %v392_v27 = vadd.f32 %v391_v24, %v378_v25  ;;  %v366_v30 = vadd.f32 %v365_v29, %v352_v28 }
  0xab   :  { %396 = vst [vmem:[%s721_s5] sm:$0xff] %v392_v27 }
  0xae   :  { %v379_v31 = vpop.f32.mrf.mxu2 }
  0xaf   :  { %v380_v32 = vadd.f32 %v379_v31, %v366_v30  ;;  %v393_v33 = vpop.f32.mrf.mxu3 }
  0xb1   :  { %v394_v34 = vadd.f32 %v393_v33, %v380_v32 }
  0xb3   :  { %397 = vst [vmem:[%s721_s5 + $0x8] sm:$0xff] %v394_v34 }

// kernel: vae_forward.12
= control target key start
LH: loop header
LB: loop body
LE: loop exit
PB: predicated region body
PF: predicated region fallthrough
CT: control target
= control target key end

     0   :  { %vm56_vm0 = vcmask 130048   ;;  %s243_s1 = inlined_call_operand.vmem [shape: bf16[1,16,512], index: 1, kind: input, shape index: {}]   ;;  %s244_s0 = inlined_call_operand.vmem [shape: bf16[1,16,16], index: 0, kind: input, shape index: {}]   ;;  %s245_s2 = inlined_call_operand.vmem [shape: f32[1,512], index: 2, kind: input, shape index: {}]   ;;  %s246_s3 = inlined_call_operand.vmem [shape: bf16[1,16,512], index: 3, kind: output, shape index: {}]  }
   0x1   :  { %v158_v0 = vld [vmem:[%s243_s1] sm:$0xf]  ;;  %v179_v1 = vld [vmem:[%s243_s1 + $0xc] sm:$0xf0]  ;;  %v177_v2 = vld [vmem:[%s243_s1 + $0x4] sm:$0xf] }
   0x2   :  { %v159_v3 = vor.u32 %v179_v1, %v158_v0  ;;  %v160_v4 = vld [vmem:[%s243_s1 + $0x10] sm:$0xf0]  ;;  %v166_v5 = vld [vmem:[%s243_s1 + $0x8] sm:$0xf]  ;;  %v180_v6 = vld [vmem:[%s243_s1 + $0x14] sm:$0xf0] }
   0x3   :  { %v163_v7 = vor.u32 %v177_v2, %v160_v4  ;;  %v167_v8 = vor.u32 %v180_v6, %v166_v5  ;;  %v178_v9 = vld [vmem:[%s243_s1 + $0xc] sm:$0xf]  ;;  %v168_v10 = vld [vmem:[%s243_s1 + $0x18] sm:$0xf0]  ;;  %v176_v11 = vld [vmem:[%s244_s0] sm:$0xff] }
   0x4   :  { %67 = vmatpush.bf16.msra.mxu0 %v159_v3  ;;  %v171_v12 = vor.u32 %v178_v9, %v168_v10  ;;  %v21_v13 = vld [vmem:[%s245_s2] sm:$0xf] }
   0x5   :  { %81 = vmatpush.bf16.msra.mxu1 %v163_v7  ;;  %95 = vmatpush.bf16.msra.mxu2 %v167_v8  ;;  %v23_v14 = vperm.slane %v21_v13, 0  ;;  %v24_v15 = vperm.slane %v21_v13, 1  ;;  %v25_v22 = vperm.slane %v21_v13, 2  ;;  %v26_v24 = vperm.slane %v21_v13, 3 }
   0x6   :  { %109 = vmatpush.bf16.msra.mxu3 %v171_v12 }
   0x7   :  { %172 = vmatmul.msk.bf16.vlgmr.msra.gmra.mxu0 %vm56_vm0, %v176_v11 }
   0x8   :  { %173 = vmatmul.msk.bf16.vlgmr.msra.gmra.mxu1 %vm56_vm0, %v176_v11  ;;  %174 = vmatmul.msk.bf16.vlgmr.msra.gmra.mxu2 %vm56_vm0, %v176_v11 }
   0x9   :  { %175 = vmatmul.msk.bf16.vlgmr.msra.gmra.mxu3 %vm56_vm0, %v176_v11 }
  0x84   :  { %v69_v16 = vpop.f32.mrf.mxu0 }
  0x85   :  { %v70_v17 = vadd.f32 %v69_v16, %v23_v14  ;;  %v83_v18 = vpop.f32.mrf.mxu1 }
  0x86   :  { %v84_v19 = vadd.f32 %v83_v18, %v24_v15 }
  0x87   :  { %vm116_vm1 = vcmp.ge.f32.partialorder %v70_v17, 0.0  ;;  %v124_v20 = vmul.f32 0.2, %v70_v17 }
  0x88   :  { %vm117_vm2 = vcmp.ge.f32.partialorder %v84_v19, 0.0  ;;  %v125_v21 = vmul.f32 0.2, %v84_v19 }
  0x89   :  { %v132_v23 = vsel %vm116_vm1, %v70_v17, %v124_v20 }
  0x8a   :  { %v133_v25 = vsel %vm117_vm2, %v84_v19, %v125_v21 }
  0x8b   :  { %v140_v26 = vpack.c.bf16 %v133_v25, %v132_v23  ;;  %v97_v27 = vpop.f32.mrf.mxu2 }
  0x8c   :  { %v98_v28 = vadd.f32 %v97_v27, %v25_v22  ;;  %v111_v29 = vpop.f32.mrf.mxu3  ;;  %v71_v30 = vpop.f32.mrf.mxu0 }
  0x8d   :  { %144 = vst [vmem:[%s246_s3] sm:$0xff] %v140_v26  ;;  %v112_v31 = vadd.f32 %v111_v29, %v26_v24  ;;  %v72_v32 = vadd.f32 %v71_v30, %v23_v14  ;;  %v85_v33 = vpop.f32.mrf.mxu1 }
  0x8e   :  { %vm118_vm3 = vcmp.ge.f32.partialorder %v98_v28, 0.0  ;;  %v126_v34 = vmul.f32 0.2, %v98_v28  ;;  %v86_v35 = vadd.f32 %v85_v33, %v24_v15 }
  0x8f   :  { %vm119_vm4 = vcmp.ge.f32.partialorder %v112_v31, 0.0  ;;  %v127_v36 = vmul.f32 0.2, %v112_v31  ;;  %vm120_vm5 = vcmp.ge.f32.partialorder %v72_v32, 0.0  ;;  %v128_v37 = vmul.f32 0.2, %v72_v32 }
  0x90   :  { %v134_v38 = vsel %vm118_vm3, %v98_v28, %v126_v34  ;;  %vm121_vm6 = vcmp.ge.f32.partialorder %v86_v35, 0.0  ;;  %v129_v39 = vmul.f32 0.2, %v86_v35 }
  0x91   :  { %v135_v40 = vsel %vm119_vm4, %v112_v31, %v127_v36  ;;  %v136_v41 = vsel %vm120_vm5, %v72_v32, %v128_v37 }
  0x92   :  { %v141_v42 = vpack.c.bf16 %v135_v40, %v134_v38  ;;  %v137_v43 = vsel %vm121_vm6, %v86_v35, %v129_v39 }
  0x93   :  { %v142_v44 = vpack.c.bf16 %v137_v43, %v136_v41  ;;  %v99_v45 = vpop.f32.mrf.mxu2 }
  0x94   :  { %145 = vst [vmem:[%s246_s3 + $0x8] sm:$0xff] %v141_v42  ;;  %v100_v46 = vadd.f32 %v99_v45, %v25_v22  ;;  %v113_v47 = vpop.f32.mrf.mxu3 }
  0x95   :  { %146 = vst [vmem:[%s246_s3 + $0x10] sm:$0xff] %v142_v44  ;;  %v114_v48 = vadd.f32 %v113_v47, %v26_v24 }
  0x96   :  { %vm122_vm7 = vcmp.ge.f32.partialorder %v100_v46, 0.0  ;;  %v130_v49 = vmul.f32 0.2, %v100_v46 }
  0x97   :  { %vm123_vm8 = vcmp.ge.f32.partialorder %v114_v48, 0.0  ;;  %v131_v50 = vmul.f32 0.2, %v114_v48 }
  0x98   :  { %v138_v51 = vsel %vm122_vm7, %v100_v46, %v130_v49 }
  0x99   :  { %v139_v52 = vsel %vm123_vm8, %v114_v48, %v131_v50 }
  0x9a   :  { %v143_v53 = vpack.c.bf16 %v139_v52, %v138_v51 }
  0x9c   :  { %147 = vst [vmem:[%s246_s3 + $0x18] sm:$0xff] %v143_v53 }

// kernel: vae_forward.13
= control target key start
LH: loop header
LB: loop body
LE: loop exit
PB: predicated region body
PF: predicated region fallthrough
CT: control target
= control target key end

     0   :  { %s679_s12 = smov 0   ;;  %s681_s13 = smov 0   ;;  %s723_s0 = inlined_call_operand.vmem [shape: bf16[4,32,128], index: 0, kind: input, shape index: {}]   ;;  %s724_s1 = inlined_call_operand.vmem [shape: bf16[4,128,128], index: 1, kind: input, shape index: {}]   ;;  %s725_s2 = inlined_call_operand.vmem [shape: bf16[4,32,128], index: 2, kind: output, shape index: {0}]   ;;  %s726_s3 = inlined_call_operand.vmem [shape: f32[4,1,8,128], index: 3, kind: output, shape index: {1}]  }
   0x1   :  { %s683_s14 = smov 0  }
   0x2 LB: > { %s26_s15 = sadd.s32 1, %s653_s13  ;;  %p529_p0 = scmp.ge.s32.totalorder %s657_s14, 1  ;;  %s657_s14 = sphi %s683_s14, %s14_s14   ;;  %s653_s13 = sphi %s681_s13, %s728_s13   ;;  %s649_s12 = sphi %s679_s12, %s727_s12  }
   0x3   : > { %p28_p1 = scmp.ge.s32.totalorder %s26_s15, 4  ;;  %p173_p2 = scmp.lt.s32.totalorder %s657_s14, 5 }
   0x5   : > { %s730_s15 = smov (%p28_p1, %s26_s15), 0  ;;  %p174_p3 = pnand %p529_p0, %p173_p2 }
   0x6   : > { %p218_p4 = scmp.lt.s32.totalorder (!%p174_p3), %s649_s12, 3 }
   0x7   : > { %177 = sbr.rel (%p174_p3) target bundleno = 204 (0xcc), region = 28 }
   0xc   : > { %s732_s12 = smov (!%p218_p4, %s649_s12), 3  ;;  %v370_v29 = vlaneseq }
   0xd   : > { %s580_s16 = sshll.u32 %s732_s12, 6  ;;  %s579_s20 = sshll.u32 %s732_s12, 4 }
   0xe   : > { %s231_s19 = scalar_lea.vmem %s724_s1, %s580_s16  ;;  %s225_s23 = scalar_lea.vmem %s723_s0, %s579_s20  ;;  %v371_v34 = vshrl.u32 %v370_v29, 7 }
   0xf   : > { %v591_v0 = vld [vmem:[%s231_s19 + $0x38] sm:$0xff]  ;;  %v590_v1 = vld [vmem:[%s231_s19 + $0x30] sm:$0xff]  ;;  %v589_v2 = vld [vmem:[%s231_s19 + $0x28] sm:$0xff]  ;;  %s240_s26 = scalar_lea.vmem %s725_s2, %s579_s20  ;;  %s536_s27 = sshll.u32 %s732_s12, 3 }
  0x10   : > { %329 = vmatpush.bf16.msra.mxu0 %v591_v0  ;;  %603 = vmatpush.bf16.msra.mxu1 %v591_v0  ;;  %v588_v3 = vld [vmem:[%s231_s19 + $0x20] sm:$0xff]  ;;  %v587_v4 = vld [vmem:[%s231_s19 + $0x18] sm:$0xff]  ;;  %v586_v5 = vld [vmem:[%s231_s19 + $0x10] sm:$0xff]  ;;  %vm373_vm0 = vcmp.eq.s32.totalorder %v371_v34, 1  ;;  %vm372_vm1 = vcmp.eq.s32.totalorder %v371_v34, 0  ;;  %s248_s30 = scalar_lea.vmem %s726_s3, %s536_s27 }
  0x11   : > { %v585_v6 = vld [vmem:[%s231_s19 + $0x8] sm:$0xff]  ;;  %v584_v7 = vld [vmem:[%s231_s19] sm:$0xff] }
  0x12   : > { %v582_v8 = vld [vmem:[%s225_s23] sm:$0xff]  ;;  %v583_v9 = vld [vmem:[%s225_s23 + $0x8] sm:$0xff] }
  0x14   : > { %330 = vmatpush.bf16.msra.mxu0 %v590_v1  ;;  %604 = vmatpush.bf16.msra.mxu1 %v590_v1 }
  0x18   : > { %331 = vmatpush.bf16.msra.mxu0 %v589_v2  ;;  %605 = vmatpush.bf16.msra.mxu1 %v589_v2 }
  0x1c   : > { %332 = vmatpush.bf16.msra.mxu0 %v588_v3  ;;  %606 = vmatpush.bf16.msra.mxu1 %v588_v3 }
  0x20   : > { %333 = vmatpush.bf16.msra.mxu0 %v587_v4  ;;  %607 = vmatpush.bf16.msra.mxu1 %v587_v4 }
  0x24   : > { %334 = vmatpush.bf16.msra.mxu0 %v586_v5  ;;  %608 = vmatpush.bf16.msra.mxu1 %v586_v5 }
  0x28   : > { %335 = vmatpush.bf16.msra.mxu0 %v585_v6  ;;  %609 = vmatpush.bf16.msra.mxu1 %v585_v6 }
  0x2c   : > { %336 = vmatpush.bf16.msra.mxu0 %v584_v7  ;;  %610 = vmatpush.bf16.msra.mxu1 %v584_v7 }
  0x2f   : > { %337 = vmatmul.bf16.vlgmr.msra.gmra.mxu0 %v582_v8  ;;  %342 = vmatmul.bf16.vlgmr.msra.gmra.mxu1 %v583_v9 }
  0xac   : > { %v338_v10 = vpop.f32.mrf.mxu0  ;;  %v343_v11 = vpop.f32.mrf.mxu1 }
  0xad   : > { %v357_v14 = vmul.f32 %v338_v10, %v338_v10  ;;  %v359_v19 = vmul.f32 %v343_v11, %v343_v11 }
  0xb4   : > { %v340_v12 = vpop.f32.mrf.mxu0  ;;  %v345_v13 = vpop.f32.mrf.mxu1 }
  0xb5   : > { %v348_v15 = vadd.f32 %v340_v12, %v338_v10  ;;  %v358_v16 = vmul.f32 %v340_v12, %v340_v12  ;;  %v595_v17 = vpack.c.bf16 %v340_v12, %v338_v10  ;;  %v600_v18 = vpack.c.bf16 %v345_v13, %v343_v11 }
  0xb6   : > { %v360_v23 = vmul.f32 %v345_v13, %v345_v13 }
  0xb7   : > { %v361_v20 = vadd.f32 %v358_v16, %v357_v14  ;;  %596 = vst [vmem:[%s240_s26] sm:$0xff] %v595_v17   ;;  %v349_v21 = vadd.f32 %v348_v15, %v343_v11 }
  0xb8   : > { %602 = vst [vmem:[%s240_s26 + $0x8] sm:$0xff] %v600_v18  }
  0xb9   : > { %v350_v22 = vadd.f32 %v349_v21, %v345_v13  ;;  %v362_v24 = vadd.f32 %v361_v20, %v359_v19 }
  0xbb   : > { %v351_v25 = vrot.slane %v350_v22, 4  ;;  %v363_v26 = vadd.f32 %v362_v24, %v360_v23 }
  0xbd   : > { %v352_v27 = vadd.f32 %v351_v25, %v350_v22  ;;  %v364_v28 = vrot.slane %v363_v26, 4 }
  0xbf   : > { %v353_v30 = vrot.slane %v352_v27, 2  ;;  %v365_v31 = vadd.f32 %v364_v28, %v363_v26 }
  0xc1   : > { %v354_v32 = vadd.f32 %v353_v30, %v352_v27  ;;  %v366_v33 = vrot.slane %v365_v31, 2 }
  0xc3   : > { %v367_v35 = vadd.f32 %v366_v33, %v365_v31  ;;  %v355_v36 = vrot.slane %v354_v32, 1 }
  0xc5   : > { %v368_v37 = vrot.slane %v367_v35, 1  ;;  %v356_v39 = vadd.f32 %v355_v36, %v354_v32 }
  0xc7   : > { %v369_v38 = vadd.f32 %v368_v37, %v367_v35 }
  0xc9   : > { %v374_v40 = vsel %vm373_vm0, %v369_v38, 0.0 }
  0xca   : > { %v375_v41 = vsel %vm372_vm1, %v356_v39, %v374_v40 }
  0xcb   : > { %376 = vst [vmem:[%s248_s30] sm:$0xff] %v375_v41 }
  0xcc PF: > { %s14_s14 = sadd.s32 1, %s657_s14   ;;  %s727_s12 = smov %s653_s13 }
  0xcd   : > { %p11_p5 = scmp.ge.s32.totalorder %s14_s14, 6   ;;  %s728_s13 = smov %s730_s15 }
  0xcf   :  { %13 = sbr.rel (!%p11_p5) target bundleno = 2 (0x2), region = 73 }

// kernel: tile.63
= control target key start
LH: loop header
LB: loop body
LE: loop exit
PB: predicated region body
PF: predicated region fallthrough
CT: control target
= control target key end

     0   :  { %s22_s0 = inlined_call_operand.vmem [shape: f32[16], index: 0, kind: input, shape index: {}]   ;;  %s23_s1 = inlined_call_operand.vmem [shape: f32[4,16], index: 1, kind: output, shape index: {}]  }
   0x1   :  { %v4_v0 = vld [vmem:[%s22_s0] ss:$0 sm:$0xff] }
   0x2   :  { %5 = vst [vmem:[%s23_s1] sm:$0xf] %v4_v0 }

// kernel: tile.68
= control target key start
LH: loop header
LB: loop body
LE: loop exit
PB: predicated region body
PF: predicated region fallthrough
CT: control target
= control target key end

     0   :  { %s37_s8 = smov 16   ;;  %s38_s9 = smov 32   ;;  %vm7_vm0 = vcmask 130048   ;;  %vm13_vm1 = vcmask 523648   ;;  %vm19_vm2 = vcmask 392448   ;;  %vm25_vm3 = vcmask 261248   ;;  %s55_s0 = inlined_call_operand.vmem [shape: f32[4,16], index: 0, kind: input, shape index: {}]   ;;  %s56_s1 = inlined_call_operand.vmem [shape: f32[1,64], index: 1, kind: output, shape index: {}]  }
   0x1   :  { %v4_v0 = vld [vmem:[%s55_s0] sm:$0xf]  ;;  %s36_s0 = smov 48  }
   0x2   :  { %5 = vst [vmem:[#allocation1] sm:$0xf] %v4_v0 }
   0x9   :  { %v10_v1 = vld [vmem:[#allocation1 + $0x3] sm:$0x1]   ;;  %v22_v2 = vld [vmem:[#allocation1 + $0x1] sm:$0x1]   ;;  %v16_v3 = vld [vmem:[#allocation1 + $0x2] sm:$0x1]  }
   0xa   :  { %11 = vrot.lane.b32.xlu0 %v10_v1, %s36_s0  ;;  %23 = vrot.lane.b32.xlu1 %v22_v2, %s37_s8  ;;  %v6_v4 = vld [vmem:[#allocation1] sm:$0x1]  }
   0xb   :  { %8 = vst.msk [vmem:[#allocation0] sm:$0x1] %vm7_vm0, %v6_v4  }
  0x12   :  { %17 = vrot.lane.b32.xlu0 %v16_v3, %s38_s9 }
  0x7c   :  { %v12_v5 = vpop.permute.xlu0 %11   ;;  %v24_v6 = vpop.permute.xlu1 %23  }
  0x7d   :  { %14 = vst.msk [vmem:[#allocation0] sm:$0x1] %vm13_vm1, %v12_v5  }
  0x84   :  { %v18_v7 = vpop.permute.xlu0 %17  }
  0x85   :  { %20 = vst.msk [vmem:[#allocation0] sm:$0x1] %vm19_vm2, %v18_v7  }
  0x86   :  { %26 = vst.msk [vmem:[#allocation0] sm:$0x1] %vm25_vm3, %v24_v6  }
  0x8d   :  { %v29_v8 = vld [vmem:[#allocation0] sm:$0x1] }
  0x8e   :  { %32 = vst [vmem:[%s56_s1] sm:$0x1] %v29_v8 }

// kernel: vae_forward.14
= control target key start
LH: loop header
LB: loop body
LE: loop exit
PB: predicated region body
PF: predicated region fallthrough
CT: control target
= control target key end

     0   :  { %s998_s18 = smov 0   ;;  %s1000_s19 = smov 0   ;;  %s1124_s0 = inlined_call_operand.vmem [shape: bf16[4,128,64], index: 0, kind: input, shape index: {}]   ;;  %s1125_s1 = inlined_call_operand.vmem [shape: f32[1,64], index: 1, kind: input, shape index: {}]   ;;  %s1126_s2 = inlined_call_operand.vmem [shape: f32[1,64], index: 2, kind: input, shape index: {}]   ;;  %s1127_s3 = inlined_call_operand.vmem [shape: bf16[4,64,128], index: 3, kind: input, shape index: {}]   ;;  %s1128_s4 = inlined_call_operand.vmem [shape: bf16[4,128,128], index: 4, kind: output, shape index: {0}]   ;;  %s1129_s5 = inlined_call_operand.vmem [shape: f32[4,1,8,128], index: 5, kind: output, shape index: {1}]  }
   0x1   :  { %s1002_s20 = smov 0  }
   0x2 LB: > { %s28_s21 = sadd.s32 1, %s962_s19  ;;  %p779_p0 = scmp.ge.s32.totalorder %s966_s20, 1  ;;  %s966_s20 = sphi %s1002_s20, %s16_s20   ;;  %s962_s19 = sphi %s1000_s19, %s1131_s19   ;;  %s958_s18 = sphi %s998_s18, %s1130_s18  }
   0x3   : > { %p30_p1 = scmp.ge.s32.totalorder %s28_s21, 4  ;;  %p223_p2 = scmp.lt.s32.totalorder %s966_s20, 5 }
   0x5   : > { %s1133_s21 = smov (%p30_p1, %s28_s21), 0  ;;  %p224_p3 = pnand %p779_p0, %p223_p2 }
   0x6   : > { %p272_p4 = scmp.lt.s32.totalorder (!%p224_p3), %s958_s18, 3 }
   0x7   : > { %227 = sbr.rel (%p224_p3) target bundleno = 224 (0xe0), region = 36 }
   0xc   : > { %s1135_s18 = smov (!%p272_p4, %s958_s18), 3  ;;  %v1036_v1 = vld [vmem:[%s1125_s1] ss:$0 sm:$0xff]  ;;  %vm464_vm0 = vcmask 523264  }
   0xd   : > { %s814_s22 = sshll.u32 %s1135_s18, 5  ;;  %s813_s23 = sshll.u32 %s1135_s18, 6  ;;  %v1042_v3 = vld [vmem:[%s1126_s2] ss:$0 sm:$0xff] }
   0xe   : > { %s1023_s26 = scalar_lea.vmem %s1127_s3, %s814_s22  ;;  %s1030_s29 = scalar_lea.vmem %s1124_s0, %s813_s23 }
   0xf   : > { %v819_v0 = vld [vmem:[%s1023_s26 + $0x18] sm:$0xff]  ;;  %v821_v2 = vld [vmem:[%s1030_s29] sm:$0xff]   ;;  %v893_v4 = vld [vmem:[%s1030_s29 + $0x10] sm:$0xff]   ;;  %s1101_s11 = scalar_lea.vmem %s1128_s4, %s813_s23  ;;  %s786_s12 = sshll.u32 %s1135_s18, 3 }
  0x10   : > { %493 = vmatpush.bf16.msra.mxu0 %v819_v0  ;;  %906 = vmatpush.bf16.msra.mxu1 %v819_v0  ;;  %v818_v5 = vld [vmem:[%s1023_s26 + $0x10] sm:$0xff]  ;;  %v822_v6 = vunpack.c.l.bf16 %v821_v2  ;;  %v823_v7 = vunpack.c.h.bf16 %v821_v2  ;;  %v830_v8 = vunpack.c.l.bf16 %v893_v4  ;;  %v831_v9 = vunpack.c.h.bf16 %v893_v4  ;;  %v895_v10 = vld [vmem:[%s1030_s29 + $0x20] sm:$0xff]   ;;  %v892_v16 = vld [vmem:[%s1030_s29 + $0x8] sm:$0xff]   ;;  %s302_s15 = scalar_lea.vmem %s1129_s5, %s786_s12 }
  0x11   : > { %v897_v11 = vld [vmem:[%s1030_s29 + $0x30] sm:$0xff]   ;;  %907 = vmatpush.bf16.msra.mxu2 %v819_v0  ;;  %908 = vmatpush.bf16.msra.mxu3 %v819_v0  ;;  %v838_v12 = vunpack.c.l.bf16 %v895_v10  ;;  %v839_v13 = vunpack.c.h.bf16 %v895_v10  ;;  %v817_v25 = vld [vmem:[%s1023_s26 + $0x8] sm:$0xff]  ;;  %v826_v29 = vunpack.c.l.bf16 %v892_v16  ;;  %v827_v33 = vunpack.c.h.bf16 %v892_v16  ;;  %v816_v38 = vld [vmem:[%s1023_s26] sm:$0xff] }
  0x12   : > { %v846_v14 = vunpack.c.l.bf16 %v897_v11  ;;  %v847_v15 = vunpack.c.h.bf16 %v897_v11  ;;  %v340_v17 = vmul.f32 %v1036_v1, %v822_v6  ;;  %v341_v18 = vmul.f32 %v1036_v1, %v823_v7  ;;  %v894_v41 = vld [vmem:[%s1030_s29 + $0x18] sm:$0xff]   ;;  %v896_v54 = vld [vmem:[%s1030_s29 + $0x28] sm:$0xff]  }
  0x13   : > { %v344_v19 = vmul.f32 %v1036_v1, %v830_v8  ;;  %v345_v20 = vmul.f32 %v1036_v1, %v831_v9  ;;  %v348_v21 = vmul.f32 %v1036_v1, %v838_v12  ;;  %v349_v22 = vmul.f32 %v1036_v1, %v839_v13  ;;  %v898_v2 = vld [vmem:[%s1030_s29 + $0x38] sm:$0xff]  }
  0x14   : > { %v352_v23 = vmul.f32 %v1036_v1, %v846_v14  ;;  %v353_v24 = vmul.f32 %v1036_v1, %v847_v15  ;;  %494 = vmatpush.bf16.msra.mxu0 %v818_v5  ;;  %909 = vmatpush.bf16.msra.mxu1 %v818_v5  ;;  %v360_v26 = vadd.f32 %v1042_v3, %v340_v17  ;;  %v834_v53 = vunpack.c.l.bf16 %v894_v41 }
  0x15   : > { %v361_v27 = vadd.f32 %v1042_v3, %v341_v18  ;;  %v364_v28 = vadd.f32 %v1042_v3, %v344_v19  ;;  %910 = vmatpush.bf16.msra.mxu2 %v818_v5  ;;  %911 = vmatpush.bf16.msra.mxu3 %v818_v5  ;;  %v365_v30 = vadd.f32 %v1042_v3, %v345_v20  ;;  %v835_v62 = vunpack.c.h.bf16 %v894_v41 }
  0x16   : > { %v368_v31 = vadd.f32 %v1042_v3, %v348_v21  ;;  %v369_v32 = vadd.f32 %v1042_v3, %v349_v22  ;;  %vm376_vm1 = vcmp.ge.f32.partialorder %v360_v26, 0.0  ;;  %v392_v34 = vmul.f32 0.2, %v360_v26 }
  0x17   : > { %vm377_vm2 = vcmp.ge.f32.partialorder %v361_v27, 0.0  ;;  %v393_v35 = vmul.f32 0.2, %v361_v27  ;;  %vm380_vm3 = vcmp.ge.f32.partialorder %v364_v28, 0.0  ;;  %vm381_vm4 = vcmp.ge.f32.partialorder %v365_v30, 0.0 }
  0x18   : > { %v396_v36 = vmul.f32 0.2, %v364_v28  ;;  %v397_v37 = vmul.f32 0.2, %v365_v30  ;;  %495 = vmatpush.bf16.msra.mxu0 %v817_v25  ;;  %912 = vmatpush.bf16.msra.mxu1 %v817_v25  ;;  %v408_v39 = vsel %vm376_vm1, %v360_v26, %v392_v34  ;;  %vm384_vm5 = vcmp.ge.f32.partialorder %v368_v31, 0.0 }
  0x19   : > { %v409_v40 = vsel %vm377_vm2, %v361_v27, %v393_v35  ;;  %vm385_vm6 = vcmp.ge.f32.partialorder %v369_v32, 0.0  ;;  %913 = vmatpush.bf16.msra.mxu2 %v817_v25  ;;  %v400_v45 = vmul.f32 0.2, %v368_v31  ;;  %914 = vmatpush.bf16.msra.mxu3 %v817_v25  ;;  %v401_v47 = vmul.f32 0.2, %v369_v32 }
  0x1a   : > { %v424_v42 = vpack.c.bf16 %v409_v40, %v408_v39  ;;  %v412_v43 = vsel %vm380_vm3, %v364_v28, %v396_v36  ;;  %v413_v44 = vsel %vm381_vm4, %v365_v30, %v397_v37  ;;  %v372_v48 = vadd.f32 %v1042_v3, %v352_v23 }
  0x1b   : > { %v426_v46 = vpack.c.bf16 %v413_v44, %v412_v43  ;;  %v373_v49 = vadd.f32 %v1042_v3, %v353_v24  ;;  %v416_v50 = vsel %vm384_vm5, %v368_v31, %v400_v45  ;;  %v342_v51 = vmul.f32 %v1036_v1, %v826_v29 }
  0x1c   : > { %v343_v52 = vmul.f32 %v1036_v1, %v827_v33  ;;  %496 = vmatpush.bf16.msra.mxu0 %v816_v38  ;;  %915 = vmatpush.bf16.msra.mxu1 %v816_v38  ;;  %v417_v55 = vsel %vm385_vm6, %v369_v32, %v401_v47  ;;  %vm388_vm7 = vcmp.ge.f32.partialorder %v372_v48, 0.0  ;;  %v404_v56 = vmul.f32 0.2, %v372_v48 }
  0x1d   : > { %vm389_vm8 = vcmp.ge.f32.partialorder %v373_v49, 0.0  ;;  %916 = vmatpush.bf16.msra.mxu2 %v816_v38  ;;  %v428_v57 = vpack.c.bf16 %v417_v55, %v416_v50  ;;  %917 = vmatpush.bf16.msra.mxu3 %v816_v38  ;;  %v405_v58 = vmul.f32 0.2, %v373_v49  ;;  %v362_v59 = vadd.f32 %v1042_v3, %v342_v51 }
  0x1e   : > { %v363_v60 = vadd.f32 %v1042_v3, %v343_v52  ;;  %v420_v61 = vsel %vm388_vm7, %v372_v48, %v404_v56  ;;  %v346_v63 = vmul.f32 %v1036_v1, %v834_v53  ;;  %v842_v0 = vunpack.c.l.bf16 %v896_v54 }
  0x1f   : > { %803 = vmatmul.msk.bf16.vlgmr.msra.gmra.mxu0 %vm464_vm0, %v424_v42  ;;  %805 = vmatmul.msk.bf16.vlgmr.msra.gmra.mxu1 %vm464_vm0, %v426_v46  ;;  %v421_v4 = vsel %vm389_vm8, %v373_v49, %v405_v58  ;;  %v347_v6 = vmul.f32 %v1036_v1, %v835_v62  ;;  %v843_v8 = vunpack.c.h.bf16 %v896_v54  ;;  %v850_v10 = vunpack.c.l.bf16 %v898_v2 }
  0x20   : > { %807 = vmatmul.msk.bf16.vlgmr.msra.gmra.mxu2 %vm464_vm0, %v428_v57  ;;  %v430_v5 = vpack.c.bf16 %v421_v4, %v420_v61  ;;  %v366_v7 = vadd.f32 %v1042_v3, %v346_v63  ;;  %v350_v9 = vmul.f32 %v1036_v1, %v842_v0  ;;  %vm378_vm9 = vcmp.ge.f32.partialorder %v362_v59, 0.0 }
  0x21   : > { %v394_v11 = vmul.f32 0.2, %v362_v59  ;;  %v395_v12 = vmul.f32 0.2, %v363_v60  ;;  %v367_v13 = vadd.f32 %v1042_v3, %v347_v6  ;;  %v351_v15 = vmul.f32 %v1036_v1, %v843_v8 }
  0x22   : > { %809 = vmatmul.msk.bf16.vlgmr.msra.gmra.mxu3 %vm464_vm0, %v430_v5  ;;  %v398_v14 = vmul.f32 0.2, %v366_v7  ;;  %v370_v16 = vadd.f32 %v1042_v3, %v350_v9  ;;  %v851_v17 = vunpack.c.h.bf16 %v898_v2  ;;  %vm379_vm10 = vcmp.ge.f32.partialorder %v363_v60, 0.0 }
  0x23   : > { %vm382_vm11 = vcmp.ge.f32.partialorder %v366_v7, 0.0  ;;  %v399_v18 = vmul.f32 0.2, %v367_v13  ;;  %v354_v19 = vmul.f32 %v1036_v1, %v850_v10  ;;  %vm383_vm12 = vcmp.ge.f32.partialorder %v367_v13, 0.0 }
  0x24   : > { %v371_v20 = vadd.f32 %v1042_v3, %v351_v15  ;;  %v402_v21 = vmul.f32 0.2, %v370_v16  ;;  %v355_v22 = vmul.f32 %v1036_v1, %v851_v17  ;;  %v410_v23 = vsel %vm378_vm9, %v362_v59, %v394_v11 }
  0x25   : > { %vm386_vm13 = vcmp.ge.f32.partialorder %v370_v16, 0.0  ;;  %v374_v24 = vadd.f32 %v1042_v3, %v354_v19  ;;  %v411_v25 = vsel %vm379_vm10, %v363_v60, %v395_v12  ;;  %v414_v26 = vsel %vm382_vm11, %v366_v7, %v398_v14 }
  0x26   : > { %vm387_vm14 = vcmp.ge.f32.partialorder %v371_v20, 0.0  ;;  %v403_v27 = vmul.f32 0.2, %v371_v20  ;;  %v415_v28 = vsel %vm383_vm12, %v367_v13, %v399_v18  ;;  %v375_v29 = vadd.f32 %v1042_v3, %v355_v22 }
  0x27   : > { %vm390_vm15 = vcmp.ge.f32.partialorder %v374_v24, 0.0  ;;  %v406_v30 = vmul.f32 0.2, %v374_v24  ;;  %v418_v31 = vsel %vm386_vm13, %v370_v16, %v402_v21  ;;  %v425_v1 = vpack.c.bf16 %v411_v25, %v410_v23 }
  0x28   : > { %v419_v32 = vsel %vm387_vm14, %v371_v20, %v403_v27  ;;  %vm391_vm1 = vcmp.ge.f32.partialorder %v375_v29, 0.0  ;;  %v407_v33 = vmul.f32 0.2, %v375_v29  ;;  %v427_v34 = vpack.c.bf16 %v415_v28, %v414_v26 }
  0x29   : > { %v422_v35 = vsel %vm390_vm15, %v374_v24, %v406_v30  ;;  %v429_v36 = vpack.c.bf16 %v419_v32, %v418_v31 }
  0x2a   : > { %v423_v37 = vsel %vm391_vm1, %v375_v29, %v407_v33 }
  0x2b   : > { %v431_v38 = vpack.c.bf16 %v423_v37, %v422_v35 }
  0x2f   : > { %804 = vmatmul.msk.bf16.gmra.mxu0 %vm464_vm0, %v425_v1  ;;  %806 = vmatmul.msk.bf16.gmra.mxu1 %vm464_vm0, %v427_v34 }
  0x30   : > { %808 = vmatmul.msk.bf16.gmra.mxu2 %vm464_vm0, %v429_v36 }
  0x32   : > { %810 = vmatmul.msk.bf16.gmra.mxu3 %vm464_vm0, %v431_v38 }
  0x9c   : > { %v498_v3 = vpop.f32.mrf.mxu0  ;;  %v508_v39 = vpop.f32.mrf.mxu1 }
  0x9d   : > { %v559_v53 = vmul.f32 %v498_v3, %v498_v3  ;;  %v563_v5 = vmul.f32 %v508_v39, %v508_v39 }
  0xa3   : > { %v518_v40 = vpop.f32.mrf.mxu2 }
  0xa4   : > { %v500_v41 = vpop.f32.mrf.mxu0  ;;  %v510_v42 = vpop.f32.mrf.mxu1  ;;  %v567_v21 = vmul.f32 %v518_v40, %v518_v40 }
  0xa5   : > { %v855_v43 = vpack.c.bf16 %v500_v41, %v498_v3  ;;  %v528_v44 = vpop.f32.mrf.mxu3  ;;  %v865_v45 = vpack.c.bf16 %v510_v42, %v508_v39  ;;  %v560_v52 = vmul.f32 %v500_v41, %v500_v41  ;;  %v538_v54 = vadd.f32 %v500_v41, %v498_v3 }
  0xa6   : > { %v564_v8 = vmul.f32 %v510_v42, %v510_v42  ;;  %v571_v33 = vmul.f32 %v528_v44, %v528_v44 }
  0xa7   : > { %856 = vst [vmem:[%s1101_s11] sm:$0xff] %v855_v43   ;;  %v575_v56 = vadd.f32 %v560_v52, %v559_v53 }
  0xa8   : > { %900 = vst [vmem:[%s1101_s11 + $0x10] sm:$0xff] %v865_v45  }
  0xab   : > { %v520_v46 = vpop.f32.mrf.mxu2 }
  0xac   : > { %v503_v47 = vpop.f32.mrf.mxu0  ;;  %v513_v48 = vpop.f32.mrf.mxu1  ;;  %v875_v49 = vpack.c.bf16 %v520_v46, %v518_v40  ;;  %v568_v24 = vmul.f32 %v520_v46, %v520_v46 }
  0xad   : > { %v530_v50 = vpop.f32.mrf.mxu3  ;;  %v561_v55 = vmul.f32 %v503_v47, %v503_v47  ;;  %v539_v57 = vadd.f32 %v538_v54, %v503_v47  ;;  %v565_v11 = vmul.f32 %v513_v48, %v513_v48 }
  0xae   : > { %902 = vst [vmem:[%s1101_s11 + $0x20] sm:$0xff] %v875_v49   ;;  %v885_v51 = vpack.c.bf16 %v530_v50, %v528_v44  ;;  %v572_v35 = vmul.f32 %v530_v50, %v530_v50 }
  0xaf   : > { %v576_v61 = vadd.f32 %v575_v56, %v561_v55 }
  0xb0   : > { %904 = vst [vmem:[%s1101_s11 + $0x30] sm:$0xff] %v885_v51  }
  0xb3   : > { %v523_v58 = vpop.f32.mrf.mxu2 }
  0xb4   : > { %v505_v59 = vpop.f32.mrf.mxu0  ;;  %v515_v60 = vpop.f32.mrf.mxu1  ;;  %v569_v28 = vmul.f32 %v523_v58, %v523_v58 }
  0xb5   : > { %v540_v62 = vadd.f32 %v539_v57, %v505_v59  ;;  %v562_v63 = vmul.f32 %v505_v59, %v505_v59  ;;  %v860_v0 = vpack.c.bf16 %v505_v59, %v503_v47  ;;  %v533_v2 = vpop.f32.mrf.mxu3  ;;  %v870_v4 = vpack.c.bf16 %v515_v60, %v513_v48 }
  0xb6   : > { %v566_v17 = vmul.f32 %v515_v60, %v515_v60  ;;  %v573_v3 = vmul.f32 %v533_v2, %v533_v2 }
  0xb7   : > { %v541_v6 = vadd.f32 %v540_v62, %v508_v39  ;;  %v577_v7 = vadd.f32 %v576_v61, %v562_v63  ;;  %899 = vst [vmem:[%s1101_s11 + $0x8] sm:$0xff] %v860_v0  }
  0xb8   : > { %901 = vst [vmem:[%s1101_s11 + $0x18] sm:$0xff] %v870_v4  }
  0xb9   : > { %v578_v9 = vadd.f32 %v577_v7, %v563_v5  ;;  %v542_v10 = vadd.f32 %v541_v6, %v510_v42 }
  0xbb   : > { %v543_v12 = vadd.f32 %v542_v10, %v513_v48  ;;  %v579_v13 = vadd.f32 %v578_v9, %v564_v8  ;;  %v525_v14 = vpop.f32.mrf.mxu2  ;;  %v596_v48 = vlaneseq }
  0xbc   : > { %v880_v15 = vpack.c.bf16 %v525_v14, %v523_v58  ;;  %v570_v32 = vmul.f32 %v525_v14, %v525_v14 }
  0xbd   : > { %v544_v16 = vadd.f32 %v543_v12, %v515_v60  ;;  %v580_v18 = vadd.f32 %v579_v13, %v565_v11  ;;  %v535_v19 = vpop.f32.mrf.mxu3  ;;  %v597_v53 = vshrl.u32 %v596_v48, 7 }
  0xbe   : > { %903 = vst [vmem:[%s1101_s11 + $0x28] sm:$0xff] %v880_v15   ;;  %v890_v20 = vpack.c.bf16 %v535_v19, %v533_v2  ;;  %v574_v42 = vmul.f32 %v535_v19, %v535_v19 }
  0xbf   : > { %v545_v22 = vadd.f32 %v544_v16, %v518_v40  ;;  %v581_v23 = vadd.f32 %v580_v18, %v566_v17  ;;  %vm599_vm0 = vcmp.eq.s32.totalorder %v597_v53, 1  ;;  %vm598_vm2 = vcmp.eq.s32.totalorder %v597_v53, 0 }
  0xc0   : > { %905 = vst [vmem:[%s1101_s11 + $0x38] sm:$0xff] %v890_v20  }
  0xc1   : > { %v582_v25 = vadd.f32 %v581_v23, %v567_v21  ;;  %v546_v26 = vadd.f32 %v545_v22, %v520_v46 }
  0xc3   : > { %v547_v27 = vadd.f32 %v546_v26, %v523_v58  ;;  %v583_v29 = vadd.f32 %v582_v25, %v568_v24 }
  0xc5   : > { %v584_v30 = vadd.f32 %v583_v29, %v569_v28  ;;  %v548_v31 = vadd.f32 %v547_v27, %v525_v14 }
  0xc7   : > { %v549_v1 = vadd.f32 %v548_v31, %v528_v44  ;;  %v585_v34 = vadd.f32 %v584_v30, %v570_v32 }
  0xc9   : > { %v586_v36 = vadd.f32 %v585_v34, %v571_v33  ;;  %v550_v37 = vadd.f32 %v549_v1, %v530_v50 }
  0xcb   : > { %v551_v38 = vadd.f32 %v550_v37, %v533_v2  ;;  %v587_v39 = vadd.f32 %v586_v36, %v572_v35 }
  0xcd   : > { %v588_v40 = vadd.f32 %v587_v39, %v573_v3  ;;  %v552_v41 = vadd.f32 %v551_v38, %v535_v19 }
  0xcf   : > { %v553_v43 = vrot.slane %v552_v41, 4  ;;  %v589_v45 = vadd.f32 %v588_v40, %v574_v42 }
  0xd1   : > { %v554_v46 = vadd.f32 %v553_v43, %v552_v41  ;;  %v590_v47 = vrot.slane %v589_v45, 4 }
  0xd3   : > { %v555_v49 = vrot.slane %v554_v46, 2  ;;  %v591_v51 = vadd.f32 %v590_v47, %v589_v45 }
  0xd5   : > { %v556_v52 = vadd.f32 %v555_v49, %v554_v46  ;;  %v592_v44 = vrot.slane %v591_v51, 2 }
  0xd7   : > { %v593_v54 = vadd.f32 %v592_v44, %v591_v51  ;;  %v557_v55 = vrot.slane %v556_v52, 1 }
  0xd9   : > { %v594_v50 = vrot.slane %v593_v54, 1  ;;  %v558_v57 = vadd.f32 %v557_v55, %v556_v52 }
  0xdb   : > { %v595_v56 = vadd.f32 %v594_v50, %v593_v54 }
  0xdd   : > { %v600_v58 = vsel %vm599_vm0, %v595_v56, 0.0 }
  0xde   : > { %v601_v59 = vsel %vm598_vm2, %v558_v57, %v600_v58 }
  0xdf   : > { %602 = vst [vmem:[%s302_s15] sm:$0xff] %v601_v59 }
  0xe0 PF: > { %s16_s20 = sadd.s32 1, %s966_s20   ;;  %s1130_s18 = smov %s962_s19 }
  0xe1   : > { %p13_p5 = scmp.ge.s32.totalorder %s16_s20, 6   ;;  %s1131_s19 = smov %s1133_s21 }
  0xe3   :  { %15 = sbr.rel (!%p13_p5) target bundleno = 2 (0x2), region = 81 }

// kernel: tile.73
= control target key start
LH: loop header
LB: loop body
LE: loop exit
PB: predicated region body
PF: predicated region fallthrough
CT: control target
= control target key end

     0   :  { %s22_s0 = inlined_call_operand.vmem [shape: f32[8], index: 0, kind: input, shape index: {}]   ;;  %s23_s1 = inlined_call_operand.vmem [shape: f32[4,8], index: 1, kind: output, shape index: {}]  }
   0x1   :  { %v4_v0 = vld [vmem:[%s22_s0] ss:$0 sm:$0xff] }
   0x2   :  { %5 = vst [vmem:[%s23_s1] sm:$0xf] %v4_v0 }

// kernel: tile.78
= control target key start
LH: loop header
LB: loop body
LE: loop exit
PB: predicated region body
PF: predicated region fallthrough
CT: control target
= control target key end

     0   :  { %s37_s8 = smov 8   ;;  %s38_s9 = smov 16   ;;  %vm7_vm0 = vcmask 64512   ;;  %vm13_vm1 = vcmask 261312   ;;  %vm19_vm2 = vcmask 195712   ;;  %vm25_vm3 = vcmask 130112   ;;  %s55_s0 = inlined_call_operand.vmem [shape: f32[4,8], index: 0, kind: input, shape index: {}]   ;;  %s56_s1 = inlined_call_operand.vmem [shape: f32[1,32], index: 1, kind: output, shape index: {}]  }
   0x1   :  { %v4_v0 = vld [vmem:[%s55_s0] sm:$0xf]  ;;  %s36_s0 = smov 24  }
   0x2   :  { %5 = vst [vmem:[#allocation1] sm:$0xf] %v4_v0 }
   0x9   :  { %v10_v1 = vld [vmem:[#allocation1 + $0x3] sm:$0x1]   ;;  %v22_v2 = vld [vmem:[#allocation1 + $0x1] sm:$0x1]   ;;  %v16_v3 = vld [vmem:[#allocation1 + $0x2] sm:$0x1]  }
   0xa   :  { %11 = vrot.lane.b32.xlu0 %v10_v1, %s36_s0  ;;  %23 = vrot.lane.b32.xlu1 %v22_v2, %s37_s8  ;;  %v6_v4 = vld [vmem:[#allocation1] sm:$0x1]  }
   0xb   :  { %8 = vst.msk [vmem:[#allocation0] sm:$0x1] %vm7_vm0, %v6_v4  }
  0x12   :  { %17 = vrot.lane.b32.xlu0 %v16_v3, %s38_s9 }
  0x7c   :  { %v12_v5 = vpop.permute.xlu0 %11   ;;  %v24_v6 = vpop.permute.xlu1 %23  }
  0x7d   :  { %14 = vst.msk [vmem:[#allocation0] sm:$0x1] %vm13_vm1, %v12_v5  }
  0x84   :  { %v18_v7 = vpop.permute.xlu0 %17  }
  0x85   :  { %20 = vst.msk [vmem:[#allocation0] sm:$0x1] %vm19_vm2, %v18_v7  }
  0x86   :  { %26 = vst.msk [vmem:[#allocation0] sm:$0x1] %vm25_vm3, %v24_v6  }
  0x8d   :  { %v29_v8 = vld [vmem:[#allocation0] sm:$0x1] }
  0x8e   :  { %32 = vst [vmem:[%s56_s1] sm:$0x1] %v29_v8 }

// kernel: vae_forward.15
= control target key start
LH: loop header
LB: loop body
LE: loop exit
PB: predicated region body
PF: predicated region fallthrough
CT: control target
= control target key end

     0   :  { %s3255_s18 = smov 0   ;;  %s3257_s19 = smov 0   ;;  %s5010_s0 = inlined_call_operand.vmem [shape: bf16[4,512,32], index: 0, kind: input, shape index: {}]   ;;  %s5011_s1 = inlined_call_operand.vmem [shape: f32[1,32], index: 1, kind: input, shape index: {}]   ;;  %s5012_s2 = inlined_call_operand.vmem [shape: f32[1,32], index: 2, kind: input, shape index: {}]   ;;  %s5013_s3 = inlined_call_operand.vmem [shape: bf16[4,32,128], index: 3, kind: input, shape index: {}]   ;;  %s5014_s4 = inlined_call_operand.vmem [shape: f32[1,128], index: 4, kind: input, shape index: {}]   ;;  %s5015_s5 = inlined_call_operand.vmem [shape: bf16[4,512,128], index: 5, kind: output, shape index: {}]  }
   0x1   :  { %s3259_s20 = smov 0  }
   0x2 LB: > { %s27_s21 = sadd.s32 1, %s3219_s19  ;;  %p2506_p0 = scmp.ge.s32.totalorder %s3223_s20, 1  ;;  %s3223_s20 = sphi %s3259_s20, %s15_s20   ;;  %s3219_s19 = sphi %s3257_s19, %s5165_s19   ;;  %s3215_s18 = sphi %s3255_s18, %s5164_s18  }
   0x3   : > { %p29_p1 = scmp.ge.s32.totalorder %s27_s21, 4  ;;  %p218_p2 = scmp.lt.s32.totalorder %s3223_s20, 5 }
   0x5   : > { %s5167_s21 = smov (%p29_p1, %s27_s21), 0  ;;  %p219_p3 = pnand %p2506_p0, %p218_p2 }
   0x6   : > { %p260_p4 = scmp.lt.s32.totalorder (!%p219_p3), %s3215_s18, 3 }
   0x7   : > { %222 = sbr.rel (%p219_p3) target bundleno = 467 (0x1d3), region = 40 }
   0xc   : > { %s5169_s18 = smov (!%p260_p4, %s3215_s18), 3  ;;  %v3290_v0 = vld [vmem:[%s5011_s1] ss:$0 sm:$0xff]  ;;  %vm793_vm0 = vcmask 261120  }
   0xd   : > { %s2555_s22 = sshll.u32 %s5169_s18, 8  ;;  %s2556_s23 = sshll.u32 %s5169_s18, 4  ;;  %v3296_v3 = vld [vmem:[%s5012_s2] ss:$0 sm:$0xff] }
   0xe   : > { %s3282_s26 = scalar_lea.vmem %s5010_s0, %s2555_s22  ;;  %s273_s29 = scalar_lea.vmem %s5013_s3, %s2556_s23 }
   0xf   : > { %v2559_v1 = vld [vmem:[%s273_s29 + $0x8] sm:$0xff]  ;;  %v2561_v2 = vld [vmem:[%s3282_s26] sm:$0xff]   ;;  %s3617_s13 = scalar_lea.vmem %s5015_s5, %s2555_s22 }
  0x10   : > { %v2562_v4 = vunpack.c.l.bf16 %v2561_v2  ;;  %v2563_v5 = vunpack.c.h.bf16 %v2561_v2  ;;  %v2855_v6 = vld [vmem:[%s3282_s26 + $0x40] sm:$0xff]   ;;  %896 = vmatpush.bf16.msra.mxu0 %v2559_v1  ;;  %2910 = vmatpush.bf16.msra.mxu1 %v2559_v1  ;;  %v2848_v18 = vld [vmem:[%s3282_s26 + $0x8] sm:$0xff]  }
  0x11   : > { %v2863_v7 = vld [vmem:[%s3282_s26 + $0x80] sm:$0xff]   ;;  %v2594_v10 = vunpack.c.l.bf16 %v2855_v6  ;;  %v2595_v11 = vunpack.c.h.bf16 %v2855_v6  ;;  %2911 = vmatpush.bf16.msra.mxu2 %v2559_v1  ;;  %2912 = vmatpush.bf16.msra.mxu3 %v2559_v1  ;;  %v2566_v30 = vunpack.c.l.bf16 %v2848_v18  ;;  %v2856_v42 = vld [vmem:[%s3282_s26 + $0x48] sm:$0xff]   ;;  %v2567_v48 = vunpack.c.h.bf16 %v2848_v18 }
  0x12   : > { %v2871_v8 = vld [vmem:[%s3282_s26 + $0xc0] sm:$0xff]   ;;  %v2626_v12 = vunpack.c.l.bf16 %v2863_v7  ;;  %v2627_v13 = vunpack.c.h.bf16 %v2863_v7  ;;  %v417_v14 = vmul.f32 %v3290_v0, %v2562_v4  ;;  %v418_v15 = vmul.f32 %v3290_v0, %v2563_v5  ;;  %v2864_v53 = vld [vmem:[%s3282_s26 + $0x88] sm:$0xff]  }
  0x13   : > { %v2558_v9 = vld [vmem:[%s273_s29] sm:$0xff]  ;;  %v2658_v16 = vunpack.c.l.bf16 %v2871_v8  ;;  %v2659_v17 = vunpack.c.h.bf16 %v2871_v8  ;;  %v433_v19 = vmul.f32 %v3290_v0, %v2594_v10  ;;  %v434_v20 = vmul.f32 %v3290_v0, %v2595_v11  ;;  %v2872_v2 = vld [vmem:[%s3282_s26 + $0xc8] sm:$0xff]  }
  0x14   : > { %v449_v21 = vmul.f32 %v3290_v0, %v2626_v12  ;;  %v450_v22 = vmul.f32 %v3290_v0, %v2627_v13  ;;  %v485_v23 = vadd.f32 %v3296_v3, %v417_v14  ;;  %v486_v24 = vadd.f32 %v3296_v3, %v418_v15  ;;  %897 = vmatpush.bf16.msra.mxu0 %v2558_v9 }
  0x15   : > { %v465_v25 = vmul.f32 %v3290_v0, %v2658_v16  ;;  %v466_v26 = vmul.f32 %v3290_v0, %v2659_v17  ;;  %2913 = vmatpush.bf16.msra.mxu1 %v2558_v9  ;;  %v501_v27 = vadd.f32 %v3296_v3, %v433_v19  ;;  %v502_v28 = vadd.f32 %v3296_v3, %v434_v20  ;;  %v2849_v20 = vld [vmem:[%s3282_s26 + $0x10] sm:$0xff]  }
  0x16   : > { %v517_v29 = vadd.f32 %v3296_v3, %v449_v21  ;;  %2914 = vmatpush.bf16.msra.mxu2 %v2558_v9  ;;  %2915 = vmatpush.bf16.msra.mxu3 %v2558_v9  ;;  %vm549_vm1 = vcmp.ge.f32.partialorder %v485_v23, 0.0  ;;  %vm550_vm2 = vcmp.ge.f32.partialorder %v486_v24, 0.0  ;;  %v613_v31 = vmul.f32 0.2, %v485_v23 }
  0x17   : > { %v614_v32 = vmul.f32 0.2, %v486_v24  ;;  %vm565_vm3 = vcmp.ge.f32.partialorder %v501_v27, 0.0  ;;  %vm566_vm4 = vcmp.ge.f32.partialorder %v502_v28, 0.0  ;;  %v629_v33 = vmul.f32 0.2, %v501_v27 }
  0x18   : > { %v630_v34 = vmul.f32 0.2, %v502_v28  ;;  %v677_v35 = vsel %vm549_vm1, %v485_v23, %v613_v31  ;;  %v518_v37 = vadd.f32 %v3296_v3, %v450_v22  ;;  %vm581_vm5 = vcmp.ge.f32.partialorder %v517_v29, 0.0 }
  0x19   : > { %v678_v36 = vsel %vm550_vm2, %v486_v24, %v614_v32  ;;  %v693_v39 = vsel %vm565_vm3, %v501_v27, %v629_v33  ;;  %v645_v41 = vmul.f32 0.2, %v517_v29  ;;  %v533_v45 = vadd.f32 %v3296_v3, %v465_v25  ;;  %v2857_v24 = vld [vmem:[%s3282_s26 + $0x50] sm:$0xff]  }
  0x1a   : > { %v741_v38 = vpack.c.bf16 %v678_v36, %v677_v35  ;;  %v694_v40 = vsel %vm566_vm4, %v502_v28, %v630_v34  ;;  %vm582_vm6 = vcmp.ge.f32.partialorder %v518_v37, 0.0  ;;  %v646_v44 = vmul.f32 0.2, %v518_v37 }
  0x1b   : > { %v749_v43 = vpack.c.bf16 %v694_v40, %v693_v39  ;;  %v709_v46 = vsel %vm581_vm5, %v517_v29, %v645_v41  ;;  %v534_v47 = vadd.f32 %v3296_v3, %v466_v26  ;;  %v419_v49 = vmul.f32 %v3290_v0, %v2566_v30  ;;  %v2865_v40 = vld [vmem:[%s3282_s26 + $0x90] sm:$0xff]  }
  0x1c   : > { %2521 = vmatmul.msk.bf16.vlgmr.msra.gmra.mxu0 %vm793_vm0, %v741_v38  ;;  %v710_v50 = vsel %vm582_vm6, %v518_v37, %v646_v44  ;;  %vm597_vm7 = vcmp.ge.f32.partialorder %v533_v45, 0.0  ;;  %v661_v51 = vmul.f32 0.2, %v533_v45  ;;  %v2598_v52 = vunpack.c.l.bf16 %v2856_v42 }
  0x1d   : > { %2529 = vmatmul.msk.bf16.vlgmr.msra.gmra.mxu1 %vm793_vm0, %v749_v43  ;;  %v757_v54 = vpack.c.bf16 %v710_v50, %v709_v46  ;;  %vm598_vm8 = vcmp.ge.f32.partialorder %v534_v47, 0.0  ;;  %v662_v55 = vmul.f32 0.2, %v534_v47  ;;  %v420_v56 = vmul.f32 %v3290_v0, %v2567_v48 }
  0x1e   : > { %v725_v57 = vsel %vm597_vm7, %v533_v45, %v661_v51  ;;  %v487_v58 = vadd.f32 %v3296_v3, %v419_v49  ;;  %v2599_v59 = vunpack.c.h.bf16 %v2856_v42  ;;  %v435_v60 = vmul.f32 %v3290_v0, %v2598_v52 }
  0x1f   : > { %2537 = vmatmul.msk.bf16.vlgmr.msra.gmra.mxu2 %vm793_vm0, %v757_v54  ;;  %v726_v61 = vsel %vm598_vm8, %v534_v47, %v662_v55  ;;  %v488_v62 = vadd.f32 %v3296_v3, %v420_v56  ;;  %v2630_v63 = vunpack.c.l.bf16 %v2864_v53  ;;  %v2631_v1 = vunpack.c.h.bf16 %v2864_v53  ;;  %v2873_v54 = vld [vmem:[%s3282_s26 + $0xd0] sm:$0xff]  }
  0x20   : > { %v765_v4 = vpack.c.bf16 %v726_v61, %v725_v57  ;;  %vm551_vm9 = vcmp.ge.f32.partialorder %v487_v58, 0.0  ;;  %v615_v5 = vmul.f32 0.2, %v487_v58  ;;  %v436_v6 = vmul.f32 %v3290_v0, %v2599_v59 }
  0x21   : > { %vm552_vm10 = vcmp.ge.f32.partialorder %v488_v62, 0.0  ;;  %v616_v7 = vmul.f32 0.2, %v488_v62  ;;  %v503_v8 = vadd.f32 %v3296_v3, %v435_v60  ;;  %v451_v9 = vmul.f32 %v3290_v0, %v2630_v63 }
  0x22   : > { %2545 = vmatmul.msk.bf16.vlgmr.msra.gmra.mxu3 %vm793_vm0, %v765_v4  ;;  %v679_v10 = vsel %vm551_vm9, %v487_v58, %v615_v5  ;;  %v504_v11 = vadd.f32 %v3296_v3, %v436_v6  ;;  %v452_v12 = vmul.f32 %v3290_v0, %v2631_v1  ;;  %v2662_v13 = vunpack.c.l.bf16 %v2872_v2  ;;  %v2850_v1 = vld [vmem:[%s3282_s26 + $0x18] sm:$0xff]  }
  0x23   : > { %v680_v14 = vsel %vm552_vm10, %v488_v62, %v616_v7  ;;  %vm567_vm11 = vcmp.ge.f32.partialorder %v503_v8, 0.0  ;;  %v631_v15 = vmul.f32 0.2, %v503_v8  ;;  %v519_v16 = vadd.f32 %v3296_v3, %v451_v9 }
  0x24   : > { %v742_v17 = vpack.c.bf16 %v680_v14, %v679_v10  ;;  %vm568_vm12 = vcmp.ge.f32.partialorder %v504_v11, 0.0  ;;  %v632_v18 = vmul.f32 0.2, %v504_v11  ;;  %v520_v19 = vadd.f32 %v3296_v3, %v452_v12 }
  0x25   : > { %v695_v21 = vsel %vm567_vm11, %v503_v8, %v631_v15  ;;  %vm583_vm13 = vcmp.ge.f32.partialorder %v519_v16, 0.0  ;;  %v647_v22 = vmul.f32 0.2, %v519_v16  ;;  %v2663_v23 = vunpack.c.h.bf16 %v2872_v2  ;;  %v2858_v2 = vld [vmem:[%s3282_s26 + $0x58] sm:$0xff]  }
  0x26   : > { %v696_v25 = vsel %vm568_vm12, %v504_v11, %v632_v18  ;;  %vm584_vm14 = vcmp.ge.f32.partialorder %v520_v19, 0.0  ;;  %v648_v26 = vmul.f32 0.2, %v520_v19  ;;  %v467_v27 = vmul.f32 %v3290_v0, %v2662_v13 }
  0x27   : > { %v750_v28 = vpack.c.bf16 %v696_v25, %v695_v21  ;;  %v711_v29 = vsel %vm583_vm13, %v519_v16, %v647_v22  ;;  %v468_v30 = vmul.f32 %v3290_v0, %v2663_v23  ;;  %v2570_v31 = vunpack.c.l.bf16 %v2849_v20 }
  0x28   : > { %v712_v32 = vsel %vm584_vm14, %v520_v19, %v648_v26  ;;  %v535_v33 = vadd.f32 %v3296_v3, %v467_v27  ;;  %v2571_v34 = vunpack.c.h.bf16 %v2849_v20  ;;  %v2602_v35 = vunpack.c.l.bf16 %v2857_v24 }
  0x29   : > { %v758_v36 = vpack.c.bf16 %v712_v32, %v711_v29  ;;  %v536_v37 = vadd.f32 %v3296_v3, %v468_v30  ;;  %v421_v38 = vmul.f32 %v3290_v0, %v2570_v31  ;;  %v2603_v39 = vunpack.c.h.bf16 %v2857_v24  ;;  %v2866_v31 = vld [vmem:[%s3282_s26 + $0x98] sm:$0xff]  }
  0x2a   : > { %vm599_vm15 = vcmp.ge.f32.partialorder %v535_v33, 0.0  ;;  %v663_v41 = vmul.f32 0.2, %v535_v33  ;;  %v422_v42 = vmul.f32 %v3290_v0, %v2571_v34  ;;  %v437_v43 = vmul.f32 %v3290_v0, %v2602_v35 }
  0x2b   : > { %vm600_vm1 = vcmp.ge.f32.partialorder %v536_v37, 0.0  ;;  %v664_v44 = vmul.f32 0.2, %v536_v37  ;;  %v489_v45 = vadd.f32 %v3296_v3, %v421_v38  ;;  %v438_v46 = vmul.f32 %v3290_v0, %v2603_v39 }
  0x2c   : > { %2522 = vmatmul.msk.bf16.gmra.mxu0 %vm793_vm0, %v742_v17  ;;  %v727_v47 = vsel %vm599_vm15, %v535_v33, %v663_v41  ;;  %v490_v48 = vadd.f32 %v3296_v3, %v422_v42  ;;  %v505_v49 = vadd.f32 %v3296_v3, %v437_v43  ;;  %v2634_v50 = vunpack.c.l.bf16 %v2865_v40  ;;  %v2874_v33 = vld [vmem:[%s3282_s26 + $0xd8] sm:$0xff]  }
  0x2d   : > { %2530 = vmatmul.msk.bf16.gmra.mxu1 %vm793_vm0, %v750_v28  ;;  %v728_v51 = vsel %vm600_vm1, %v536_v37, %v664_v44  ;;  %vm553_vm2 = vcmp.ge.f32.partialorder %v489_v45, 0.0  ;;  %v617_v52 = vmul.f32 0.2, %v489_v45  ;;  %v506_v53 = vadd.f32 %v3296_v3, %v438_v46  ;;  %v2851_v46 = vld [vmem:[%s3282_s26 + $0x20] sm:$0xff]  }
  0x2e   : > { %v766_v55 = vpack.c.bf16 %v728_v51, %v727_v47  ;;  %vm554_vm3 = vcmp.ge.f32.partialorder %v490_v48, 0.0  ;;  %v618_v56 = vmul.f32 0.2, %v490_v48  ;;  %vm569_vm4 = vcmp.ge.f32.partialorder %v505_v49, 0.0 }
  0x2f   : > { %2538 = vmatmul.msk.bf16.gmra.mxu2 %vm793_vm0, %v758_v36  ;;  %v681_v57 = vsel %vm553_vm2, %v489_v45, %v617_v52  ;;  %vm570_vm5 = vcmp.ge.f32.partialorder %v506_v53, 0.0  ;;  %v633_v58 = vmul.f32 0.2, %v505_v49  ;;  %v634_v59 = vmul.f32 0.2, %v506_v53 }
  0x30   : > { %v682_v60 = vsel %vm554_vm3, %v490_v48, %v618_v56  ;;  %v2635_v61 = vunpack.c.h.bf16 %v2865_v40  ;;  %v453_v62 = vmul.f32 %v3290_v0, %v2634_v50  ;;  %v2666_v63 = vunpack.c.l.bf16 %v2873_v54 }
  0x31   : > { %v743_v4 = vpack.c.bf16 %v682_v60, %v681_v57  ;;  %v697_v5 = vsel %vm569_vm4, %v505_v49, %v633_v58  ;;  %v2667_v6 = vunpack.c.h.bf16 %v2873_v54  ;;  %v698_v7 = vsel %vm570_vm5, %v506_v53, %v634_v59 }
  0x32   : > { %2546 = vmatmul.msk.bf16.gmra.mxu3 %vm793_vm0, %v766_v55  ;;  %v454_v8 = vmul.f32 %v3290_v0, %v2635_v61  ;;  %v521_v9 = vadd.f32 %v3296_v3, %v453_v62  ;;  %v469_v10 = vmul.f32 %v3290_v0, %v2666_v63  ;;  %v2574_v12 = vunpack.c.l.bf16 %v2850_v1  ;;  %v2859_v61 = vld [vmem:[%s3282_s26 + $0x60] sm:$0xff]  }
  0x33   : > { %v470_v11 = vmul.f32 %v3290_v0, %v2667_v6  ;;  %v2575_v13 = vunpack.c.h.bf16 %v2850_v1  ;;  %v2606_v14 = vunpack.c.l.bf16 %v2858_v2  ;;  %v2607_v21 = vunpack.c.h.bf16 %v2858_v2  ;;  %v2867_v6 = vld [vmem:[%s3282_s26 + $0xa0] sm:$0xff]  }
  0x34   : > { %v522_v15 = vadd.f32 %v3296_v3, %v454_v8  ;;  %vm585_vm6 = vcmp.ge.f32.partialorder %v521_v9, 0.0  ;;  %v649_v16 = vmul.f32 0.2, %v521_v9  ;;  %v537_v17 = vadd.f32 %v3296_v3, %v469_v10 }
  0x35   : > { %v538_v18 = vadd.f32 %v3296_v3, %v470_v11  ;;  %v423_v19 = vmul.f32 %v3290_v0, %v2574_v12  ;;  %v424_v20 = vmul.f32 %v3290_v0, %v2575_v13  ;;  %v751_v22 = vpack.c.bf16 %v698_v7, %v697_v5  ;;  %v2875_v12 = vld [vmem:[%s3282_s26 + $0xe0] sm:$0xff]  }
  0x36   : > { %vm586_vm7 = vcmp.ge.f32.partialorder %v522_v15, 0.0  ;;  %v650_v23 = vmul.f32 0.2, %v522_v15  ;;  %v713_v24 = vsel %vm585_vm6, %v521_v9, %v649_v16  ;;  %vm601_vm8 = vcmp.ge.f32.partialorder %v537_v17, 0.0 }
  0x37   : > { %vm602_vm9 = vcmp.ge.f32.partialorder %v538_v18, 0.0  ;;  %v665_v25 = vmul.f32 0.2, %v537_v17  ;;  %v666_v26 = vmul.f32 0.2, %v538_v18  ;;  %v491_v28 = vadd.f32 %v3296_v3, %v423_v19 }
  0x38   : > { %v714_v27 = vsel %vm586_vm7, %v522_v15, %v650_v23  ;;  %v439_v29 = vmul.f32 %v3290_v0, %v2606_v14  ;;  %v440_v30 = vmul.f32 %v3290_v0, %v2607_v21  ;;  %v492_v32 = vadd.f32 %v3296_v3, %v424_v20 }
  0x39   : > { %v759_v34 = vpack.c.bf16 %v714_v27, %v713_v24  ;;  %v729_v35 = vsel %vm601_vm8, %v537_v17, %v665_v25  ;;  %v730_v36 = vsel %vm602_vm9, %v538_v18, %v666_v26  ;;  %v2638_v39 = vunpack.c.l.bf16 %v2866_v31 }
  0x3a   : > { %v507_v37 = vadd.f32 %v3296_v3, %v439_v29  ;;  %v508_v38 = vadd.f32 %v3296_v3, %v440_v30  ;;  %v2639_v40 = vunpack.c.h.bf16 %v2866_v31  ;;  %vm555_vm10 = vcmp.ge.f32.partialorder %v491_v28, 0.0 }
  0x3b   : > { %v2670_v41 = vunpack.c.l.bf16 %v2874_v33  ;;  %v2671_v42 = vunpack.c.h.bf16 %v2874_v33  ;;  %v767_v43 = vpack.c.bf16 %v730_v36, %v729_v35  ;;  %vm556_vm11 = vcmp.ge.f32.partialorder %v492_v32, 0.0 }
  0x3c   : > { %2523 = vmatmul.msk.bf16.gmra.mxu0 %vm793_vm0, %v743_v4  ;;  %v619_v44 = vmul.f32 0.2, %v491_v28  ;;  %v620_v45 = vmul.f32 0.2, %v492_v32  ;;  %vm571_vm12 = vcmp.ge.f32.partialorder %v507_v37, 0.0  ;;  %v455_v47 = vmul.f32 %v3290_v0, %v2638_v39 }
  0x3d   : > { %2531 = vmatmul.msk.bf16.gmra.mxu1 %vm793_vm0, %v751_v22  ;;  %v456_v48 = vmul.f32 %v3290_v0, %v2639_v40  ;;  %v471_v49 = vmul.f32 %v3290_v0, %v2670_v41  ;;  %vm572_vm13 = vcmp.ge.f32.partialorder %v508_v38, 0.0  ;;  %v635_v50 = vmul.f32 0.2, %v507_v37  ;;  %v2860_v41 = vld [vmem:[%s3282_s26 + $0x68] sm:$0xff]  }
  0x3e   : > { %v636_v51 = vmul.f32 0.2, %v508_v38  ;;  %v472_v52 = vmul.f32 %v3290_v0, %v2671_v42  ;;  %v523_v53 = vadd.f32 %v3296_v3, %v455_v47  ;;  %v2578_v55 = vunpack.c.l.bf16 %v2851_v46 }
  0x3f   : > { %2539 = vmatmul.msk.bf16.gmra.mxu2 %vm793_vm0, %v759_v34  ;;  %v524_v54 = vadd.f32 %v3296_v3, %v456_v48  ;;  %v2579_v56 = vunpack.c.h.bf16 %v2851_v46  ;;  %v683_v57 = vsel %vm555_vm10, %v491_v28, %v619_v44  ;;  %v684_v58 = vsel %vm556_vm11, %v492_v32, %v620_v45 }
  0x40   : > { %v539_v59 = vadd.f32 %v3296_v3, %v471_v49  ;;  %v540_v60 = vadd.f32 %v3296_v3, %v472_v52  ;;  %v699_v62 = vsel %vm571_vm12, %v507_v37, %v635_v50  ;;  %v700_v63 = vsel %vm572_vm13, %v508_v38, %v636_v51  ;;  %v2852_v38 = vld [vmem:[%s3282_s26 + $0x28] sm:$0xff]  }
  0x41   : > { %v651_v1 = vmul.f32 0.2, %v523_v53  ;;  %v652_v2 = vmul.f32 0.2, %v524_v54  ;;  %vm587_vm14 = vcmp.ge.f32.partialorder %v523_v53, 0.0  ;;  %vm588_vm15 = vcmp.ge.f32.partialorder %v524_v54, 0.0 }
  0x42   : > { %2547 = vmatmul.msk.bf16.gmra.mxu3 %vm793_vm0, %v767_v43  ;;  %v425_v4 = vmul.f32 %v3290_v0, %v2578_v55  ;;  %v426_v5 = vmul.f32 %v3290_v0, %v2579_v56  ;;  %v744_v7 = vpack.c.bf16 %v684_v58, %v683_v57  ;;  %v2610_v8 = vunpack.c.l.bf16 %v2859_v61  ;;  %v2868_v51 = vld [vmem:[%s3282_s26 + $0xa8] sm:$0xff]  }
  0x43   : > { %v752_v9 = vpack.c.bf16 %v700_v63, %v699_v62  ;;  %vm603_vm1 = vcmp.ge.f32.partialorder %v539_v59, 0.0  ;;  %v667_v10 = vmul.f32 0.2, %v539_v59  ;;  %v668_v11 = vmul.f32 0.2, %v540_v60  ;;  %v2876_v57 = vld [vmem:[%s3282_s26 + $0xe8] sm:$0xff]  }
  0x44   : > { %v715_v13 = vsel %vm587_vm14, %v523_v53, %v651_v1  ;;  %v716_v14 = vsel %vm588_vm15, %v524_v54, %v652_v2  ;;  %v2611_v15 = vunpack.c.h.bf16 %v2859_v61  ;;  %v2642_v16 = vunpack.c.l.bf16 %v2867_v6 }
  0x45   : > { %vm604_vm2 = vcmp.ge.f32.partialorder %v540_v60, 0.0  ;;  %v493_v17 = vadd.f32 %v3296_v3, %v425_v4  ;;  %v494_v18 = vadd.f32 %v3296_v3, %v426_v5  ;;  %v2643_v19 = vunpack.c.h.bf16 %v2867_v6 }
  0x46   : > { %v441_v20 = vmul.f32 %v3290_v0, %v2610_v8  ;;  %v442_v21 = vmul.f32 %v3290_v0, %v2611_v15  ;;  %v2674_v22 = vunpack.c.l.bf16 %v2875_v12  ;;  %v760_v23 = vpack.c.bf16 %v716_v14, %v715_v13 }
  0x47   : > { %v2675_v24 = vunpack.c.h.bf16 %v2875_v12  ;;  %v731_v25 = vsel %vm603_vm1, %v539_v59, %v667_v10  ;;  %v732_v26 = vsel %vm604_vm2, %v540_v60, %v668_v11  ;;  %v457_v27 = vmul.f32 %v3290_v0, %v2642_v16 }
  0x48   : > { %v458_v28 = vmul.f32 %v3290_v0, %v2643_v19  ;;  %vm557_vm3 = vcmp.ge.f32.partialorder %v493_v17, 0.0  ;;  %v621_v29 = vmul.f32 0.2, %v493_v17  ;;  %v622_v30 = vmul.f32 0.2, %v494_v18  ;;  %v2853_v19 = vld [vmem:[%s3282_s26 + $0x30] sm:$0xff]  }
  0x49   : > { %vm558_vm4 = vcmp.ge.f32.partialorder %v494_v18, 0.0  ;;  %v509_v31 = vadd.f32 %v3296_v3, %v441_v20  ;;  %v510_v32 = vadd.f32 %v3296_v3, %v442_v21  ;;  %v473_v33 = vmul.f32 %v3290_v0, %v2674_v22 }
  0x4a   : > { %v768_v34 = vpack.c.bf16 %v732_v26, %v731_v25  ;;  %v474_v35 = vmul.f32 %v3290_v0, %v2675_v24  ;;  %v525_v36 = vadd.f32 %v3296_v3, %v457_v27  ;;  %v526_v37 = vadd.f32 %v3296_v3, %v458_v28  ;;  %v2861_v24 = vld [vmem:[%s3282_s26 + $0x70] sm:$0xff]  }
  0x4b   : > { %v685_v39 = vsel %vm557_vm3, %v493_v17, %v621_v29  ;;  %v686_v40 = vsel %vm558_vm4, %v494_v18, %v622_v30  ;;  %vm573_vm5 = vcmp.ge.f32.partialorder %v509_v31, 0.0  ;;  %v637_v42 = vmul.f32 0.2, %v509_v31 }
  0x4c   : > { %2524 = vmatmul.msk.bf16.gmra.mxu0 %vm793_vm0, %v744_v7  ;;  %v638_v43 = vmul.f32 0.2, %v510_v32  ;;  %v541_v44 = vadd.f32 %v3296_v3, %v473_v33  ;;  %vm574_vm6 = vcmp.ge.f32.partialorder %v510_v32, 0.0  ;;  %v542_v45 = vadd.f32 %v3296_v3, %v474_v35 }
  0x4d   : > { %2532 = vmatmul.msk.bf16.gmra.mxu1 %vm793_vm0, %v752_v9  ;;  %v2582_v46 = vunpack.c.l.bf16 %v2852_v38  ;;  %v2583_v47 = vunpack.c.h.bf16 %v2852_v38  ;;  %v653_v48 = vmul.f32 0.2, %v525_v36  ;;  %v654_v49 = vmul.f32 0.2, %v526_v37 }
  0x4e   : > { %v2614_v50 = vunpack.c.l.bf16 %v2860_v41  ;;  %v745_v52 = vpack.c.bf16 %v686_v40, %v685_v39  ;;  %vm589_vm7 = vcmp.ge.f32.partialorder %v525_v36, 0.0  ;;  %vm590_vm8 = vcmp.ge.f32.partialorder %v526_v37, 0.0 }
  0x4f   : > { %2540 = vmatmul.msk.bf16.gmra.mxu2 %vm793_vm0, %v760_v23  ;;  %v2615_v53 = vunpack.c.h.bf16 %v2860_v41  ;;  %v701_v54 = vsel %vm573_vm5, %v509_v31, %v637_v42  ;;  %v702_v55 = vsel %vm574_vm6, %v510_v32, %v638_v43  ;;  %vm605_vm9 = vcmp.ge.f32.partialorder %v541_v44, 0.0 }
  0x50   : > { %v669_v56 = vmul.f32 0.2, %v541_v44  ;;  %v670_v58 = vmul.f32 0.2, %v542_v45  ;;  %v427_v59 = vmul.f32 %v3290_v0, %v2582_v46  ;;  %v428_v60 = vmul.f32 %v3290_v0, %v2583_v47 }
  0x51   : > { %v2646_v61 = vunpack.c.l.bf16 %v2868_v51  ;;  %v717_v62 = vsel %vm589_vm7, %v525_v36, %v653_v48  ;;  %v718_v63 = vsel %vm590_vm8, %v526_v37, %v654_v49  ;;  %v443_v1 = vmul.f32 %v3290_v0, %v2614_v50  ;;  %v2869_v36 = vld [vmem:[%s3282_s26 + $0xb0] sm:$0xff]  }
  0x52   : > { %2548 = vmatmul.msk.bf16.gmra.mxu3 %vm793_vm0, %v768_v34  ;;  %v2647_v2 = vunpack.c.h.bf16 %v2868_v51  ;;  %v753_v4 = vpack.c.bf16 %v702_v55, %v701_v54  ;;  %vm606_vm10 = vcmp.ge.f32.partialorder %v542_v45, 0.0  ;;  %v444_v5 = vmul.f32 %v3290_v0, %v2615_v53  ;;  %v2877_v51 = vld [vmem:[%s3282_s26 + $0xf0] sm:$0xff]  }
  0x53   : > { %v2678_v6 = vunpack.c.l.bf16 %v2876_v57  ;;  %v2679_v7 = vunpack.c.h.bf16 %v2876_v57  ;;  %v761_v8 = vpack.c.bf16 %v718_v63, %v717_v62  ;;  %v495_v9 = vadd.f32 %v3296_v3, %v427_v59 }
  0x54   : > { %v496_v10 = vadd.f32 %v3296_v3, %v428_v60  ;;  %v459_v11 = vmul.f32 %v3290_v0, %v2646_v61  ;;  %v733_v12 = vsel %vm605_vm9, %v541_v44, %v669_v56  ;;  %v734_v13 = vsel %vm606_vm10, %v542_v45, %v670_v58 }
  0x55   : > { %v511_v14 = vadd.f32 %v3296_v3, %v443_v1  ;;  %v460_v15 = vmul.f32 %v3290_v0, %v2647_v2  ;;  %v512_v16 = vadd.f32 %v3296_v3, %v444_v5  ;;  %v475_v17 = vmul.f32 %v3290_v0, %v2678_v6 }
  0x56   : > { %v476_v18 = vmul.f32 %v3290_v0, %v2679_v7  ;;  %v769_v20 = vpack.c.bf16 %v734_v13, %v733_v12  ;;  %v623_v21 = vmul.f32 0.2, %v495_v9  ;;  %v624_v22 = vmul.f32 0.2, %v496_v10  ;;  %v2854_v12 = vld [vmem:[%s3282_s26 + $0x38] sm:$0xff]  }
  0x57   : > { %v527_v23 = vadd.f32 %v3296_v3, %v459_v11  ;;  %vm559_vm11 = vcmp.ge.f32.partialorder %v495_v9, 0.0  ;;  %vm560_vm12 = vcmp.ge.f32.partialorder %v496_v10, 0.0  ;;  %v639_v25 = vmul.f32 0.2, %v511_v14 }
  0x58   : > { %v528_v26 = vadd.f32 %v3296_v3, %v460_v15  ;;  %vm575_vm13 = vcmp.ge.f32.partialorder %v511_v14, 0.0  ;;  %v640_v27 = vmul.f32 0.2, %v512_v16  ;;  %v543_v28 = vadd.f32 %v3296_v3, %v475_v17 }
  0x59   : > { %v2586_v29 = vunpack.c.l.bf16 %v2853_v19  ;;  %vm576_vm14 = vcmp.ge.f32.partialorder %v512_v16, 0.0  ;;  %v544_v30 = vadd.f32 %v3296_v3, %v476_v18  ;;  %v2587_v31 = vunpack.c.h.bf16 %v2853_v19 }
  0x5a   : > { %v2618_v32 = vunpack.c.l.bf16 %v2861_v24  ;;  %v687_v33 = vsel %vm559_vm11, %v495_v9, %v623_v21  ;;  %v688_v34 = vsel %vm560_vm12, %v496_v10, %v624_v22  ;;  %vm591_vm15 = vcmp.ge.f32.partialorder %v527_v23, 0.0 }
  0x5b   : > { %v2619_v35 = vunpack.c.h.bf16 %v2861_v24  ;;  %v703_v37 = vsel %vm575_vm13, %v511_v14, %v639_v25  ;;  %vm592_vm1 = vcmp.ge.f32.partialorder %v528_v26, 0.0  ;;  %v655_v38 = vmul.f32 0.2, %v527_v23  ;;  %v2862_v14 = vld [vmem:[%s3282_s26 + $0x78] sm:$0xff]  }
  0x5c   : > { %2525 = vmatmul.msk.bf16.gmra.mxu0 %vm793_vm0, %v745_v52  ;;  %v656_v39 = vmul.f32 0.2, %v528_v26  ;;  %v704_v40 = vsel %vm576_vm14, %v512_v16, %v640_v27  ;;  %vm607_vm2 = vcmp.ge.f32.partialorder %v543_v28, 0.0  ;;  %v671_v41 = vmul.f32 0.2, %v543_v28 }
  0x5d   : > { %2533 = vmatmul.msk.bf16.gmra.mxu1 %vm793_vm0, %v753_v4  ;;  %v429_v42 = vmul.f32 %v3290_v0, %v2586_v29  ;;  %v672_v43 = vmul.f32 0.2, %v544_v30  ;;  %v430_v44 = vmul.f32 %v3290_v0, %v2587_v31  ;;  %v445_v45 = vmul.f32 %v3290_v0, %v2618_v32 }
  0x5e   : > { %v2650_v46 = vunpack.c.l.bf16 %v2869_v36  ;;  %vm608_vm3 = vcmp.ge.f32.partialorder %v544_v30, 0.0  ;;  %v446_v47 = vmul.f32 %v3290_v0, %v2619_v35  ;;  %v2651_v48 = vunpack.c.h.bf16 %v2869_v36 }
  0x5f   : > { %2541 = vmatmul.msk.bf16.gmra.mxu2 %vm793_vm0, %v761_v8  ;;  %v746_v49 = vpack.c.bf16 %v688_v34, %v687_v33  ;;  %v754_v50 = vpack.c.bf16 %v704_v40, %v703_v37  ;;  %v719_v52 = vsel %vm591_vm15, %v527_v23, %v655_v38  ;;  %v720_v53 = vsel %vm592_vm1, %v528_v26, %v656_v39  ;;  %v2878_v39 = vld [vmem:[%s3282_s26 + $0xf8] sm:$0xff]  }
  0x60   : > { %v735_v54 = vsel %vm607_vm2, %v543_v28, %v671_v41  ;;  %v497_v55 = vadd.f32 %v3296_v3, %v429_v42  ;;  %v736_v56 = vsel %vm608_vm3, %v544_v30, %v672_v43  ;;  %v498_v57 = vadd.f32 %v3296_v3, %v430_v44  ;;  %v2870_v28 = vld [vmem:[%s3282_s26 + $0xb8] sm:$0xff]  }
  0x61   : > { %v513_v58 = vadd.f32 %v3296_v3, %v445_v45  ;;  %v461_v59 = vmul.f32 %v3290_v0, %v2650_v46  ;;  %v514_v60 = vadd.f32 %v3296_v3, %v446_v47  ;;  %v462_v61 = vmul.f32 %v3290_v0, %v2651_v48 }
  0x62   : > { %2549 = vmatmul.msk.bf16.gmra.mxu3 %vm793_vm0, %v769_v20  ;;  %v2682_v62 = vunpack.c.l.bf16 %v2877_v51  ;;  %v762_v63 = vpack.c.bf16 %v720_v53, %v719_v52  ;;  %v2683_v1 = vunpack.c.h.bf16 %v2877_v51  ;;  %v770_v2 = vpack.c.bf16 %v736_v56, %v735_v54 }
  0x63   : > { %vm561_vm4 = vcmp.ge.f32.partialorder %v497_v55, 0.0  ;;  %v625_v4 = vmul.f32 0.2, %v497_v55  ;;  %vm562_vm5 = vcmp.ge.f32.partialorder %v498_v57, 0.0  ;;  %v626_v5 = vmul.f32 0.2, %v498_v57 }
  0x64   : > { %v641_v6 = vmul.f32 0.2, %v513_v58  ;;  %v529_v7 = vadd.f32 %v3296_v3, %v461_v59  ;;  %vm577_vm6 = vcmp.ge.f32.partialorder %v513_v58, 0.0  ;;  %v642_v8 = vmul.f32 0.2, %v514_v60 }
  0x65   : > { %v530_v9 = vadd.f32 %v3296_v3, %v462_v61  ;;  %v477_v10 = vmul.f32 %v3290_v0, %v2682_v62  ;;  %vm578_vm7 = vcmp.ge.f32.partialorder %v514_v60, 0.0  ;;  %v478_v11 = vmul.f32 %v3290_v0, %v2683_v1 }
  0x66   : > { %v689_v13 = vsel %vm561_vm4, %v497_v55, %v625_v4  ;;  %v690_v15 = vsel %vm562_vm5, %v498_v57, %v626_v5  ;;  %v705_v16 = vsel %vm577_vm6, %v513_v58, %v641_v6  ;;  %vm593_vm8 = vcmp.ge.f32.partialorder %v529_v7, 0.0 }
  0x67   : > { %v657_v17 = vmul.f32 0.2, %v529_v7  ;;  %v706_v18 = vsel %vm578_vm7, %v514_v60, %v642_v8  ;;  %v658_v19 = vmul.f32 0.2, %v530_v9  ;;  %v545_v20 = vadd.f32 %v3296_v3, %v477_v10 }
  0x68   : > { %v2590_v21 = vunpack.c.l.bf16 %v2854_v12  ;;  %vm594_vm9 = vcmp.ge.f32.partialorder %v530_v9, 0.0  ;;  %v546_v22 = vadd.f32 %v3296_v3, %v478_v11  ;;  %v2591_v23 = vunpack.c.h.bf16 %v2854_v12 }
  0x69   : > { %v2622_v24 = vunpack.c.l.bf16 %v2862_v14  ;;  %v2623_v25 = vunpack.c.h.bf16 %v2862_v14  ;;  %v747_v26 = vpack.c.bf16 %v690_v15, %v689_v13  ;;  %v755_v27 = vpack.c.bf16 %v706_v18, %v705_v16  ;;  %v3500_v14 = vld [vmem:[%s5014_s4] ss:$0 sm:$0xff] }
  0x6a   : > { %v721_v29 = vsel %vm593_vm8, %v529_v7, %v657_v17  ;;  %v722_v30 = vsel %vm594_vm9, %v530_v9, %v658_v19  ;;  %v673_v31 = vmul.f32 0.2, %v545_v20  ;;  %v431_v32 = vmul.f32 %v3290_v0, %v2590_v21 }
  0x6b   : > { %vm609_vm10 = vcmp.ge.f32.partialorder %v545_v20, 0.0  ;;  %v674_v33 = vmul.f32 0.2, %v546_v22  ;;  %v432_v34 = vmul.f32 %v3290_v0, %v2591_v23  ;;  %v447_v35 = vmul.f32 %v3290_v0, %v2622_v24 }
  0x6c   : > { %2526 = vmatmul.msk.bf16.gmra.mxu0 %vm793_vm0, %v746_v49  ;;  %vm610_vm11 = vcmp.ge.f32.partialorder %v546_v22, 0.0  ;;  %v448_v36 = vmul.f32 %v3290_v0, %v2623_v25  ;;  %v2654_v37 = vunpack.c.l.bf16 %v2870_v28  ;;  %v2655_v38 = vunpack.c.h.bf16 %v2870_v28 }
  0x6d   : > { %2534 = vmatmul.msk.bf16.gmra.mxu1 %vm793_vm0, %v754_v50  ;;  %v763_v40 = vpack.c.bf16 %v722_v30, %v721_v29  ;;  %v737_v41 = vsel %vm609_vm10, %v545_v20, %v673_v31  ;;  %v499_v42 = vadd.f32 %v3296_v3, %v431_v32  ;;  %v738_v43 = vsel %vm610_vm11, %v546_v22, %v674_v33 }
  0x6e   : > { %v500_v44 = vadd.f32 %v3296_v3, %v432_v34  ;;  %v2686_v45 = vunpack.c.l.bf16 %v2878_v39  ;;  %v2687_v46 = vunpack.c.h.bf16 %v2878_v39  ;;  %v515_v47 = vadd.f32 %v3296_v3, %v447_v35 }
  0x6f   : > { %2542 = vmatmul.msk.bf16.gmra.mxu2 %vm793_vm0, %v762_v63  ;;  %v516_v48 = vadd.f32 %v3296_v3, %v448_v36  ;;  %v463_v49 = vmul.f32 %v3290_v0, %v2654_v37  ;;  %v464_v50 = vmul.f32 %v3290_v0, %v2655_v38  ;;  %v771_v51 = vpack.c.bf16 %v738_v43, %v737_v41 }
  0x70   : > { %vm563_vm12 = vcmp.ge.f32.partialorder %v499_v42, 0.0  ;;  %v627_v52 = vmul.f32 0.2, %v499_v42  ;;  %vm564_vm13 = vcmp.ge.f32.partialorder %v500_v44, 0.0  ;;  %v628_v53 = vmul.f32 0.2, %v500_v44 }
  0x71   : > { %v479_v54 = vmul.f32 %v3290_v0, %v2686_v45  ;;  %v480_v55 = vmul.f32 %v3290_v0, %v2687_v46  ;;  %v643_v56 = vmul.f32 0.2, %v515_v47  ;;  %v644_v57 = vmul.f32 0.2, %v516_v48 }
  0x72   : > { %2550 = vmatmul.msk.bf16.gmra.mxu3 %vm793_vm0, %v770_v2  ;;  %v531_v58 = vadd.f32 %v3296_v3, %v463_v49  ;;  %v532_v59 = vadd.f32 %v3296_v3, %v464_v50  ;;  %vm579_vm14 = vcmp.ge.f32.partialorder %v515_v47, 0.0  ;;  %vm580_vm15 = vcmp.ge.f32.partialorder %v516_v48, 0.0 }
  0x73   : > { %v691_v60 = vsel %vm563_vm12, %v499_v42, %v627_v52  ;;  %v692_v61 = vsel %vm564_vm13, %v500_v44, %v628_v53  ;;  %v547_v62 = vadd.f32 %v3296_v3, %v479_v54  ;;  %v548_v63 = vadd.f32 %v3296_v3, %v480_v55 }
  0x74   : > { %v707_v1 = vsel %vm579_vm14, %v515_v47, %v643_v56  ;;  %v708_v2 = vsel %vm580_vm15, %v516_v48, %v644_v57  ;;  %v659_v4 = vmul.f32 0.2, %v531_v58  ;;  %v660_v0 = vmul.f32 0.2, %v532_v59 }
  0x75   : > { %vm595_vm1 = vcmp.ge.f32.partialorder %v531_v58, 0.0  ;;  %vm596_vm2 = vcmp.ge.f32.partialorder %v532_v59, 0.0  ;;  %v748_v5 = vpack.c.bf16 %v692_v61, %v691_v60  ;;  %v756_v6 = vpack.c.bf16 %v708_v2, %v707_v1 }
  0x76   : > { %v675_v7 = vmul.f32 0.2, %v547_v62  ;;  %v676_v8 = vmul.f32 0.2, %v548_v63  ;;  %v723_v9 = vsel %vm595_vm1, %v531_v58, %v659_v4  ;;  %v724_v10 = vsel %vm596_vm2, %v532_v59, %v660_v0 }
  0x77   : > { %vm611_vm3 = vcmp.ge.f32.partialorder %v547_v62, 0.0  ;;  %vm612_vm4 = vcmp.ge.f32.partialorder %v548_v63, 0.0  ;;  %v764_v11 = vpack.c.bf16 %v724_v10, %v723_v9 }
  0x78   : > { %v739_v12 = vsel %vm611_vm3, %v547_v62, %v675_v7  ;;  %v740_v13 = vsel %vm612_vm4, %v548_v63, %v676_v8 }
  0x79   : > { %v772_v3 = vpack.c.bf16 %v740_v13, %v739_v12 }
  0x7c   : > { %2527 = vmatmul.msk.bf16.gmra.mxu0 %vm793_vm0, %v747_v26 }
  0x7d   : > { %2535 = vmatmul.msk.bf16.gmra.mxu1 %vm793_vm0, %v755_v27 }
  0x7f   : > { %2543 = vmatmul.msk.bf16.gmra.mxu2 %vm793_vm0, %v763_v40 }
  0x82   : > { %2551 = vmatmul.msk.bf16.gmra.mxu3 %vm793_vm0, %v771_v51 }
  0x8c   : > { %2528 = vmatmul.msk.bf16.gmra.mxu0 %vm793_vm0, %v748_v5 }
  0x8d   : > { %2536 = vmatmul.msk.bf16.gmra.mxu1 %vm793_vm0, %v756_v6 }
  0x8f   : > { %2544 = vmatmul.msk.bf16.gmra.mxu2 %vm793_vm0, %v764_v11 }
  0x92   : > { %2552 = vmatmul.msk.bf16.gmra.mxu3 %vm793_vm0, %v772_v3 }
  0x99   : > { %v899_v15 = vpop.f32.mrf.mxu0 }
  0x9a   : > { %v900_v16 = vadd.f32 %v3500_v14, %v899_v15  ;;  %v939_v17 = vpop.f32.mrf.mxu1 }
  0x9b   : > { %v940_v18 = vadd.f32 %v3500_v14, %v939_v17 }
  0x9c   : > { %v1059_v19 = vsub.f32 0.0, %v900_v16 }
  0x9d   : > { %v1075_v20 = vsub.f32 0.0, %v940_v18 }
  0x9e   : > { %v1123_v21 = vmul.f32 1.442695, %v1059_v19 }
  0x9f   : > { %v1155_v22 = vmul.f32 1.442695, %v1075_v20 }
  0xa0   : > { %2943 = vpow2.f32 %v1123_v21 }
  0xa1   : > { %2945 = vpow2.f32 %v1155_v22  ;;  %v901_v23 = vpop.f32.mrf.mxu0 }
  0xa2   : > { %v902_v24 = vadd.f32 %v3500_v14, %v901_v23  ;;  %v941_v25 = vpop.f32.mrf.mxu1  ;;  %v979_v26 = vpop.f32.mrf.mxu2 }
  0xa3   : > { %v942_v27 = vadd.f32 %v3500_v14, %v941_v25  ;;  %v980_v28 = vadd.f32 %v3500_v14, %v979_v26 }
  0xa4   : > { %v1060_v29 = vsub.f32 0.0, %v902_v24 }
  0xa5   : > { %v1076_v30 = vsub.f32 0.0, %v942_v27  ;;  %v1091_v32 = vsub.f32 0.0, %v980_v28  ;;  %v1019_v33 = vpop.f32.mrf.mxu3 }
  0xa6   : > { %v2944_v31 = vpop.eup %2943  ;;  %v1125_v34 = vmul.f32 1.442695, %v1060_v29  ;;  %v1020_v37 = vadd.f32 %v3500_v14, %v1019_v33 }
  0xa7   : > { %v2946_v35 = vpop.eup %2945  ;;  %v3507_v36 = vadd.f32 1.0, %v2944_v31  ;;  %v1187_v39 = vmul.f32 1.442695, %v1091_v32  ;;  %v1157_v40 = vmul.f32 1.442695, %v1076_v30 }
  0xa8   : > { %v3510_v38 = vadd.f32 1.0, %v2946_v35  ;;  %2947 = vpow2.f32 %v1125_v34  ;;  %v1107_v41 = vsub.f32 0.0, %v1020_v37 }
  0xa9   : > { %2949 = vrcp.f32 %v3507_v36  ;;  %v1324_v57 = vand.u32 2147483647, %v3507_v36  ;;  %v904_v59 = vpop.f32.mrf.mxu0  ;;  %v1326_v61 = vand.u32 2147483648, %v3507_v36  ;;  %vm1320_vm0 = vweird.f32 %v3507_v36 }
  0xaa   : > { %2951 = vrcp.f32 %v3510_v38  ;;  %v981_v42 = vpop.f32.mrf.mxu2  ;;  %v1219_v44 = vmul.f32 1.442695, %v1107_v41  ;;  %v944_v60 = vpop.f32.mrf.mxu1  ;;  %v1566_v2 = vand.u32 2147483648, %v3510_v38  ;;  %v905_v5 = vadd.f32 %v3500_v14, %v904_v59 }
  0xab   : > { %2953 = vpow2.f32 %v1187_v39  ;;  %v982_v43 = vadd.f32 %v3500_v14, %v981_v42  ;;  %v3538_v6 = vadd.f32 %v3500_v14, %v944_v60  ;;  %vm1560_vm5 = vweird.f32 %v3510_v38 }
  0xac   : > { %2955 = vpow2.f32 %v1157_v40  ;;  %vm3545_vm6 = vcmp.eq.f32.partialorder %v1324_v57, 8.507059e+37  ;;  %v1327_v10 = vor.u32 1.1754944e-38, %v1326_v61  ;;  %v1564_v12 = vand.u32 2147483647, %v3510_v38 }
  0xad   : > { %v1092_v46 = vsub.f32 0.0, %v982_v43  ;;  %2957 = vpow2.f32 %v1219_v44  ;;  %v1021_v54 = vpop.f32.mrf.mxu3  ;;  %v1567_v3 = vor.u32 1.1754944e-38, %v1566_v2  ;;  %v1061_v18 = vsub.f32 0.0, %v905_v5 }
  0xae   : > { %v2948_v45 = vpop.eup %2947  ;;  %v1022_v4 = vadd.f32 %v3500_v14, %v1021_v54  ;;  %v1077_v19 = vsub.f32 0.0, %v3538_v6  ;;  %vm3569_vm11 = vcmp.eq.f32.partialorder %v1564_v12, 8.507059e+37 }
  0xaf   : > { %v3515_v47 = vpop.eup %2949  ;;  %v3517_v48 = vadd.f32 1.0, %v2948_v45  ;;  %v1189_v51 = vmul.f32 1.442695, %v1092_v46 }
  0xb0   : > { %v3519_v49 = vpop.eup %2951  ;;  %v1316_v50 = vmul.f32 %v3515_v47, %v3507_v36  ;;  %vm1321_vm7 = vweird.f32 %v3515_v47  ;;  %v1108_v15 = vsub.f32 0.0, %v1022_v4  ;;  %v1127_v36 = vmul.f32 1.442695, %v1061_v18 }
  0xb1   : > { %v2954_v52 = vpop.eup %2953  ;;  %v1556_v53 = vmul.f32 %v3519_v49, %v3510_v38  ;;  %2959 = vrcp.f32 %v3517_v48  ;;  %vm1561_vm8 = vweird.f32 %v3519_v49  ;;  %vm1335_vm9 = vweird.f32 %v3517_v48  ;;  %vm3564_vm10 = vmor %vm1320_vm0, %vm1321_vm7 }
  0xb2   : > { %v2956_v55 = vpop.eup %2955  ;;  %v1317_v56 = vsub.f32 1.0, %v1316_v50  ;;  %v3527_v58 = vadd.f32 1.0, %v2954_v52  ;;  %2961 = vpow2.f32 %v1189_v51  ;;  %v1339_v21 = vand.u32 2147483647, %v3517_v48  ;;  %vm3596_vm14 = vmor %vm1560_vm5, %vm1561_vm8  ;;  %v984_v51 = vpop.f32.mrf.mxu2 }
  0xb3   : > { %v1557_v62 = vsub.f32 1.0, %v1556_v53  ;;  %v3530_v63 = vadd.f32 1.0, %v2956_v55  ;;  %v2958_v0 = vpop.eup %2957  ;;  %v1341_v22 = vand.u32 2147483648, %v3517_v48  ;;  %v1221_v32 = vmul.f32 1.442695, %v1108_v15 }
  0xb4   : > { %v1318_v1 = vmul.f32 %v3515_v47, %v1317_v56  ;;  %2963 = vrcp.f32 %v3527_v58  ;;  %v3542_v7 = vadd.f32 1.0, %v2958_v0  ;;  %v1806_v27 = vand.u32 2147483648, %v3527_v58 }
  0xb5   : > { %2965 = vrcp.f32 %v3530_v63  ;;  %v1558_v11 = vmul.f32 %v3519_v49, %v1557_v62  ;;  %v1804_v37 = vand.u32 2147483647, %v3527_v58  ;;  %vm3583_vm13 = vcmp.eq.f32.partialorder %v1339_v21, 8.507059e+37  ;;  %v1024_v54 = vpop.f32.mrf.mxu3  ;;  %v906_v21 = vpop.f32.mrf.mxu0 }
  0xb6   : > { %v1319_v13 = vadd.f32 %v3515_v47, %v1318_v1  ;;  %2967 = vrcp.f32 %v3542_v7  ;;  %v1342_v40 = vor.u32 1.1754944e-38, %v1341_v22  ;;  %v3600_v44 = vor.u32 1.1754944e-38, %v1806_v27  ;;  %v946_v22 = vpop.f32.mrf.mxu1 }
  0xb7   : > { %v2960_v8 = vpop.eup %2959  ;;  %v1559_v24 = vadd.f32 %v3519_v49, %v1558_v11  ;;  %v1579_v46 = vand.u32 2147483647, %v3530_v63  ;;  %vm1800_vm15 = vweird.f32 %v3527_v58  ;;  %v1581_v50 = vand.u32 2147483648, %v3530_v63 }
  0xb8   : > { %v2962_v16 = vpop.eup %2961  ;;  %v1331_v17 = vmul.f32 %v2960_v8, %v3517_v48  ;;  %v1323_v30 = vsel %vm3564_vm10, %v3515_v47, %v1319_v13  ;;  %vm1336_vm12 = vweird.f32 %v2960_v8  ;;  %v1159_v56 = vmul.f32 1.442695, %v1077_v19 }
  0xb9   : > { %v3579_v31 = vadd.f32 1.0, %v2962_v16  ;;  %v1328_v42 = vsel %vm3545_vm6, %v1327_v10, %v1323_v30  ;;  %v1563_v47 = vsel %vm3596_vm14, %v3519_v49, %v1559_v24  ;;  %vm1337_vm1 = vmor %vm1335_vm9, %vm1336_vm12  ;;  %v2044_v57 = vand.u32 2147483647, %v3542_v7 }
  0xba   : > { %v3556_v20 = vpop.eup %2963  ;;  %v1332_v28 = vsub.f32 1.0, %v1331_v17  ;;  %vm1575_vm3 = vweird.f32 %v3530_v63  ;;  %v985_v60 = vadd.f32 %v3500_v14, %v984_v51  ;;  %v1568_v62 = vsel %vm3569_vm11, %v1567_v3, %v1563_v47 }
  0xbb   : > { %v1796_v26 = vmul.f32 %v3556_v20, %v3527_v58  ;;  %v2966_v29 = vpop.eup %2965  ;;  %2969 = vrcp.f32 %v3579_v31  ;;  %v1025_v2 = vadd.f32 %v3500_v14, %v1024_v54  ;;  %vm3629_vm4 = vcmp.eq.f32.partialorder %v1804_v37, 8.507059e+37 }
  0xbc   : > { %v1333_v34 = vmul.f32 %v2960_v8, %v1332_v28  ;;  %v1571_v35 = vmul.f32 %v2966_v29, %v3530_v63  ;;  %v3588_v41 = vpop.eup %2967  ;;  %2971 = vpow2.f32 %v1221_v32  ;;  %vm1576_vm2 = vweird.f32 %v2966_v29 }
  0xbd   : > { %v1797_v33 = vsub.f32 1.0, %v1796_v26  ;;  %2973 = vpow2.f32 %v1127_v36  ;;  %v2036_v48 = vmul.f32 %v3588_v41, %v3542_v7  ;;  %vm1577_vm0 = vmor %vm1575_vm3, %vm1576_vm2  ;;  %vm1580_vm5 = vcmp.eq.f32.partialorder %v1579_v46, 8.507059e+37  ;;  %v1026_v4 = vpop.f32.mrf.mxu3  ;;  %v909_v23 = vpop.f32.mrf.mxu0 }
  0xbe   : > { %v1334_v45 = vadd.f32 %v2960_v8, %v1333_v34  ;;  %v1572_v38 = vsub.f32 1.0, %v1571_v35  ;;  %2975 = vpow2.f32 %v1159_v56  ;;  %v1582_v0 = vor.u32 1.1754944e-38, %v1581_v50  ;;  %v986_v35 = vpop.f32.mrf.mxu2 }
  0xbf   : > { %v1798_v52 = vmul.f32 %v3556_v20, %v1797_v33  ;;  %v1093_v5 = vsub.f32 0.0, %v985_v60  ;;  %vm1801_vm6 = vweird.f32 %v3556_v20  ;;  %v2037_v9 = vsub.f32 1.0, %v2036_v48 }
  0xc0   : > { %v1338_v53 = vsel %vm1337_vm1, %v2960_v8, %v1334_v45  ;;  %v1573_v55 = vmul.f32 %v2966_v29, %v1572_v38  ;;  %v1821_v3 = vand.u32 2147483648, %v3579_v31  ;;  %v1109_v19 = vsub.f32 0.0, %v1025_v2  ;;  %vm3645_vm7 = vmor %vm1800_vm15, %vm1801_vm6 }
  0xc1   : > { %v1343_v49 = vsel %vm3583_vm13, %v1342_v40, %v1338_v53  ;;  %v2970_v61 = vpop.eup %2969  ;;  %v1799_v8 = vadd.f32 %v3556_v20, %v1798_v52  ;;  %v1191_v18 = vmul.f32 1.442695, %v1093_v5  ;;  %v1819_v25 = vand.u32 2147483647, %v3579_v31 }
  0xc2   : > { %v2691_v59 = vpack.c.bf16 %v1343_v49, %v1328_v42  ;;  %v1574_v1 = vadd.f32 %v2966_v29, %v1573_v55  ;;  %v1811_v63 = vmul.f32 %v2970_v61, %v3579_v31  ;;  %v2972_v6 = vpop.eup %2971  ;;  %vm1816_vm8 = vweird.f32 %v2970_v61 }
  0xc3   : > { %v2974_v11 = vpop.eup %2973  ;;  %v3639_v15 = vadd.f32 1.0, %v2972_v6  ;;  %v1803_v27 = vsel %vm3645_vm7, %v3556_v20, %v1799_v8  ;;  %v2038_v28 = vmul.f32 %v3588_v41, %v2037_v9  ;;  %vm1815_vm9 = vweird.f32 %v3579_v31 }
  0xc4   : > { %2692 = vst [vmem:[%s3617_s13] sm:$0xff] %v2691_v59   ;;  %v1578_v10 = vsel %vm1577_vm0, %v2966_v29, %v1574_v1  ;;  %v1812_v13 = vsub.f32 1.0, %v1811_v63  ;;  %v3641_v17 = vadd.f32 1.0, %v2974_v11  ;;  %v2976_v26 = vpop.eup %2975  ;;  %v907_v30 = vadd.f32 %v3500_v14, %v906_v21  ;;  %vm1817_vm10 = vmor %vm1815_vm9, %vm1816_vm8 }
  0xc5   : > { %v1583_v12 = vsel %vm1580_vm5, %v1582_v0, %v1578_v10  ;;  %2977 = vrcp.f32 %v3639_v15  ;;  %v3658_v29 = vadd.f32 1.0, %v2976_v26  ;;  %v947_v32 = vadd.f32 %v3500_v14, %v946_v22 }
  0xc6   : > { %v2731_v16 = vpack.c.bf16 %v1583_v12, %v1568_v62  ;;  %v1813_v24 = vmul.f32 %v2970_v61, %v1812_v13  ;;  %2979 = vrcp.f32 %v3641_v17  ;;  %v2046_v33 = vand.u32 2147483648, %v3542_v7 }
  0xc7   : > { %v1822_v34 = vor.u32 1.1754944e-38, %v1821_v3  ;;  %2981 = vpow2.f32 %v1191_v18  ;;  %v1223_v20 = vmul.f32 1.442695, %v1109_v19  ;;  %vm2041_vm11 = vweird.f32 %v3588_v41 }
  0xc8   : > { %2886 = vst [vmem:[%s3617_s13 + $0x40] sm:$0xff] %v2731_v16   ;;  %v1814_v58 = vadd.f32 %v2970_v61, %v1813_v24  ;;  %vm1820_vm12 = vcmp.eq.f32.partialorder %v1819_v25, 8.507059e+37  ;;  %2983 = vrcp.f32 %v3658_v29  ;;  %v1808_v31 = vsel %vm3629_vm4, %v3600_v44, %v1803_v27  ;;  %v949_v24 = vpop.f32.mrf.mxu1 }
  0xc9   : > { %v2039_v37 = vadd.f32 %v3588_v41, %v2038_v28  ;;  %2985 = vpow2.f32 %v1223_v20  ;;  %v1062_v43 = vsub.f32 0.0, %v907_v30  ;;  %v1078_v45 = vsub.f32 0.0, %v947_v32 }
  0xca   : > { %v1818_v36 = vsel %vm1817_vm10, %v2970_v61, %v1814_v58  ;;  %v987_v46 = vadd.f32 %v3500_v14, %v986_v35  ;;  %vm2040_vm13 = vweird.f32 %v3542_v7  ;;  %vm3675_vm14 = vcmp.eq.f32.partialorder %v2044_v57, 8.507059e+37 }
  0xcb   : > { %v1823_v39 = vsel %vm1820_vm12, %v1822_v34, %v1818_v36  ;;  %v2978_v40 = vpop.eup %2977  ;;  %vm3682_vm15 = vmor %vm2040_vm13, %vm2041_vm11  ;;  %v2047_v51 = vor.u32 1.1754944e-38, %v2046_v33  ;;  %v1129_v53 = vmul.f32 1.442695, %v1062_v43  ;;  %v1161_v54 = vmul.f32 1.442695, %v1078_v45  ;;  %v911_v33 = vpop.f32.mrf.mxu0 }
  0xcc   : > { %v2771_v42 = vpack.c.bf16 %v1823_v39, %v1808_v31  ;;  %v3670_v47 = vpop.eup %2979  ;;  %v2051_v44 = vmul.f32 %v2978_v40, %v3639_v15  ;;  %v2043_v48 = vsel %vm3682_vm15, %v3588_v41, %v2039_v37  ;;  %v2059_v55 = vand.u32 2147483647, %v3639_v15 }
  0xcd   : > { %v1346_v52 = vmul.f32 %v3670_v47, %v3641_v17  ;;  %v2982_v7 = vpop.eup %2981  ;;  %v2061_v56 = vand.u32 2147483648, %v3639_v15  ;;  %2987 = vpow2.f32 %v1129_v53  ;;  %v1094_v61 = vsub.f32 0.0, %v987_v46 }
  0xce   : > { %2894 = vst [vmem:[%s3617_s13 + $0x80] sm:$0xff] %v2771_v42   ;;  %v2052_v49 = vsub.f32 1.0, %v2051_v44  ;;  %v3694_v57 = vpop.eup %2983  ;;  %v3696_v60 = vadd.f32 1.0, %v2982_v7  ;;  %vm2056_vm1 = vweird.f32 %v2978_v40  ;;  %2989 = vpow2.f32 %v1161_v54 }
  0xcf   : > { %v1347_v59 = vsub.f32 1.0, %v1346_v52  ;;  %v2986_v62 = vpop.eup %2985  ;;  %v1586_v2 = vmul.f32 %v3694_v57, %v3658_v29  ;;  %v2048_v41 = vsel %vm3675_vm14, %v2047_v51, %v2043_v48  ;;  %vm2055_vm2 = vweird.f32 %v3639_v15 }
  0xd0   : > { %v2053_v1 = vmul.f32 %v2978_v40, %v2052_v49  ;;  %2991 = vrcp.f32 %v3696_v60  ;;  %v3705_v6 = vadd.f32 1.0, %v2986_v62  ;;  %vm2057_vm3 = vmor %vm2055_vm2, %vm2056_vm1  ;;  %v2062_v8 = vor.u32 1.1754944e-38, %v2061_v56 }
  0xd1   : > { %v1348_v63 = vmul.f32 %v3670_v47, %v1347_v59  ;;  %v1587_v5 = vsub.f32 1.0, %v1586_v2  ;;  %vm1350_vm4 = vweird.f32 %v3641_v17  ;;  %v1354_v9 = vand.u32 2147483647, %v3641_v17 }
  0xd2   : > { %v2054_v0 = vadd.f32 %v2978_v40, %v2053_v1  ;;  %v1193_v10 = vmul.f32 1.442695, %v1094_v61  ;;  %vm2060_vm0 = vcmp.eq.f32.partialorder %v2059_v55, 8.507059e+37  ;;  %v1027_v13 = vadd.f32 %v3500_v14, %v1026_v4 }
  0xd3   : > { %v1588_v12 = vmul.f32 %v3694_v57, %v1587_v5  ;;  %v2988_v3 = vpop.eup %2987  ;;  %v1356_v16 = vand.u32 2147483648, %v3641_v17  ;;  %vm1590_vm5 = vweird.f32 %v3658_v29  ;;  %v1594_v18 = vand.u32 2147483647, %v3658_v29 }
  0xd4   : > { %v2058_v11 = vsel %vm2057_vm3, %v2978_v40, %v2054_v0  ;;  %v2990_v19 = vpop.eup %2989  ;;  %v1349_v22 = vadd.f32 %v3670_v47, %v1348_v63  ;;  %vm1351_vm6 = vweird.f32 %v3670_v47  ;;  %2993 = vrcp.f32 %v3705_v6 }
  0xd5   : > { %v2063_v15 = vsel %vm2060_vm0, %v2062_v8, %v2058_v11  ;;  %v1596_v26 = vand.u32 2147483648, %v3658_v29  ;;  %v3720_v27 = vadd.f32 1.0, %v2988_v3  ;;  %v3722_v28 = vadd.f32 1.0, %v2990_v19  ;;  %vm3730_vm8 = vmor %vm1350_vm4, %vm1351_vm6 }
  0xd6   : > { %v2811_v21 = vpack.c.bf16 %v2063_v15, %v2048_v41  ;;  %v3717_v25 = vpop.eup %2991  ;;  %2995 = vpow2.f32 %v1193_v10  ;;  %v1589_v58 = vadd.f32 %v3694_v57, %v1588_v12  ;;  %vm1591_vm7 = vweird.f32 %v3694_v57 }
  0xd7   : > { %v1836_v30 = vand.u32 2147483648, %v3696_v60  ;;  %v1110_v32 = vsub.f32 0.0, %v1027_v13  ;;  %2997 = vrcp.f32 %v3720_v27  ;;  %v910_v34 = vadd.f32 %v3500_v14, %v909_v23  ;;  %vm3745_vm10 = vmor %vm1590_vm5, %vm1591_vm7 }
  0xd8   : > { %2902 = vst [vmem:[%s3617_s13 + $0xc0] sm:$0xff] %v2811_v21   ;;  %v950_v20 = vadd.f32 %v3500_v14, %v949_v24  ;;  %v1353_v35 = vsel %vm3730_vm8, %v3670_v47, %v1349_v22  ;;  %vm1355_vm9 = vcmp.eq.f32.partialorder %v1354_v9, 8.507059e+37  ;;  %v1826_v36 = vmul.f32 %v3717_v25, %v3696_v60  ;;  %v989_v47 = vpop.f32.mrf.mxu2 }
  0xd9   : > { %2999 = vrcp.f32 %v3722_v28  ;;  %v1357_v17 = vor.u32 1.1754944e-38, %v1356_v16  ;;  %vm3749_vm11 = vcmp.eq.f32.partialorder %v1594_v18, 8.507059e+37  ;;  %v1597_v39 = vor.u32 1.1754944e-38, %v1596_v26  ;;  %v1029_v18 = vpop.f32.mrf.mxu3 }
  0xda   : > { %v1834_v40 = vand.u32 2147483647, %v3696_v60  ;;  %v3754_v42 = vpop.eup %2993  ;;  %v1593_v43 = vsel %vm3745_vm10, %v3694_v57, %v1589_v58  ;;  %v3759_v45 = vor.u32 1.1754944e-38, %v1836_v30  ;;  %v2074_v29 = vand.u32 2147483647, %v3705_v6 }
  0xdb   : > { %v1225_v46 = vmul.f32 1.442695, %v1110_v32  ;;  %v3762_v44 = vsel %vm1355_vm9, %v1357_v17, %v1353_v35  ;;  %v1369_v50 = vand.u32 2147483647, %v3720_v27  ;;  %v1063_v51 = vsub.f32 0.0, %v910_v34  ;;  %v951_v34 = vpop.f32.mrf.mxu1 }
  0xdc   : > { %v2996_v38 = vpop.eup %2995  ;;  %v1079_v52 = vsub.f32 0.0, %v950_v20  ;;  %v1827_v53 = vsub.f32 1.0, %v1826_v36  ;;  %v2076_v54 = vand.u32 2147483648, %v3705_v6  ;;  %v3770_v49 = vsel %vm3749_vm11, %v1597_v39, %v1593_v43 }
  0xdd   : > { %v3766_v7 = vadd.f32 1.0, %v2996_v38  ;;  %3001 = vpow2.f32 %v1225_v46  ;;  %v2998_v48 = vpop.eup %2997  ;;  %v2066_v55 = vmul.f32 %v3754_v42, %v3705_v6  ;;  %v1131_v56 = vmul.f32 1.442695, %v1063_v51 }
  0xde   : > { %v990_v57 = vadd.f32 %v3500_v14, %v989_v47  ;;  %vm1831_vm12 = vweird.f32 %v3717_v25  ;;  %v1361_v61 = vmul.f32 %v2998_v48, %v3720_v27  ;;  %vm1365_vm13 = vweird.f32 %v3720_v27 }
  0xdf   : > { %v3000_v59 = vpop.eup %2999  ;;  %v1371_v62 = vand.u32 2147483648, %v3720_v27  ;;  %3003 = vrcp.f32 %v3766_v7  ;;  %vm3780_vm14 = vcmp.eq.f32.partialorder %v1369_v50, 8.507059e+37  ;;  %vm1605_vm15 = vweird.f32 %v3722_v28 }
  0xe0   : > { %v1601_v2 = vmul.f32 %v3000_v59, %v3722_v28  ;;  %v1163_v41 = vmul.f32 1.442695, %v1079_v52  ;;  %v1828_v4 = vmul.f32 %v3717_v25, %v1827_v53  ;;  %vm1830_vm1 = vweird.f32 %v3696_v60 }
  0xe1   : > { %v1362_v0 = vsub.f32 1.0, %v1361_v61  ;;  %v1609_v63 = vand.u32 2147483647, %v3722_v28  ;;  %v1611_v5 = vand.u32 2147483648, %v3722_v28  ;;  %v2067_v8 = vsub.f32 1.0, %v2066_v55  ;;  %vm3825_vm8 = vmor %vm1830_vm1, %vm1831_vm12 }
  0xe2   : > { %v1602_v9 = vsub.f32 1.0, %v1601_v2  ;;  %3005 = vpow2.f32 %v1131_v56  ;;  %v1095_v10 = vsub.f32 0.0, %v990_v57  ;;  %vm1366_vm2 = vweird.f32 %v2998_v48  ;;  %v991_v2 = vpop.f32.mrf.mxu2 }
  0xe3   : > { %v3002_v11 = vpop.eup %3001  ;;  %v1363_v12 = vmul.f32 %v2998_v48, %v1362_v0  ;;  %v1372_v13 = vor.u32 1.1754944e-38, %v1371_v62  ;;  %vm1606_vm3 = vweird.f32 %v3000_v59  ;;  %3007 = vpow2.f32 %v1163_v41  ;;  %vm1367_vm6 = vmor %vm1365_vm13, %vm1366_vm2 }
  0xe4   : > { %v1603_v3 = vmul.f32 %v3000_v59, %v1602_v9  ;;  %v3790_v15 = vadd.f32 1.0, %v3002_v11  ;;  %v1195_v16 = vmul.f32 1.442695, %v1095_v10  ;;  %v1829_v21 = vadd.f32 %v3717_v25, %v1828_v4  ;;  %vm1607_vm7 = vmor %vm1605_vm15, %vm1606_vm3 }
  0xe5   : > { %v3004_v19 = vpop.eup %3003  ;;  %vm3793_vm4 = vcmp.eq.f32.partialorder %v1834_v40, 8.507059e+37  ;;  %vm2070_vm0 = vweird.f32 %v3705_v6  ;;  %v1364_v23 = vadd.f32 %v2998_v48, %v1363_v12  ;;  %vm3798_vm5 = vcmp.eq.f32.partialorder %v1609_v63, 8.507059e+37 }
  0xe6   : > { %v1612_v26 = vor.u32 1.1754944e-38, %v1611_v5  ;;  %v2068_v58 = vmul.f32 %v3754_v42, %v2067_v8  ;;  %v1604_v30 = vadd.f32 %v3000_v59, %v1603_v3  ;;  %v1841_v32 = vmul.f32 %v3004_v19, %v3766_v7 }
  0xe7   : > { %3009 = vrcp.f32 %v3790_v15  ;;  %v1368_v20 = vsel %vm1367_vm6, %v2998_v48, %v1364_v23  ;;  %v1849_v35 = vand.u32 2147483647, %v3766_v7  ;;  %v1851_v36 = vand.u32 2147483648, %v3766_v7 }
  0xe8   : > { %v1030_v17 = vadd.f32 %v3500_v14, %v1029_v18  ;;  %v3006_v27 = vpop.eup %3005  ;;  %v1373_v31 = vsel %vm3780_vm14, %v1372_v13, %v1368_v20  ;;  %v1608_v37 = vsel %vm1607_vm7, %v3000_v59, %v1604_v30  ;;  %v1842_v39 = vsub.f32 1.0, %v1841_v32  ;;  %v954_v20 = vpop.f32.mrf.mxu1 }
  0xe9   : > { %3011 = vpow2.f32 %v1195_v16  ;;  %v2696_v40 = vpack.c.bf16 %v1373_v31, %v3762_v44  ;;  %v1613_v28 = vsel %vm3798_vm5, %v1612_v26, %v1608_v37  ;;  %v912_v43 = vadd.f32 %v3500_v14, %v911_v33  ;;  %v3008_v47 = vpop.eup %3007  ;;  %v914_v26 = vpop.f32.mrf.mxu0 }
  0xea   : > { %v952_v46 = vadd.f32 %v3500_v14, %v951_v34  ;;  %v2736_v50 = vpack.c.bf16 %v1613_v28, %v3770_v49  ;;  %v1843_v44 = vmul.f32 %v3004_v19, %v1842_v39  ;;  %vm1846_vm9 = vweird.f32 %v3004_v19  ;;  %v994_v38 = vpop.f32.mrf.mxu2 }
  0xeb   : > { %v3830_v51 = vadd.f32 1.0, %v3006_v27  ;;  %v1833_v52 = vsel %vm3825_vm8, %v3717_v25, %v1829_v21  ;;  %v2069_v53 = vadd.f32 %v3754_v42, %v2068_v58  ;;  %vm2071_vm10 = vweird.f32 %v3754_v42  ;;  %2879 = vst [vmem:[%s3617_s13 + $0x8] sm:$0xff] %v2696_v40   ;;  %v1031_v21 = vpop.f32.mrf.mxu3 }
  0xec   : > { %v3838_v60 = vadd.f32 1.0, %v3008_v47  ;;  %2887 = vst [vmem:[%s3617_s13 + $0x48] sm:$0xff] %v2736_v50   ;;  %v1844_v55 = vadd.f32 %v3004_v19, %v1843_v44  ;;  %vm1845_vm11 = vweird.f32 %v3766_v7  ;;  %v1111_v49 = vsub.f32 0.0, %v1030_v17  ;;  %vm3852_vm13 = vmor %vm2070_vm0, %vm2071_vm10 }
  0xed   : > { %v3010_v48 = vpop.eup %3009  ;;  %3013 = vrcp.f32 %v3830_v51  ;;  %vm1847_vm12 = vmor %vm1845_vm11, %vm1846_vm9  ;;  %v1852_v56 = vor.u32 1.1754944e-38, %v1851_v36  ;;  %v1064_v25 = vsub.f32 0.0, %v912_v43  ;;  %v1838_v61 = vsel %vm3793_vm4, %v3759_v45, %v1833_v52 }
  0xee   : > { %v2081_v57 = vmul.f32 %v3010_v48, %v3790_v15  ;;  %3015 = vrcp.f32 %v3838_v60  ;;  %v1848_v62 = vsel %vm1847_vm12, %v3004_v19, %v1844_v55  ;;  %vm1850_vm14 = vcmp.eq.f32.partialorder %v1849_v35, 8.507059e+37 }
  0xef   : > { %v3012_v59 = vpop.eup %3011  ;;  %v1080_v1 = vsub.f32 0.0, %v952_v46  ;;  %v2073_v41 = vsel %vm3852_vm13, %v3754_v42, %v2069_v53  ;;  %v1853_v4 = vsel %vm1850_vm14, %v1852_v56, %v1848_v62  ;;  %v2089_v45 = vand.u32 2147483647, %v3790_v15 }
  0xf0   : > { %v2082_v0 = vsub.f32 1.0, %v2081_v57  ;;  %v2776_v63 = vpack.c.bf16 %v1853_v4, %v1838_v61  ;;  %v2091_v5 = vand.u32 2147483648, %v3790_v15  ;;  %v3861_v8 = vadd.f32 1.0, %v3012_v59 }
  0xf1   : > { %v1227_v9 = vmul.f32 1.442695, %v1111_v49  ;;  %vm2086_vm15 = vweird.f32 %v3010_v48  ;;  %v1133_v11 = vmul.f32 1.442695, %v1064_v25  ;;  %v992_v12 = vadd.f32 %v3500_v14, %v991_v2 }
  0xf2   : > { %v2083_v10 = vmul.f32 %v3010_v48, %v2082_v0  ;;  %vm2075_vm1 = vcmp.eq.f32.partialorder %v2074_v29, 8.507059e+37  ;;  %v2077_v42 = vor.u32 1.1754944e-38, %v2076_v54  ;;  %2895 = vst [vmem:[%s3617_s13 + $0x88] sm:$0xff] %v2776_v63   ;;  %3017 = vrcp.f32 %v3861_v8 }
  0xf3   : > { %v3864_v13 = vpop.eup %3013  ;;  %v1165_v3 = vmul.f32 1.442695, %v1080_v1  ;;  %vm2085_vm2 = vweird.f32 %v3790_v15  ;;  %3019 = vpow2.f32 %v1227_v9  ;;  %vm2090_vm4 = vcmp.eq.f32.partialorder %v2089_v45, 8.507059e+37 }
  0xf4   : > { %v3872_v16 = vpop.eup %3015  ;;  %v2084_v18 = vadd.f32 %v3010_v48, %v2083_v10  ;;  %v1376_v19 = vmul.f32 %v3864_v13, %v3830_v51  ;;  %v2078_v22 = vsel %vm2075_vm1, %v2077_v42, %v2073_v41  ;;  %vm2087_vm3 = vmor %vm2085_vm2, %vm2086_vm15  ;;  %v2092_v6 = vor.u32 1.1754944e-38, %v2091_v5 }
  0xf5   : > { %v1616_v29 = vmul.f32 %v3872_v16, %v3838_v60  ;;  %3021 = vpow2.f32 %v1133_v11  ;;  %v1096_v24 = vsub.f32 0.0, %v992_v12  ;;  %v1032_v30 = vadd.f32 %v3500_v14, %v1031_v21 }
  0xf6   : > { %v2088_v54 = vsel %vm2087_vm3, %v3010_v48, %v2084_v18  ;;  %v1377_v23 = vsub.f32 1.0, %v1376_v19  ;;  %3023 = vpow2.f32 %v1165_v3  ;;  %vm1380_vm0 = vweird.f32 %v3830_v51 }
  0xf7   : > { %v2093_v15 = vsel %vm2090_vm4, %v2092_v6, %v2088_v54  ;;  %v1617_v58 = vsub.f32 1.0, %v1616_v29  ;;  %v1197_v34 = vmul.f32 1.442695, %v1096_v24  ;;  %v1384_v36 = vand.u32 2147483647, %v3830_v51  ;;  %v1034_v54 = vpop.f32.mrf.mxu3 }
  0xf8   : > { %v2816_v32 = vpack.c.bf16 %v2093_v15, %v2078_v22  ;;  %v1378_v33 = vmul.f32 %v3864_v13, %v1377_v23  ;;  %v3883_v35 = vpop.eup %3017  ;;  %v1112_v27 = vsub.f32 0.0, %v1032_v30  ;;  %v915_v31 = vadd.f32 %v3500_v14, %v914_v26 }
  0xf9   : > { %v1618_v17 = vmul.f32 %v3872_v16, %v1617_v58  ;;  %v3020_v37 = vpop.eup %3019  ;;  %v1386_v39 = vand.u32 2147483648, %v3830_v51  ;;  %vm1620_vm5 = vweird.f32 %v3838_v60  ;;  %v1624_v40 = vand.u32 2147483647, %v3838_v60 }
  0xfa   : > { %2903 = vst [vmem:[%s3617_s13 + $0xc8] sm:$0xff] %v2816_v32   ;;  %v1856_v28 = vmul.f32 %v3883_v35, %v3861_v8  ;;  %v3894_v43 = vadd.f32 1.0, %v3020_v37  ;;  %3025 = vpow2.f32 %v1197_v34  ;;  %v1229_v46 = vmul.f32 1.442695, %v1112_v27 }
  0xfb   : > { %v955_v47 = vadd.f32 %v3500_v14, %v954_v20  ;;  %v3022_v50 = vpop.eup %3021  ;;  %v1379_v44 = vadd.f32 %v3864_v13, %v1378_v33  ;;  %vm1381_vm6 = vweird.f32 %v3864_v13  ;;  %v1626_v52 = vand.u32 2147483648, %v3838_v60 }
  0xfc   : > { %v1857_v53 = vsub.f32 1.0, %v1856_v28  ;;  %v3024_v48 = vpop.eup %3023  ;;  %v1619_v55 = vadd.f32 %v3872_v16, %v1618_v17  ;;  %vm1621_vm7 = vweird.f32 %v3872_v16  ;;  %3027 = vrcp.f32 %v3894_v43  ;;  %vm3911_vm9 = vmor %vm1380_vm0, %vm1381_vm6 }
  0xfd   : > { %v1065_v49 = vsub.f32 0.0, %v915_v31  ;;  %vm3903_vm8 = vcmp.eq.f32.partialorder %v1384_v36, 8.507059e+37  ;;  %v1387_v57 = vor.u32 1.1754944e-38, %v1386_v39  ;;  %v1866_v25 = vand.u32 2147483648, %v3861_v8  ;;  %vm3924_vm10 = vmor %vm1620_vm5, %vm1621_vm7 }
  0xfe   : > { %v995_v59 = vadd.f32 %v3500_v14, %v994_v38  ;;  %v3915_v7 = vadd.f32 1.0, %v3022_v50  ;;  %v3917_v62 = vadd.f32 1.0, %v3024_v48  ;;  %3029 = vpow2.f32 %v1229_v46 }
  0xff   : > { %v1081_v1 = vsub.f32 0.0, %v955_v47  ;;  %v1383_v2 = vsel %vm3911_vm9, %v3864_v13, %v1379_v44  ;;  %vm3928_vm11 = vcmp.eq.f32.partialorder %v1624_v40, 8.507059e+37  ;;  %v1627_v4 = vor.u32 1.1754944e-38, %v1626_v52  ;;  %v1036_v39 = vpop.f32.mrf.mxu3 }
 0x100   : > { %v1858_v0 = vmul.f32 %v3883_v35, %v1857_v53  ;;  %v3026_v45 = vpop.eup %3025  ;;  %v1623_v63 = vsel %vm3924_vm10, %v3872_v16, %v1619_v55  ;;  %v2106_v5 = vand.u32 2147483648, %v3894_v43  ;;  %3031 = vrcp.f32 %v3915_v7 }
 0x101   : > { %v1135_v60 = vmul.f32 1.442695, %v1065_v49  ;;  %vm1860_vm12 = vweird.f32 %v3861_v8  ;;  %v1864_v9 = vand.u32 2147483647, %v3861_v8  ;;  %v3940_v10 = vor.u32 1.1754944e-38, %v1866_v25 }
 0x102   : > { %3033 = vrcp.f32 %v3917_v62  ;;  %v3943_v11 = vpop.eup %3027  ;;  %v3947_v12 = vsel %vm3903_vm8, %v1387_v57, %v1383_v2  ;;  %vm1861_vm13 = vweird.f32 %v3883_v35  ;;  %v1167_v13 = vmul.f32 1.442695, %v1081_v1 }
 0x103   : > { %v1097_v42 = vsub.f32 0.0, %v995_v59  ;;  %v3952_v3 = vsel %vm3928_vm11, %v1627_v4, %v1623_v63  ;;  %v3955_v16 = vadd.f32 %v3883_v35, %v1858_v0  ;;  %v2096_v18 = vmul.f32 %v3943_v11, %v3894_v43  ;;  %vm3973_vm15 = vmor %vm1860_vm12, %vm1861_vm13 }
 0x104   : > { %v3959_v19 = vadd.f32 1.0, %v3026_v45  ;;  %v3030_v21 = vpop.eup %3029  ;;  %v2104_v22 = vand.u32 2147483647, %v3894_v43  ;;  %v3962_v6 = vor.u32 1.1754944e-38, %v2106_v5  ;;  %v1399_v29 = vand.u32 2147483647, %v3915_v7 }
 0x105   : > { %3035 = vpow2.f32 %v1135_v60  ;;  %vm1395_vm14 = vweird.f32 %v3915_v7  ;;  %v1401_v23 = vand.u32 2147483648, %v3915_v7  ;;  %v1639_v24 = vand.u32 2147483647, %v3917_v62  ;;  %v916_v60 = vpop.f32.mrf.mxu0 }
 0x106   : > { %3037 = vrcp.f32 %v3959_v19  ;;  %v3032_v26 = vpop.eup %3031  ;;  %v2097_v58 = vsub.f32 1.0, %v2096_v18  ;;  %v3977_v30 = vadd.f32 1.0, %v3030_v21  ;;  %v1199_v32 = vmul.f32 1.442695, %v1097_v42 }
 0x107   : > { %3039 = vpow2.f32 %v1167_v13  ;;  %v1863_v34 = vsel %vm3973_vm15, %v3883_v35, %v3955_v16  ;;  %v1391_v20 = vmul.f32 %v3032_v26, %v3915_v7  ;;  %vm1635_vm1 = vweird.f32 %v3917_v62  ;;  %v4073_v16 = vld [vmem:[%s5014_s4] ss:$0 sm:$0xff] }
 0x108   : > { %v3034_v33 = vpop.eup %3033  ;;  %v1035_v8 = vadd.f32 %v3500_v14, %v1034_v54  ;;  %vm3986_vm2 = vcmp.eq.f32.partialorder %v1399_v29, 8.507059e+37  ;;  %v1641_v27 = vand.u32 2147483648, %v3917_v62  ;;  %3041 = vrcp.f32 %v3977_v30 }
 0x109   : > { %v1631_v17 = vmul.f32 %v3034_v33, %v3917_v62  ;;  %vm2100_vm3 = vweird.f32 %v3894_v43  ;;  %vm2101_vm4 = vweird.f32 %v3943_v11  ;;  %v1392_v31 = vsub.f32 1.0, %v1391_v20 }
 0x10a   : > { %v1402_v37 = vor.u32 1.1754944e-38, %v1401_v23  ;;  %vm3995_vm0 = vcmp.eq.f32.partialorder %v1639_v24, 8.507059e+37  ;;  %v2098_v40 = vmul.f32 %v3943_v11, %v2097_v58  ;;  %v1879_v46 = vand.u32 2147483647, %v3959_v19  ;;  %vm4033_vm13 = vmor %vm2100_vm3, %vm2101_vm4 }
 0x10b   : > { %v3036_v14 = vpop.eup %3035  ;;  %v1632_v28 = vsub.f32 1.0, %v1631_v17  ;;  %3043 = vpow2.f32 %v1199_v32  ;;  %v1393_v38 = vmul.f32 %v3032_v26, %v1392_v31  ;;  %vm1396_vm5 = vweird.f32 %v3032_v26 }
 0x10c   : > { %v3038_v47 = vpop.eup %3037  ;;  %v4001_v50 = vadd.f32 1.0, %v3036_v14  ;;  %v1113_v44 = vsub.f32 0.0, %v1035_v8  ;;  %vm4003_vm6 = vcmp.eq.f32.partialorder %v1864_v9, 8.507059e+37  ;;  %vm1636_vm7 = vweird.f32 %v3034_v33  ;;  %vm1397_vm9 = vmor %vm1395_vm14, %vm1396_vm5  ;;  %v996_v8 = vpop.f32.mrf.mxu2 }
 0x10d   : > { %v3040_v52 = vpop.eup %3039  ;;  %v1633_v48 = vmul.f32 %v3034_v33, %v1632_v28  ;;  %v1642_v55 = vor.u32 1.1754944e-38, %v1641_v27  ;;  %v1871_v49 = vmul.f32 %v3038_v47, %v3959_v19  ;;  %v1394_v56 = vadd.f32 %v3032_v26, %v1393_v38  ;;  %vm1637_vm11 = vmor %vm1635_vm1, %vm1636_vm7 }
 0x10e   : > { %vm1875_vm8 = vweird.f32 %v3959_v19  ;;  %v1881_v57 = vand.u32 2147483648, %v3959_v19  ;;  %3045 = vrcp.f32 %v4001_v50  ;;  %v3042_v25 = vpop.eup %3041  ;;  %v2099_v59 = vadd.f32 %v3943_v11, %v2098_v40 }
 0x10f   : > { %v1634_v61 = vadd.f32 %v3034_v33, %v1633_v48  ;;  %v1872_v1 = vsub.f32 1.0, %v1871_v49  ;;  %vm4015_vm10 = vcmp.eq.f32.partialorder %v1879_v46, 8.507059e+37  ;;  %v1398_v41 = vsel %vm1397_vm9, %v3032_v26, %v1394_v56 }
 0x110   : > { %v2111_v51 = vmul.f32 %v3042_v25, %v3977_v30  ;;  %v4022_v4 = vadd.f32 1.0, %v3040_v52  ;;  %v1231_v0 = vmul.f32 1.442695, %v1113_v44  ;;  %v1403_v7 = vsel %vm3986_vm2, %v1402_v37, %v1398_v41 }
 0x111   : > { %v3044_v45 = vpop.eup %3043  ;;  %v1638_v63 = vsel %vm1637_vm11, %v3034_v33, %v1634_v61  ;;  %v1873_v5 = vmul.f32 %v3038_v47, %v1872_v1  ;;  %vm1876_vm12 = vweird.f32 %v3038_v47  ;;  %v2701_v9 = vpack.c.bf16 %v1403_v7, %v3947_v12  ;;  %v956_v33 = vpop.f32.mrf.mxu1 }
 0x112   : > { %v1643_v62 = vsel %vm3995_vm0, %v1642_v55, %v1638_v63  ;;  %v1882_v13 = vor.u32 1.1754944e-38, %v1881_v57  ;;  %v2112_v42 = vsub.f32 1.0, %v2111_v51  ;;  %v2121_v54 = vand.u32 2147483648, %v3977_v30  ;;  %vm1877_vm14 = vmor %vm1875_vm8, %vm1876_vm12 }
 0x113   : > { %v2741_v21 = vpack.c.bf16 %v1643_v62, %v3952_v3  ;;  %v1874_v29 = vadd.f32 %v3038_v47, %v1873_v5  ;;  %3047 = vrcp.f32 %v4022_v4  ;;  %2880 = vst [vmem:[%s3617_s13 + $0x10] sm:$0xff] %v2701_v9   ;;  %vm2116_vm1 = vweird.f32 %v3042_v25 }
 0x114   : > { %v4040_v12 = vpop.eup %3045  ;;  %v2113_v23 = vmul.f32 %v3042_v25, %v2112_v42  ;;  %v2119_v24 = vand.u32 2147483647, %v3977_v30  ;;  %v4046_v26 = vadd.f32 1.0, %v3044_v45  ;;  %v2103_v3 = vsel %vm4033_vm13, %v3943_v11, %v2099_v59 }
 0x115   : > { %2888 = vst [vmem:[%s3617_s13 + $0x50] sm:$0xff] %v2741_v21   ;;  %v1878_v58 = vsel %vm1877_vm14, %v3038_v47, %v1874_v29  ;;  %v1406_v32 = vmul.f32 %v4040_v12, %v4001_v50  ;;  %3049 = vpow2.f32 %v1231_v0  ;;  %v1868_v19 = vsel %vm4003_vm6, %v3940_v10, %v1863_v34  ;;  %v919_v47 = vpop.f32.mrf.mxu0  ;;  %v999_v21 = vpop.f32.mrf.mxu2 }
 0x116   : > { %v1883_v11 = vsel %vm4015_vm10, %v1882_v13, %v1878_v58  ;;  %v2114_v20 = vadd.f32 %v3042_v25, %v2113_v23  ;;  %vm2115_vm2 = vweird.f32 %v3977_v30  ;;  %vm2105_vm3 = vcmp.eq.f32.partialorder %v2104_v22, 8.507059e+37 }
 0x117   : > { %v2781_v36 = vpack.c.bf16 %v1883_v11, %v1868_v19  ;;  %vm2117_vm4 = vmor %vm2115_vm2, %vm2116_vm1  ;;  %v2122_v15 = vor.u32 1.1754944e-38, %v2121_v54  ;;  %3051 = vrcp.f32 %v4046_v26  ;;  %v2108_v35 = vsel %vm2105_vm3, %v3962_v6, %v2103_v3 }
 0x118   : > { %v2118_v10 = vsel %vm2117_vm4, %v3042_v25, %v2114_v20  ;;  %vm2120_vm15 = vcmp.eq.f32.partialorder %v2119_v24, 8.507059e+37  ;;  %v917_v30 = vadd.f32 %v4073_v16, %v916_v60  ;;  %v1407_v34 = vsub.f32 1.0, %v1406_v32 }
 0x119   : > { %v4076_v43 = vpop.eup %3047  ;;  %2896 = vst [vmem:[%s3617_s13 + $0x90] sm:$0xff] %v2781_v36   ;;  %v2123_v22 = vsel %vm2120_vm15, %v2122_v15, %v2118_v10  ;;  %v957_v17 = vadd.f32 %v4073_v16, %v956_v33  ;;  %v997_v27 = vadd.f32 %v4073_v16, %v996_v8  ;;  %v1416_v31 = vand.u32 2147483648, %v4001_v50  ;;  %v959_v51 = vpop.f32.mrf.mxu1 }
 0x11a   : > { %v2821_v6 = vpack.c.bf16 %v2123_v22, %v2108_v35  ;;  %v1646_v37 = vmul.f32 %v4076_v43, %v4022_v4  ;;  %v1414_v40 = vand.u32 2147483647, %v4001_v50  ;;  %v1066_v28 = vsub.f32 0.0, %v917_v30  ;;  %v1039_v10 = vpop.f32.mrf.mxu3 }
 0x11b   : > { %v3050_v14 = vpop.eup %3049  ;;  %v1082_v46 = vsub.f32 0.0, %v957_v17  ;;  %vm1410_vm0 = vweird.f32 %v4001_v50  ;;  %v1098_v52 = vsub.f32 0.0, %v997_v27  ;;  %v1408_v48 = vmul.f32 %v4040_v12, %v1407_v34 }
 0x11c   : > { %2904 = vst [vmem:[%s3617_s13 + $0xd0] sm:$0xff] %v2821_v6   ;;  %v1647_v38 = vsub.f32 1.0, %v1646_v37  ;;  %v4087_v44 = vadd.f32 1.0, %v3050_v14  ;;  %v1137_v55 = vmul.f32 1.442695, %v1066_v28  ;;  %v1037_v56 = vadd.f32 %v4073_v16, %v1036_v39 }
 0x11d   : > { %v4089_v53 = vpop.eup %3051  ;;  %v1169_v49 = vmul.f32 1.442695, %v1082_v46  ;;  %v1417_v57 = vor.u32 1.1754944e-38, %v1416_v31  ;;  %vm1650_vm5 = vweird.f32 %v4022_v4  ;;  %v920_v59 = vadd.f32 %v4073_v16, %v919_v47  ;;  %v921_v6 = vpop.f32.mrf.mxu0 }
 0x11e   : > { %v1886_v25 = vmul.f32 %v4089_v53, %v4046_v26  ;;  %vm4097_vm6 = vcmp.eq.f32.partialorder %v1414_v40, 8.507059e+37  ;;  %v1648_v1 = vmul.f32 %v4076_v43, %v1647_v38  ;;  %v1654_v2 = vand.u32 2147483647, %v4022_v4 }
 0x11f   : > { %v1656_v41 = vand.u32 2147483648, %v4022_v4  ;;  %3053 = vrcp.f32 %v4087_v44  ;;  %vm1411_vm7 = vweird.f32 %v4040_v12  ;;  %v1201_v45 = vmul.f32 1.442695, %v1098_v52 }
 0x120   : > { %v1887_v0 = vsub.f32 1.0, %v1886_v25  ;;  %3055 = vpow2.f32 %v1137_v55  ;;  %v1409_v7 = vadd.f32 %v4040_v12, %v1408_v48  ;;  %v1894_v63 = vand.u32 2147483647, %v4046_v26  ;;  %vm4117_vm9 = vmor %vm1410_vm0, %vm1411_vm7 }
 0x121   : > { %3057 = vpow2.f32 %v1169_v49  ;;  %v1114_v5 = vsub.f32 0.0, %v1037_v56  ;;  %vm1651_vm8 = vweird.f32 %v4076_v43  ;;  %v1896_v60 = vand.u32 2147483648, %v4046_v26  ;;  %v961_v37 = vpop.f32.mrf.mxu1 }
 0x122   : > { %3059 = vpow2.f32 %v1201_v45  ;;  %v1067_v9 = vsub.f32 0.0, %v920_v59  ;;  %v1649_v62 = vadd.f32 %v4076_v43, %v1648_v1  ;;  %v1888_v13 = vmul.f32 %v4089_v53, %v1887_v0  ;;  %vm4140_vm13 = vmor %vm1650_vm5, %vm1651_vm8 }
 0x123   : > { %v1233_v42 = vmul.f32 1.442695, %v1114_v5  ;;  %v960_v18 = vadd.f32 %v4073_v16, %v959_v51  ;;  %vm4121_vm10 = vcmp.eq.f32.partialorder %v1654_v2, 8.507059e+37  ;;  %v1657_v23 = vor.u32 1.1754944e-38, %v1656_v41 }
 0x124   : > { %vm1890_vm11 = vweird.f32 %v4046_v26  ;;  %v1139_v24 = vmul.f32 1.442695, %v1067_v9  ;;  %v1413_v58 = vsel %vm4117_vm9, %v4040_v12, %v1409_v7  ;;  %vm4131_vm12 = vcmp.eq.f32.partialorder %v1894_v63, 8.507059e+37 }
 0x125   : > { %v4126_v3 = vpop.eup %3053  ;;  %v2136_v32 = vand.u32 2147483648, %v4087_v44  ;;  %3061 = vpow2.f32 %v1233_v42  ;;  %v1083_v33 = vsub.f32 0.0, %v960_v18  ;;  %vm1891_vm14 = vweird.f32 %v4089_v53 }
 0x126   : > { %v3056_v19 = vpop.eup %3055  ;;  %v1897_v12 = vor.u32 1.1754944e-38, %v1896_v60  ;;  %v2126_v20 = vmul.f32 %v4126_v3, %v4087_v44  ;;  %v1000_v8 = vadd.f32 %v4073_v16, %v999_v21  ;;  %v1653_v15 = vsel %vm4140_vm13, %v4076_v43, %v1649_v62  ;;  %vm4173_vm2 = vmor %vm1890_vm11, %vm1891_vm14 }
 0x127   : > { %v3058_v36 = vpop.eup %3057  ;;  %v1889_v35 = vadd.f32 %v4089_v53, %v1888_v13  ;;  %v4152_v4 = vadd.f32 1.0, %v3056_v19  ;;  %3063 = vpow2.f32 %v1139_v24  ;;  %v4156_v22 = vsel %vm4097_vm6, %v1417_v57, %v1413_v58 }
 0x128   : > { %v3060_v30 = vpop.eup %3059  ;;  %v2127_v34 = vsub.f32 1.0, %v2126_v20  ;;  %v4158_v17 = vadd.f32 1.0, %v3058_v36  ;;  %v1171_v27 = vmul.f32 1.442695, %v1083_v33  ;;  %vm2130_vm1 = vweird.f32 %v4087_v44 }
 0x129   : > { %v2134_v43 = vand.u32 2147483647, %v4087_v44  ;;  %v4162_v31 = vor.u32 1.1754944e-38, %v2136_v32  ;;  %3065 = vrcp.f32 %v4152_v4  ;;  %v4167_v39 = vsel %vm4121_vm10, %v1657_v23, %v1653_v15 }
 0x12a   : > { %3067 = vrcp.f32 %v4158_v17  ;;  %v1099_v40 = vsub.f32 0.0, %v1000_v8  ;;  %v4179_v28 = vadd.f32 %v4073_v16, %v1039_v10  ;;  %v1893_v47 = vsel %vm4173_vm2, %v4089_v53, %v1889_v35 }
 0x12b   : > { %v3062_v46 = vpop.eup %3061  ;;  %v2128_v38 = vmul.f32 %v4126_v3, %v2127_v34  ;;  %v4185_v52 = vadd.f32 1.0, %v3060_v30  ;;  %v4188_v26 = vadd.f32 %v4073_v16, %v921_v6  ;;  %v1429_v48 = vand.u32 2147483647, %v4152_v4 }
 0x12c   : > { %v4191_v55 = vadd.f32 1.0, %v3062_v46  ;;  %3069 = vpow2.f32 %v1171_v27  ;;  %v4194_v49 = vadd.f32 %v4073_v16, %v961_v37  ;;  %v1431_v57 = vand.u32 2147483648, %v4152_v4 }
 0x12d   : > { %v3064_v56 = vpop.eup %3063  ;;  %v1669_v53 = vand.u32 2147483647, %v4158_v17  ;;  %v1671_v25 = vand.u32 2147483648, %v4158_v17  ;;  %3071 = vrcp.f32 %v4185_v52  ;;  %v4202_v59 = vsel %vm4131_vm12, %v1897_v12, %v1893_v47 }
 0x12e   : > { %vm2131_vm3 = vweird.f32 %v4126_v3  ;;  %3073 = vrcp.f32 %v4191_v55  ;;  %v1203_v61 = vmul.f32 1.442695, %v1099_v40  ;;  %v4207_v2 = vadd.f32 %v4126_v3, %v2128_v38 }
 0x12f   : > { %v3066_v1 = vpop.eup %3065  ;;  %vm1425_vm4 = vweird.f32 %v4152_v4  ;;  %v1115_v41 = vsub.f32 0.0, %v4179_v28  ;;  %v1068_v51 = vsub.f32 0.0, %v4188_v26  ;;  %vm4213_vm15 = vcmp.eq.f32.partialorder %v1429_v48, 8.507059e+37  ;;  %vm4229_vm6 = vmor %vm2130_vm1, %vm2131_vm3 }
 0x130   : > { %v3068_v0 = vpop.eup %3067  ;;  %v1421_v45 = vmul.f32 %v3066_v1, %v4152_v4  ;;  %vm1665_vm0 = vweird.f32 %v4158_v17  ;;  %v4218_v63 = vadd.f32 1.0, %v3064_v56  ;;  %v1432_v5 = vor.u32 1.1754944e-38, %v1431_v57 }
 0x131   : > { %v1661_v60 = vmul.f32 %v3068_v0, %v4158_v17  ;;  %vm4221_vm5 = vcmp.eq.f32.partialorder %v1669_v53, 8.507059e+37  ;;  %v1672_v62 = vor.u32 1.1754944e-38, %v1671_v25  ;;  %vm1905_vm7 = vweird.f32 %v4185_v52 }
 0x132   : > { %v3070_v13 = vpop.eup %3069  ;;  %v1422_v18 = vsub.f32 1.0, %v1421_v45  ;;  %v1909_v21 = vand.u32 2147483647, %v4185_v52  ;;  %3075 = vrcp.f32 %v4218_v63  ;;  %v2133_v54 = vsel %vm4229_vm6, %v4126_v3, %v4207_v2  ;;  %v1041_v2 = vpop.f32.mrf.mxu3 }
 0x133   : > { %v3072_v29 = vpop.eup %3071  ;;  %v1662_v23 = vsub.f32 1.0, %v1661_v60  ;;  %v4240_v24 = vadd.f32 1.0, %v3070_v13  ;;  %3077 = vpow2.f32 %v1203_v61  ;;  %vm1426_vm8 = vweird.f32 %v3066_v1  ;;  %v964_v60 = vpop.f32.mrf.mxu1 }
 0x134   : > { %v3074_v44 = vpop.eup %3073  ;;  %v1423_v58 = vmul.f32 %v3066_v1, %v1422_v18  ;;  %v1901_v50 = vmul.f32 %v3072_v29, %v4185_v52  ;;  %v1911_v32 = vand.u32 2147483648, %v4185_v52  ;;  %vm4244_vm9 = vcmp.eq.f32.partialorder %v2134_v43, 8.507059e+37  ;;  %vm1427_vm13 = vmor %vm1425_vm4, %vm1426_vm8 }
 0x135   : > { %v1663_v19 = vmul.f32 %v3068_v0, %v1662_v23  ;;  %vm1666_vm10 = vweird.f32 %v3068_v0  ;;  %v2141_v11 = vmul.f32 %v3074_v44, %v4191_v55  ;;  %vm2145_vm11 = vweird.f32 %v4191_v55 }
 0x136   : > { %v1424_v3 = vadd.f32 %v3066_v1, %v1423_v58  ;;  %v1902_v12 = vsub.f32 1.0, %v1901_v50  ;;  %vm4250_vm12 = vcmp.eq.f32.partialorder %v1909_v21, 8.507059e+37  ;;  %3079 = vrcp.f32 %v4240_v24  ;;  %vm1667_vm14 = vmor %vm1665_vm0, %vm1666_vm10 }
 0x137   : > { %v1664_v8 = vadd.f32 %v3068_v0, %v1663_v19  ;;  %v2142_v36 = vsub.f32 1.0, %v2141_v11  ;;  %v2149_v15 = vand.u32 2147483647, %v4191_v55  ;;  %v2151_v35 = vand.u32 2147483648, %v4191_v55 }
 0x138   : > { %v4259_v10 = vpop.eup %3075  ;;  %v1428_v30 = vsel %vm1427_vm13, %v3066_v1, %v1424_v3  ;;  %v1903_v34 = vmul.f32 %v3072_v29, %v1902_v12  ;;  %vm1906_vm1 = vweird.f32 %v3072_v29  ;;  %v1235_v27 = vmul.f32 1.442695, %v1115_v41  ;;  %v1001_v1 = vpop.f32.mrf.mxu2 }
 0x139   : > { %v3078_v6 = vpop.eup %3077  ;;  %v1433_v4 = vsel %vm4213_vm15, %v1432_v5, %v1428_v30  ;;  %v1668_v43 = vsel %vm1667_vm14, %v3068_v0, %v1664_v8  ;;  %v2143_v37 = vmul.f32 %v3074_v44, %v2142_v36  ;;  %vm2146_vm2 = vweird.f32 %v3074_v44  ;;  %vm1907_vm3 = vmor %vm1905_vm7, %vm1906_vm1 }
 0x13a   : > { %v2706_v14 = vpack.c.bf16 %v1433_v4, %v4156_v22  ;;  %v1673_v40 = vsel %vm4221_vm5, %v1672_v62, %v1668_v43  ;;  %v1904_v28 = vadd.f32 %v3072_v29, %v1903_v34  ;;  %v1912_v17 = vor.u32 1.1754944e-38, %v1911_v32  ;;  %vm2147_vm4 = vmor %vm2145_vm11, %vm2146_vm2 }
 0x13b   : > { %v2746_v46 = vpack.c.bf16 %v1673_v40, %v4167_v39  ;;  %v2144_v47 = vadd.f32 %v3074_v44, %v2143_v37  ;;  %v2152_v38 = vor.u32 1.1754944e-38, %v2151_v35  ;;  %v1141_v26 = vmul.f32 1.442695, %v1068_v51 }
 0x13c   : > { %v4271_v48 = vpop.eup %3079  ;;  %2881 = vst [vmem:[%s3617_s13 + $0x18] sm:$0xff] %v2706_v14   ;;  %v1908_v56 = vsel %vm1907_vm3, %v3072_v29, %v1904_v28  ;;  %v1436_v22 = vmul.f32 %v4259_v10, %v4218_v63  ;;  %v4278_v57 = vadd.f32 1.0, %v3078_v6  ;;  %3081 = vpow2.f32 %v1235_v27 }
 0x13d   : > { %2889 = vst [vmem:[%s3617_s13 + $0x58] sm:$0xff] %v2746_v46   ;;  %v1913_v39 = vsel %vm4250_vm12, %v1912_v17, %v1908_v56  ;;  %v2148_v52 = vsel %vm2147_vm4, %v3074_v44, %v2144_v47  ;;  %vm2150_vm15 = vcmp.eq.f32.partialorder %v2149_v15, 8.507059e+37  ;;  %v1676_v53 = vmul.f32 %v4271_v48, %v4240_v24 }
 0x13e   : > { %v2138_v55 = vsel %vm4244_vm9, %v4162_v31, %v2133_v54  ;;  %v2786_v25 = vpack.c.bf16 %v1913_v39, %v4202_v59  ;;  %v2153_v61 = vsel %vm2150_vm15, %v2152_v38, %v2148_v52  ;;  %3083 = vrcp.f32 %v4278_v57  ;;  %v924_v31 = vpop.f32.mrf.mxu0 }
 0x13f   : > { %v2826_v41 = vpack.c.bf16 %v2153_v61, %v2138_v55  ;;  %v1437_v51 = vsub.f32 1.0, %v1436_v22  ;;  %3085 = vpow2.f32 %v1141_v26  ;;  %v1084_v0 = vsub.f32 0.0, %v4194_v49 }
 0x140   : > { %2897 = vst [vmem:[%s3617_s13 + $0x98] sm:$0xff] %v2786_v25   ;;  %v1677_v45 = vsub.f32 1.0, %v1676_v53  ;;  %v1002_v7 = vadd.f32 %v4073_v16, %v1001_v1  ;;  %v1042_v5 = vadd.f32 %v4073_v16, %v1041_v2  ;;  %v1444_v9 = vand.u32 2147483647, %v4218_v63  ;;  %v1004_v35 = vpop.f32.mrf.mxu2  ;;  %v1044_v2 = vpop.f32.mrf.mxu3 }
 0x141   : > { %2905 = vst [vmem:[%s3617_s13 + $0xd8] sm:$0xff] %v2826_v41   ;;  %v1446_v62 = vand.u32 2147483648, %v4218_v63  ;;  %v1173_v13 = vmul.f32 1.442695, %v1084_v0  ;;  %v1438_v49 = vmul.f32 %v4259_v10, %v1437_v51  ;;  %v925_v54 = vadd.f32 %v4073_v16, %v924_v31 }
 0x142   : > { %v3082_v59 = vpop.eup %3081  ;;  %v1100_v18 = vsub.f32 0.0, %v1002_v7  ;;  %v1116_v21 = vsub.f32 0.0, %v1042_v5  ;;  %v965_v23 = vadd.f32 %v4073_v16, %v964_v60  ;;  %vm1440_vm0 = vweird.f32 %v4218_v63 }
 0x143   : > { %v4297_v42 = vadd.f32 1.0, %v3082_v59  ;;  %3087 = vpow2.f32 %v1173_v13  ;;  %v1678_v44 = vmul.f32 %v4271_v48, %v1677_v45  ;;  %vm4307_vm5 = vcmp.eq.f32.partialorder %v1444_v9, 8.507059e+37 }
 0x144   : > { %v4299_v29 = vpop.eup %3083  ;;  %v1447_v32 = vor.u32 1.1754944e-38, %v1446_v62  ;;  %v1684_v33 = vand.u32 2147483647, %v4240_v24  ;;  %v1686_v11 = vand.u32 2147483648, %v4240_v24  ;;  %v1205_v12 = vmul.f32 1.442695, %v1100_v18 }
 0x145   : > { %3089 = vrcp.f32 %v4297_v42  ;;  %v3086_v58 = vpop.eup %3085  ;;  %v1916_v19 = vmul.f32 %v4299_v29, %v4278_v57  ;;  %v1237_v20 = vmul.f32 1.442695, %v1116_v21  ;;  %v1439_v8 = vadd.f32 %v4259_v10, %v1438_v49 }
 0x146   : > { %v4315_v3 = vadd.f32 1.0, %v3086_v58  ;;  %vm1441_vm6 = vweird.f32 %v4259_v10  ;;  %v1069_v36 = vsub.f32 0.0, %v925_v54  ;;  %v1085_v15 = vsub.f32 0.0, %v965_v23  ;;  %v926_v21 = vpop.f32.mrf.mxu0 }
 0x147   : > { %v1679_v30 = vadd.f32 %v4271_v48, %v1678_v44  ;;  %vm1680_vm7 = vweird.f32 %v4240_v24  ;;  %vm1681_vm8 = vweird.f32 %v4271_v48  ;;  %v1917_v27 = vsub.f32 1.0, %v1916_v19  ;;  %vm4327_vm9 = vmor %vm1440_vm0, %vm1441_vm6 }
 0x148   : > { %3091 = vrcp.f32 %v4315_v3  ;;  %v1143_v6 = vmul.f32 1.442695, %v1069_v36  ;;  %v1175_v4 = vmul.f32 1.442695, %v1085_v15  ;;  %v1926_v14 = vand.u32 2147483648, %v4278_v57  ;;  %vm4340_vm10 = vmor %vm1680_vm7, %vm1681_vm8 }
 0x149   : > { %v3088_v34 = vpop.eup %3087  ;;  %3093 = vpow2.f32 %v1205_v12  ;;  %v1005_v28 = vadd.f32 %v4073_v16, %v1004_v35  ;;  %v1443_v17 = vsel %vm4327_vm9, %v4259_v10, %v1439_v8  ;;  %vm4344_vm11 = vcmp.eq.f32.partialorder %v1684_v33, 8.507059e+37 }
 0x14a   : > { %v4332_v40 = vadd.f32 1.0, %v3088_v34  ;;  %3095 = vpow2.f32 %v1237_v20  ;;  %v1687_v47 = vor.u32 1.1754944e-38, %v1686_v11  ;;  %v1683_v38 = vsel %vm4340_vm10, %v4271_v48, %v1679_v30 }
 0x14b   : > { %v4323_v43 = vpop.eup %3089  ;;  %3097 = vpow2.f32 %v1143_v6  ;;  %vm1920_vm12 = vweird.f32 %v4278_v57  ;;  %v2166_v10 = vand.u32 2147483648, %v4297_v42  ;;  %v1918_v24 = vmul.f32 %v4299_v29, %v1917_v27  ;;  %v966_v27 = vpop.f32.mrf.mxu1 }
 0x14c   : > { %3099 = vrcp.f32 %v4332_v40  ;;  %v1924_v26 = vand.u32 2147483647, %v4278_v57  ;;  %v2156_v56 = vmul.f32 %v4323_v43, %v4297_v42  ;;  %v4360_v39 = vsel %vm4307_vm5, %v1447_v32, %v1443_v17 }
 0x14d   : > { %3101 = vpow2.f32 %v1175_v4  ;;  %v4362_v48 = vor.u32 1.1754944e-38, %v1926_v14  ;;  %v1459_v52 = vand.u32 2147483647, %v4315_v3  ;;  %v1101_v53 = vsub.f32 0.0, %v1005_v28 }
 0x14e   : > { %v3092_v22 = vpop.eup %3091  ;;  %v4367_v25 = vsel %vm4344_vm11, %v1687_v47, %v1683_v38  ;;  %vm1921_vm13 = vweird.f32 %v4299_v29  ;;  %v2164_v61 = vand.u32 2147483647, %v4297_v42  ;;  %v4372_v51 = vor.u32 1.1754944e-38, %v2166_v10 }
 0x14f   : > { %v3094_v55 = vpop.eup %3093  ;;  %v1451_v1 = vmul.f32 %v3092_v22, %v4315_v3  ;;  %vm1455_vm14 = vweird.f32 %v4315_v3  ;;  %v1461_v0 = vand.u32 2147483648, %v4315_v3  ;;  %v4379_v5 = vadd.f32 %v4299_v29, %v1918_v24  ;;  %vm4399_vm15 = vmor %vm1920_vm12, %vm1921_vm13 }
 0x150   : > { %v3096_v41 = vpop.eup %3095  ;;  %v4376_v45 = vadd.f32 1.0, %v3094_v55  ;;  %v2157_v31 = vsub.f32 1.0, %v2156_v56  ;;  %vm4383_vm1 = vcmp.eq.f32.partialorder %v1459_v52, 8.507059e+37  ;;  %v1207_v13 = vmul.f32 1.442695, %v1101_v53 }
 0x151   : > { %v3098_v7 = vpop.eup %3097  ;;  %v1452_v60 = vsub.f32 1.0, %v1451_v1  ;;  %v4381_v59 = vadd.f32 1.0, %v3096_v41  ;;  %v1045_v18 = vadd.f32 %v4073_v16, %v1044_v2  ;;  %vm2161_vm2 = vweird.f32 %v4323_v43 }
 0x152   : > { %v3100_v9 = vpop.eup %3099  ;;  %3103 = vrcp.f32 %v4376_v45  ;;  %vm1456_vm3 = vweird.f32 %v3092_v22  ;;  %vm2160_vm4 = vweird.f32 %v4297_v42  ;;  %v1462_v44 = vor.u32 1.1754944e-38, %v1461_v0 }
 0x153   : > { %v3102_v49 = vpop.eup %3101  ;;  %v1453_v54 = vmul.f32 %v3092_v22, %v1452_v60  ;;  %v1691_v23 = vmul.f32 %v3100_v9, %v4332_v40  ;;  %v1699_v58 = vand.u32 2147483647, %v4332_v40  ;;  %v1701_v50 = vand.u32 2147483648, %v4332_v40  ;;  %vm1457_vm0 = vmor %vm1455_vm14, %vm1456_vm3 }
 0x154   : > { %3105 = vrcp.f32 %v4381_v59  ;;  %v2158_v33 = vmul.f32 %v4323_v43, %v2157_v31  ;;  %v927_v12 = vadd.f32 %v4073_v16, %v926_v21  ;;  %v4407_v20 = vadd.f32 1.0, %v3098_v7  ;;  %vm4443_vm11 = vmor %vm2160_vm4, %vm2161_vm2 }
 0x155   : > { %v1454_v19 = vadd.f32 %v3092_v22, %v1453_v54  ;;  %v1692_v11 = vsub.f32 1.0, %v1691_v23  ;;  %v4409_v8 = vadd.f32 1.0, %v3102_v49  ;;  %3107 = vpow2.f32 %v1207_v13 }
 0x156   : > { %v1117_v36 = vsub.f32 0.0, %v1045_v18  ;;  %v1923_v57 = vsel %vm4399_vm15, %v4299_v29, %v4379_v5  ;;  %vm1696_vm5 = vweird.f32 %v3100_v9  ;;  %vm1695_vm6 = vweird.f32 %v4332_v40 }
 0x157   : > { %v1458_v15 = vsel %vm1457_vm0, %v3092_v22, %v1454_v19  ;;  %v1693_v35 = vmul.f32 %v3100_v9, %v1692_v11  ;;  %vm4418_vm7 = vcmp.eq.f32.partialorder %v1699_v58, 8.507059e+37  ;;  %3109 = vrcp.f32 %v4407_v20  ;;  %vm1697_vm9 = vmor %vm1695_vm6, %vm1696_vm5 }
 0x158   : > { %v3104_v30 = vpop.eup %3103  ;;  %v1463_v34 = vsel %vm4383_vm1, %v1462_v44, %v1458_v15  ;;  %vm4423_vm8 = vcmp.eq.f32.partialorder %v1924_v26, 8.507059e+37  ;;  %v1702_v37 = vor.u32 1.1754944e-38, %v1701_v50  ;;  %v2159_v40 = vadd.f32 %v4323_v43, %v2158_v33  ;;  %v1046_v44 = vpop.f32.mrf.mxu3 }
 0x159   : > { %v2711_v29 = vpack.c.bf16 %v1463_v34, %v4360_v39  ;;  %v1694_v4 = vadd.f32 %v3100_v9, %v1693_v35  ;;  %v1931_v14 = vmul.f32 %v3104_v30, %v4376_v45  ;;  %3111 = vrcp.f32 %v4409_v8  ;;  %v929_v33 = vpop.f32.mrf.mxu0 }
 0x15a   : > { %v3106_v28 = vpop.eup %3105  ;;  %v1239_v17 = vmul.f32 1.442695, %v1117_v36  ;;  %v1070_v46 = vsub.f32 0.0, %v927_v12  ;;  %v967_v10 = vadd.f32 %v4073_v16, %v966_v27  ;;  %vm1935_vm10 = vweird.f32 %v4376_v45  ;;  %v969_v27 = vpop.f32.mrf.mxu1 }
 0x15b   : > { %2882 = vst [vmem:[%s3617_s13 + $0x20] sm:$0xff] %v2711_v29   ;;  %v1698_v63 = vsel %vm1697_vm9, %v3100_v9, %v1694_v4  ;;  %v1932_v47 = vsub.f32 1.0, %v1931_v14  ;;  %v2171_v38 = vmul.f32 %v3106_v28, %v4381_v59  ;;  %v3108_v24 = vpop.eup %3107  ;;  %v1939_v56 = vand.u32 2147483647, %v4376_v45  ;;  %v1006_v9 = vpop.f32.mrf.mxu2 }
 0x15c   : > { %v1703_v26 = vsel %vm4418_vm7, %v1702_v37, %v1698_v63  ;;  %v1941_v22 = vand.u32 2147483648, %v4376_v45  ;;  %vm1936_vm12 = vweird.f32 %v3104_v30  ;;  %v2163_v2 = vsel %vm4443_vm11, %v4323_v43, %v2159_v40 }
 0x15d   : > { %v2751_v52 = vpack.c.bf16 %v1703_v26, %v4367_v25  ;;  %v1933_v53 = vmul.f32 %v3104_v30, %v1932_v47  ;;  %v2172_v55 = vsub.f32 1.0, %v2171_v38  ;;  %v4448_v1 = vpop.eup %3109  ;;  %v2181_v41 = vand.u32 2147483648, %v4381_v59  ;;  %vm1937_vm14 = vmor %vm1935_vm10, %vm1936_vm12 }
 0x15e   : > { %v4454_v0 = vadd.f32 1.0, %v3108_v24  ;;  %3113 = vpow2.f32 %v1239_v17  ;;  %vm2176_vm13 = vweird.f32 %v3106_v28  ;;  %v2179_v25 = vand.u32 2147483647, %v4381_v59 }
 0x15f   : > { %2890 = vst [vmem:[%s3617_s13 + $0x60] sm:$0xff] %v2751_v52   ;;  %v1934_v7 = vadd.f32 %v3104_v30, %v1933_v53  ;;  %v2173_v5 = vmul.f32 %v3106_v28, %v2172_v55  ;;  %v4458_v31 = vpop.eup %3111  ;;  %vm1940_vm1 = vcmp.eq.f32.partialorder %v1939_v56, 8.507059e+37  ;;  %v1942_v60 = vor.u32 1.1754944e-38, %v1941_v22 }
 0x160   : > { %3115 = vrcp.f32 %v4454_v0  ;;  %v1145_v43 = vmul.f32 1.442695, %v1070_v46  ;;  %vm2175_vm2 = vweird.f32 %v4381_v59  ;;  %v1466_v18 = vmul.f32 %v4448_v1, %v4407_v20 }
 0x161   : > { %v1938_v62 = vsel %vm1937_vm14, %v3104_v30, %v1934_v7  ;;  %v2174_v13 = vadd.f32 %v3106_v28, %v2173_v5  ;;  %v1928_v21 = vsel %vm4423_vm8, %v4362_v48, %v1923_v57  ;;  %vm2177_vm3 = vmor %vm2175_vm2, %vm2176_vm13  ;;  %v2182_v49 = vor.u32 1.1754944e-38, %v2181_v41 }
 0x162   : > { %v1943_v45 = vsel %vm1940_vm1, %v1942_v60, %v1938_v62  ;;  %v1706_v54 = vmul.f32 %v4458_v31, %v4409_v8  ;;  %vm2165_vm4 = vcmp.eq.f32.partialorder %v2164_v61, 8.507059e+37  ;;  %vm2180_vm15 = vcmp.eq.f32.partialorder %v2179_v25, 8.507059e+37 }
 0x163   : > { %v2791_v23 = vpack.c.bf16 %v1943_v45, %v1928_v21  ;;  %v2178_v59 = vsel %vm2177_vm3, %v3106_v28, %v2174_v13  ;;  %v2168_v50 = vsel %vm2165_vm4, %v4372_v51, %v2163_v2  ;;  %3117 = vpow2.f32 %v1145_v43  ;;  %v1009_v28 = vpop.f32.mrf.mxu2 }
 0x164   : > { %v3114_v58 = vpop.eup %3113  ;;  %v2183_v48 = vsel %vm2180_vm15, %v2182_v49, %v2178_v59  ;;  %v1086_v32 = vsub.f32 0.0, %v967_v10  ;;  %v1467_v11 = vsub.f32 1.0, %v1466_v18  ;;  %v1707_v42 = vsub.f32 1.0, %v1706_v54 }
 0x165   : > { %2898 = vst [vmem:[%s3617_s13 + $0xa0] sm:$0xff] %v2791_v23   ;;  %v2831_v19 = vpack.c.bf16 %v2183_v48, %v2168_v50  ;;  %v4476_v12 = vadd.f32 1.0, %v3114_v58  ;;  %v1007_v57 = vadd.f32 %v4073_v16, %v1006_v9  ;;  %v1047_v15 = vadd.f32 %v4073_v16, %v1046_v44 }
 0x166   : > { %v4478_v36 = vpop.eup %3115  ;;  %v1177_v61 = vmul.f32 1.442695, %v1086_v32  ;;  %v1474_v51 = vand.u32 2147483647, %v4407_v20  ;;  %v930_v30 = vadd.f32 %v4073_v16, %v929_v33  ;;  %vm1470_vm0 = vweird.f32 %v4407_v20 }
 0x167   : > { %2906 = vst [vmem:[%s3617_s13 + $0xe0] sm:$0xff] %v2831_v19   ;;  %v1946_v35 = vmul.f32 %v4478_v36, %v4454_v0  ;;  %3119 = vrcp.f32 %v4476_v12  ;;  %v1468_v34 = vmul.f32 %v4448_v1, %v1467_v11  ;;  %v1476_v3 = vand.u32 2147483648, %v4407_v20 }
 0x168   : > { %vm1710_vm5 = vweird.f32 %v4409_v8  ;;  %3121 = vpow2.f32 %v1177_v61  ;;  %v1708_v29 = vmul.f32 %v4458_v31, %v1707_v42  ;;  %v1714_v4 = vand.u32 2147483647, %v4409_v8 }
 0x169   : > { %v3118_v6 = vpop.eup %3117  ;;  %v1102_v37 = vsub.f32 0.0, %v1007_v57  ;;  %v1118_v14 = vsub.f32 0.0, %v1047_v15  ;;  %vm4494_vm6 = vcmp.eq.f32.partialorder %v1474_v51, 8.507059e+37  ;;  %v1716_v17 = vand.u32 2147483648, %v4409_v8 }
 0x16a   : > { %v1947_v46 = vsub.f32 1.0, %v1946_v35  ;;  %v4499_v63 = vadd.f32 1.0, %v3118_v6  ;;  %v1071_v47 = vsub.f32 0.0, %v930_v30  ;;  %vm1471_vm7 = vweird.f32 %v4448_v1 }
 0x16b   : > { %v1209_v38 = vmul.f32 1.442695, %v1102_v37  ;;  %v1241_v10 = vmul.f32 1.442695, %v1118_v14  ;;  %v970_v24 = vadd.f32 %v4073_v16, %v969_v27  ;;  %v1469_v26 = vadd.f32 %v4448_v1, %v1468_v34  ;;  %vm4520_vm10 = vmor %vm1470_vm0, %vm1471_vm7 }
 0x16c   : > { %vm1711_vm8 = vweird.f32 %v4458_v31  ;;  %3123 = vrcp.f32 %v4499_v63  ;;  %v1010_v56 = vadd.f32 %v4073_v16, %v1009_v28  ;;  %v1709_v39 = vadd.f32 %v4458_v31, %v1708_v29 }
 0x16d   : > { %v4507_v22 = vpop.eup %3119  ;;  %3125 = vpow2.f32 %v1209_v38  ;;  %v1147_v52 = vmul.f32 1.442695, %v1071_v47  ;;  %v1087_v53 = vsub.f32 0.0, %v970_v24  ;;  %v1477_v2 = vor.u32 1.1754944e-38, %v1476_v3  ;;  %vm4534_vm11 = vmor %vm1710_vm5, %vm1711_vm8 }
 0x16e   : > { %v3122_v55 = vpop.eup %3121  ;;  %vm4510_vm9 = vcmp.eq.f32.partialorder %v1714_v4, 8.507059e+37  ;;  %v1948_v7 = vmul.f32 %v4478_v36, %v1947_v46  ;;  %v1954_v5 = vand.u32 2147483647, %v4454_v0  ;;  %v1717_v60 = vor.u32 1.1754944e-38, %v1716_v17 }
 0x16f   : > { %v1956_v43 = vand.u32 2147483648, %v4454_v0  ;;  %v4525_v9 = vadd.f32 1.0, %v3122_v55  ;;  %3127 = vpow2.f32 %v1241_v10  ;;  %v1473_v62 = vsel %vm4520_vm10, %v4448_v1, %v1469_v26  ;;  %v931_v10 = vpop.f32.mrf.mxu0 }
 0x170   : > { %3129 = vpow2.f32 %v1147_v52  ;;  %v1179_v13 = vmul.f32 1.442695, %v1087_v53  ;;  %v1103_v18 = vsub.f32 0.0, %v1010_v56  ;;  %v1713_v21 = vsel %vm4534_vm11, %v4458_v31, %v1709_v39  ;;  %v971_v39 = vpop.f32.mrf.mxu1  ;;  %v1011_v52 = vpop.f32.mrf.mxu2 }
 0x171   : > { %vm1950_vm12 = vweird.f32 %v4454_v0  ;;  %v2186_v1 = vmul.f32 %v4507_v22, %v4476_v12  ;;  %3131 = vrcp.f32 %v4525_v9  ;;  %v1949_v8 = vadd.f32 %v4478_v36, %v1948_v7  ;;  %v1049_v0 = vpop.f32.mrf.mxu3 }
 0x172   : > { %v3124_v45 = vpop.eup %3123  ;;  %vm1951_vm13 = vweird.f32 %v4478_v36  ;;  %vm4547_vm14 = vcmp.eq.f32.partialorder %v1954_v5, 8.507059e+37  ;;  %v1211_v54 = vmul.f32 1.442695, %v1103_v18  ;;  %v1478_v31 = vsel %vm4494_vm6, %v1477_v2, %v1473_v62 }
 0x173   : > { %v3126_v23 = vpop.eup %3125  ;;  %v1957_v59 = vor.u32 1.1754944e-38, %v1956_v43  ;;  %v2194_v44 = vand.u32 2147483647, %v4476_v12  ;;  %v1481_v58 = vmul.f32 %v3124_v45, %v4499_v63  ;;  %v4557_v50 = vsel %vm4510_vm9, %v1717_v60, %v1713_v21  ;;  %vm4564_vm1 = vmor %vm1950_vm12, %vm1951_vm13 }
 0x174   : > { %v2196_v48 = vand.u32 2147483648, %v4476_v12  ;;  %v4560_v32 = vadd.f32 1.0, %v3126_v23  ;;  %3133 = vpow2.f32 %v1179_v13  ;;  %v2187_v11 = vsub.f32 1.0, %v2186_v1  ;;  %v4613_v13 = vld [vmem:[%s5014_s4] ss:$0 sm:$0xff] }
 0x175   : > { %v3128_v33 = vpop.eup %3127  ;;  %v1482_v42 = vsub.f32 1.0, %v1481_v58  ;;  %v1489_v61 = vand.u32 2147483647, %v4499_v63  ;;  %3135 = vpow2.f32 %v1211_v54  ;;  %v1953_v15 = vsel %vm4564_vm1, %v4478_v36, %v1949_v8 }
 0x176   : > { %v3130_v57 = vpop.eup %3129  ;;  %v1491_v51 = vand.u32 2147483648, %v4499_v63  ;;  %v1729_v35 = vand.u32 2147483647, %v4525_v9  ;;  %3137 = vrcp.f32 %v4560_v32  ;;  %vm1486_vm2 = vweird.f32 %v3124_v45 }
 0x177   : > { %v3132_v30 = vpop.eup %3131  ;;  %v1483_v34 = vmul.f32 %v3124_v45, %v1482_v42  ;;  %v1731_v3 = vand.u32 2147483648, %v4525_v9  ;;  %v4576_v27 = vadd.f32 1.0, %v3128_v33  ;;  %vm2191_vm3 = vweird.f32 %v4507_v22 }
 0x178   : > { %vm1485_vm4 = vweird.f32 %v4499_v63  ;;  %v1721_v36 = vmul.f32 %v3132_v30, %v4525_v9  ;;  %v4581_v6 = vadd.f32 1.0, %v3130_v57  ;;  %v2188_v29 = vmul.f32 %v4507_v22, %v2187_v11 }
 0x179   : > { %v1484_v4 = vadd.f32 %v3124_v45, %v1483_v34  ;;  %3139 = vrcp.f32 %v4576_v27  ;;  %v1050_v37 = vadd.f32 %v4073_v16, %v1049_v0  ;;  %v4588_v28 = vsel %vm4547_vm14, %v1957_v59, %v1953_v15  ;;  %vm1487_vm0 = vmor %vm1485_vm4, %vm1486_vm2 }
 0x17a   : > { %v3134_v14 = vpop.eup %3133  ;;  %vm2190_vm15 = vweird.f32 %v4476_v12  ;;  %vm1490_vm5 = vcmp.eq.f32.partialorder %v1489_v61, 8.507059e+37  ;;  %v1492_v40 = vor.u32 1.1754944e-38, %v1491_v51  ;;  %v1722_v17 = vsub.f32 1.0, %v1721_v36 }
 0x17b   : > { %v3136_v46 = vpop.eup %3135  ;;  %v1488_v63 = vsel %vm1487_vm0, %v3124_v45, %v1484_v4  ;;  %vm1725_vm6 = vweird.f32 %v4525_v9  ;;  %vm4592_vm7 = vcmp.eq.f32.partialorder %v1729_v35, 8.507059e+37  ;;  %v1732_v38 = vor.u32 1.1754944e-38, %v1731_v3  ;;  %vm4636_vm13 = vmor %vm2190_vm15, %vm2191_vm3 }
 0x17c   : > { %v3138_v24 = vpop.eup %3137  ;;  %v1493_v26 = vsel %vm1490_vm5, %v1492_v40, %v1488_v63  ;;  %v1723_v56 = vmul.f32 %v3132_v30, %v1722_v17  ;;  %vm1726_vm8 = vweird.f32 %v3132_v30  ;;  %3141 = vrcp.f32 %v4581_v6  ;;  %v934_v40 = vpop.f32.mrf.mxu0 }
 0x17d   : > { %v4598_v53 = vadd.f32 %v4507_v22, %v2188_v29  ;;  %v2716_v55 = vpack.c.bf16 %v1493_v26, %v1478_v31  ;;  %v1961_v2 = vmul.f32 %v3138_v24, %v4560_v32  ;;  %v1119_v41 = vsub.f32 0.0, %v1050_v37  ;;  %vm1727_vm9 = vmor %vm1725_vm6, %vm1726_vm8  ;;  %v1051_v37 = vpop.f32.mrf.mxu3  ;;  %v974_v17 = vpop.f32.mrf.mxu1 }
 0x17e   : > { %v1724_v7 = vadd.f32 %v3132_v30, %v1723_v56  ;;  %v1971_v5 = vand.u32 2147483648, %v4560_v32  ;;  %v4602_v25 = vadd.f32 1.0, %v3134_v14  ;;  %v932_v60 = vadd.f32 %v4073_v16, %v931_v10 }
 0x17f   : > { %v3140_v43 = vpop.eup %3139  ;;  %2883 = vst [vmem:[%s3617_s13 + $0x28] sm:$0xff] %v2716_v55   ;;  %v1962_v62 = vsub.f32 1.0, %v1961_v2  ;;  %v4608_v20 = vadd.f32 1.0, %v3136_v46  ;;  %v972_v18 = vadd.f32 %v4613_v13, %v971_v39  ;;  %v1012_v21 = vadd.f32 %v4613_v13, %v1011_v52  ;;  %v1014_v55 = vpop.f32.mrf.mxu2 }
 0x180   : > { %vm4619_vm10 = vcmp.eq.f32.partialorder %v2194_v44, 8.507059e+37  ;;  %v1728_v9 = vsel %vm1727_vm9, %v3132_v30, %v1724_v7  ;;  %vm1965_vm11 = vweird.f32 %v4560_v32  ;;  %v2201_v1 = vmul.f32 %v3140_v43, %v4576_v27 }
 0x181   : > { %3143 = vrcp.f32 %v4602_v25  ;;  %v1733_v45 = vsel %vm4592_vm7, %v1732_v38, %v1728_v9  ;;  %v1963_v8 = vmul.f32 %v3138_v24, %v1962_v62  ;;  %vm1966_vm12 = vweird.f32 %v3138_v24 }
 0x182   : > { %v1969_v49 = vand.u32 2147483647, %v4560_v32  ;;  %v4629_v54 = vpop.eup %3141  ;;  %v2756_v23 = vpack.c.bf16 %v1733_v45, %v4557_v50  ;;  %v1972_v31 = vor.u32 1.1754944e-38, %v1971_v5  ;;  %v2202_v59 = vsub.f32 1.0, %v2201_v1  ;;  %vm1967_vm14 = vmor %vm1965_vm11, %vm1966_vm12 }
 0x183   : > { %v1243_v44 = vmul.f32 1.442695, %v1119_v41  ;;  %v1964_v33 = vadd.f32 %v3138_v24, %v1963_v8  ;;  %v2209_v19 = vand.u32 2147483647, %v4576_v27  ;;  %v2211_v11 = vand.u32 2147483648, %v4576_v27 }
 0x184   : > { %3145 = vrcp.f32 %v4608_v20  ;;  %2891 = vst [vmem:[%s3617_s13 + $0x68] sm:$0xff] %v2756_v23   ;;  %v2203_v50 = vmul.f32 %v3140_v43, %v2202_v59  ;;  %vm2206_vm1 = vweird.f32 %v3140_v43  ;;  %v1072_v42 = vsub.f32 0.0, %v932_v60 }
 0x185   : > { %v1088_v61 = vsub.f32 0.0, %v972_v18  ;;  %v2193_v57 = vsel %vm4636_vm13, %v4507_v22, %v4598_v53  ;;  %v1968_v15 = vsel %vm1967_vm14, %v3138_v24, %v1964_v33  ;;  %vm1970_vm2 = vcmp.eq.f32.partialorder %v1969_v49, 8.507059e+37 }
 0x186   : > { %v1496_v51 = vmul.f32 %v4629_v54, %v4581_v6  ;;  %v1973_v0 = vsel %vm1970_vm2, %v1972_v31, %v1968_v15  ;;  %v2204_v32 = vadd.f32 %v3140_v43, %v2203_v50  ;;  %vm2205_vm3 = vweird.f32 %v4576_v27 }
 0x187   : > { %v4652_v35 = vpop.eup %3143  ;;  %3147 = vpow2.f32 %v1243_v44  ;;  %v2197_v30 = vor.u32 1.1754944e-38, %v2196_v48  ;;  %v2796_v34 = vpack.c.bf16 %v1973_v0, %v4588_v28  ;;  %vm2207_vm4 = vmor %vm2205_vm3, %vm2206_vm1  ;;  %v2212_v22 = vor.u32 1.1754944e-38, %v2211_v11 }
 0x188   : > { %v1736_v3 = vmul.f32 %v4652_v35, %v4602_v25  ;;  %v2208_v36 = vsel %vm2207_vm4, %v3140_v43, %v2204_v32  ;;  %vm2210_vm15 = vcmp.eq.f32.partialorder %v2209_v19, 8.507059e+37  ;;  %v1149_v29 = vmul.f32 1.442695, %v1072_v42 }
 0x189   : > { %v1181_v4 = vmul.f32 1.442695, %v1088_v61  ;;  %v2198_v27 = vsel %vm4619_vm10, %v2197_v30, %v2193_v57  ;;  %2899 = vst [vmem:[%s3617_s13 + $0xa8] sm:$0xff] %v2796_v34   ;;  %v2213_v12 = vsel %vm2210_vm15, %v2212_v22, %v2208_v36  ;;  %v1497_v48 = vsub.f32 1.0, %v1496_v51 }
 0x18a   : > { %v4660_v14 = vpop.eup %3145  ;;  %v1104_v28 = vsub.f32 0.0, %v1012_v21  ;;  %v2836_v46 = vpack.c.bf16 %v2213_v12, %v2198_v27  ;;  %v1504_v63 = vand.u32 2147483647, %v4581_v6  ;;  %v1737_v47 = vsub.f32 1.0, %v1736_v3 }
 0x18b   : > { %v1976_v38 = vmul.f32 %v4660_v14, %v4608_v20  ;;  %v1506_v10 = vand.u32 2147483648, %v4581_v6  ;;  %3149 = vpow2.f32 %v1149_v29  ;;  %v1052_v26 = vadd.f32 %v4613_v13, %v1051_v37 }
 0x18c   : > { %v1213_v24 = vmul.f32 1.442695, %v1104_v28  ;;  %2907 = vst [vmem:[%s3617_s13 + $0xe8] sm:$0xff] %v2836_v46   ;;  %3151 = vpow2.f32 %v1181_v4  ;;  %v935_v52 = vadd.f32 %v4613_v13, %v934_v40  ;;  %v975_v53 = vadd.f32 %v4613_v13, %v974_v17 }
 0x18d   : > { %v3148_v56 = vpop.eup %3147  ;;  %v1977_v39 = vsub.f32 1.0, %v1976_v38  ;;  %v1498_v2 = vmul.f32 %v4629_v54, %v1497_v48  ;;  %v1120_v7 = vsub.f32 0.0, %v1052_v26  ;;  %vm1500_vm0 = vweird.f32 %v4581_v6 }
 0x18e   : > { %v4674_v41 = vadd.f32 1.0, %v3148_v56  ;;  %v1738_v5 = vmul.f32 %v4652_v35, %v1737_v47  ;;  %3153 = vpow2.f32 %v1213_v24  ;;  %v1073_v60 = vsub.f32 0.0, %v935_v52 }
 0x18f   : > { %vm1501_vm5 = vweird.f32 %v4629_v54  ;;  %vm4679_vm6 = vcmp.eq.f32.partialorder %v1504_v63, 8.507059e+37  ;;  %v1507_v62 = vor.u32 1.1754944e-38, %v1506_v10  ;;  %v1015_v18 = vadd.f32 %v4613_v13, %v1014_v55  ;;  %v1054_v10 = vpop.f32.mrf.mxu3 }
 0x190   : > { %3155 = vrcp.f32 %v4674_v41  ;;  %vm1740_vm7 = vweird.f32 %v4602_v25  ;;  %v1978_v21 = vmul.f32 %v4660_v14, %v1977_v39  ;;  %v1245_v16 = vmul.f32 1.442695, %v1120_v7  ;;  %vm4702_vm9 = vmor %vm1500_vm0, %vm1501_vm5 }
 0x191   : > { %v1089_v9 = vsub.f32 0.0, %v975_v53  ;;  %v3150_v1 = vpop.eup %3149  ;;  %v1499_v45 = vadd.f32 %v4629_v54, %v1498_v2  ;;  %vm1741_vm8 = vweird.f32 %v4652_v35  ;;  %v1744_v8 = vand.u32 2147483647, %v4602_v25  ;;  %v936_v53 = vpop.f32.mrf.mxu0 }
 0x192   : > { %v1746_v49 = vand.u32 2147483648, %v4602_v25  ;;  %v3152_v23 = vpop.eup %3151  ;;  %v1739_v31 = vadd.f32 %v4652_v35, %v1738_v5  ;;  %v4692_v59 = vadd.f32 1.0, %v3150_v1  ;;  %3157 = vpow2.f32 %v1245_v16  ;;  %vm4718_vm11 = vmor %vm1740_vm7, %vm1741_vm8 }
 0x193   : > { %v1151_v44 = vmul.f32 1.442695, %v1073_v60  ;;  %v1984_v58 = vand.u32 2147483647, %v4608_v20  ;;  %v1986_v33 = vand.u32 2147483648, %v4608_v20  ;;  %v4696_v19 = vadd.f32 1.0, %v3152_v23 }
 0x194   : > { %v1105_v11 = vsub.f32 0.0, %v1015_v18  ;;  %v3154_v50 = vpop.eup %3153  ;;  %v1979_v61 = vadd.f32 %v4660_v14, %v1978_v21  ;;  %vm1981_vm10 = vweird.f32 %v4660_v14  ;;  %3159 = vrcp.f32 %v4692_v59 }
 0x195   : > { %v1183_v57 = vmul.f32 1.442695, %v1089_v9  ;;  %v1503_v51 = vsel %vm4702_vm9, %v4629_v54, %v1499_v45  ;;  %vm4722_vm12 = vcmp.eq.f32.partialorder %v1744_v8, 8.507059e+37  ;;  %vm1980_vm13 = vweird.f32 %v4608_v20 }
 0x196   : > { %v4709_v15 = vpop.eup %3155  ;;  %3161 = vrcp.f32 %v4696_v19  ;;  %v1743_v54 = vsel %vm4718_vm11, %v4652_v35, %v1739_v31  ;;  %v1747_v32 = vor.u32 1.1754944e-38, %v1746_v49  ;;  %vm4733_vm14 = vmor %vm1980_vm13, %vm1981_vm10  ;;  %vm4737_vm1 = vcmp.eq.f32.partialorder %v1984_v58, 8.507059e+37 }
 0x197   : > { %v2216_v25 = vmul.f32 %v4709_v15, %v4674_v41  ;;  %3163 = vpow2.f32 %v1151_v44  ;;  %v1987_v20 = vor.u32 1.1754944e-38, %v1986_v33  ;;  %v4741_v22 = vadd.f32 1.0, %v3154_v50 }
 0x198   : > { %v1215_v3 = vmul.f32 1.442695, %v1105_v11  ;;  %v3158_v36 = vpop.eup %3157  ;;  %v4745_v35 = vsel %vm4679_vm6, %v1507_v62, %v1503_v51  ;;  %v1983_v29 = vsel %vm4733_vm14, %v4660_v14, %v1979_v61  ;;  %v2224_v4 = vand.u32 2147483647, %v4674_v41 }
 0x199   : > { %3165 = vpow2.f32 %v1183_v57  ;;  %v4753_v37 = vsel %vm4722_vm12, %v1747_v32, %v1743_v54  ;;  %v1519_v27 = vand.u32 2147483647, %v4692_v59  ;;  %v1521_v12 = vand.u32 2147483648, %v4692_v59 }
 0x19a   : > { %3167 = vrcp.f32 %v4741_v22  ;;  %v3160_v48 = vpop.eup %3159  ;;  %v2217_v28 = vsub.f32 1.0, %v2216_v25  ;;  %v2226_v40 = vand.u32 2147483648, %v4674_v41  ;;  %v1759_v17 = vand.u32 2147483647, %v4696_v19 }
 0x19b   : > { %v4760_v14 = vadd.f32 1.0, %v3158_v36  ;;  %v4764_v63 = vsel %vm4737_vm1, %v1987_v20, %v1983_v29  ;;  %v1511_v47 = vmul.f32 %v3160_v48, %v4692_v59  ;;  %v1761_v38 = vand.u32 2147483648, %v4696_v19 }
 0x19c   : > { %v3162_v46 = vpop.eup %3161  ;;  %3169 = vpow2.f32 %v1215_v3  ;;  %vm1515_vm2 = vweird.f32 %v4692_v59  ;;  %vm1755_vm3 = vweird.f32 %v4696_v19  ;;  %vm2221_vm4 = vweird.f32 %v4709_v15 }
 0x19d   : > { %v3164_v24 = vpop.eup %3163  ;;  %v1751_v26 = vmul.f32 %v3162_v46, %v4696_v19  ;;  %3171 = vrcp.f32 %v4760_v14  ;;  %v1512_v56 = vsub.f32 1.0, %v1511_v47  ;;  %vm4773_vm15 = vcmp.eq.f32.partialorder %v1519_v27, 8.507059e+37  ;;  %v1016_v47 = vpop.f32.mrf.mxu2 }
 0x19e   : > { %v1522_v52 = vor.u32 1.1754944e-38, %v1521_v12  ;;  %v2218_v2 = vmul.f32 %v4709_v15, %v2217_v28  ;;  %vm4778_vm0 = vcmp.eq.f32.partialorder %v1759_v17, 8.507059e+37  ;;  %v1055_v60 = vadd.f32 %v4613_v13, %v1054_v10 }
 0x19f   : > { %v3166_v55 = vpop.eup %3165  ;;  %v1752_v7 = vsub.f32 1.0, %v1751_v26  ;;  %vm2220_vm5 = vweird.f32 %v4674_v41  ;;  %v1513_v62 = vmul.f32 %v3160_v48, %v1512_v56  ;;  %vm1516_vm6 = vweird.f32 %v3160_v48 }
 0x1a0   : > { %v3168_v43 = vpop.eup %3167  ;;  %v1762_v18 = vor.u32 1.1754944e-38, %v1761_v38  ;;  %v4784_v21 = vadd.f32 1.0, %v3164_v24  ;;  %vm1756_vm7 = vweird.f32 %v3162_v46  ;;  %v4788_v1 = vadd.f32 %v4613_v13, %v936_v53  ;;  %vm1517_vm8 = vmor %vm1515_vm2, %vm1516_vm6  ;;  %v1056_v38 = vpop.f32.mrf.mxu3 }
 0x1a1   : > { %v1753_v16 = vmul.f32 %v3162_v46, %v1752_v7  ;;  %v1991_v9 = vmul.f32 %v3168_v43, %v4741_v22  ;;  %v1514_v8 = vadd.f32 %v3160_v48, %v1513_v62  ;;  %v1999_v49 = vand.u32 2147483647, %v4741_v22  ;;  %vm1757_vm9 = vmor %vm1755_vm3, %vm1756_vm7 }
 0x1a2   : > { %v3170_v45 = vpop.eup %3169  ;;  %v2001_v23 = vand.u32 2147483648, %v4741_v22  ;;  %v4792_v31 = vadd.f32 1.0, %v3166_v55  ;;  %v2219_v58 = vadd.f32 %v4709_v15, %v2218_v2  ;;  %v1121_v50 = vsub.f32 0.0, %v1055_v60  ;;  %vm4820_vm14 = vmor %vm2220_vm5, %vm2221_vm4 }
 0x1a3   : > { %v3172_v44 = vpop.eup %3171  ;;  %v1754_v33 = vadd.f32 %v3162_v46, %v1753_v16  ;;  %v1992_v11 = vsub.f32 1.0, %v1991_v9  ;;  %v1518_v42 = vsel %vm1517_vm8, %v3160_v48, %v1514_v8  ;;  %vm1996_vm10 = vweird.f32 %v3168_v43 }
 0x1a4   : > { %v2231_v61 = vmul.f32 %v3172_v44, %v4760_v14  ;;  %3173 = vrcp.f32 %v4784_v21  ;;  %v1523_v57 = vsel %vm4773_vm15, %v1522_v52, %v1518_v42  ;;  %v4804_v6 = vadd.f32 1.0, %v3170_v45 }
 0x1a5   : > { %v1758_v51 = vsel %vm1757_vm9, %v3162_v46, %v1754_v33  ;;  %v1993_v59 = vmul.f32 %v3168_v43, %v1992_v11  ;;  %v2721_v0 = vpack.c.bf16 %v1523_v57, %v4745_v35  ;;  %3175 = vrcp.f32 %v4792_v31 }
 0x1a6   : > { %v1763_v19 = vsel %vm4778_vm0, %v1762_v18, %v1758_v51  ;;  %v2232_v54 = vsub.f32 1.0, %v2231_v61  ;;  %vm1995_vm11 = vweird.f32 %v4741_v22  ;;  %v2241_v30 = vand.u32 2147483648, %v4760_v14 }
 0x1a7   : > { %v2761_v32 = vpack.c.bf16 %v1763_v19, %v4753_v37  ;;  %v1994_v25 = vadd.f32 %v3168_v43, %v1993_v59  ;;  %2884 = vst [vmem:[%s3617_s13 + $0x30] sm:$0xff] %v2721_v0   ;;  %vm1997_vm12 = vmor %vm1995_vm11, %vm1996_vm10  ;;  %v2002_v34 = vor.u32 1.1754944e-38, %v2001_v23  ;;  %vm2236_vm13 = vweird.f32 %v3172_v44 }
 0x1a8   : > { %v2233_v20 = vmul.f32 %v3172_v44, %v2232_v54  ;;  %v2239_v3 = vand.u32 2147483647, %v4760_v14  ;;  %vm2000_vm1 = vcmp.eq.f32.partialorder %v1999_v49, 8.507059e+37  ;;  %vm2235_vm2 = vweird.f32 %v4760_v14  ;;  %v976_v14 = vpop.f32.mrf.mxu1 }
 0x1a9   : > { %2892 = vst [vmem:[%s3617_s13 + $0x70] sm:$0xff] %v2761_v32   ;;  %v1998_v22 = vsel %vm1997_vm12, %v3168_v43, %v1994_v25  ;;  %v1247_v35 = vmul.f32 1.442695, %v1121_v50  ;;  %v2223_v37 = vsel %vm4820_vm14, %v4709_v15, %v2219_v58  ;;  %3177 = vrcp.f32 %v4804_v6  ;;  %vm2237_vm3 = vmor %vm2235_vm2, %vm2236_vm13 }
 0x1aa   : > { %v4826_v29 = vpop.eup %3173  ;;  %v2003_v27 = vsel %vm2000_vm1, %v2002_v34, %v1998_v22  ;;  %v2234_v12 = vadd.f32 %v3172_v44, %v2233_v20  ;;  %v2227_v48 = vor.u32 1.1754944e-38, %v2226_v40  ;;  %v2242_v17 = vor.u32 1.1754944e-38, %v2241_v30 }
 0x1ab   : > { %v2801_v28 = vpack.c.bf16 %v2003_v27, %v4764_v63  ;;  %v4836_v46 = vpop.eup %3175  ;;  %vm2225_vm4 = vcmp.eq.f32.partialorder %v2224_v4, 8.507059e+37  ;;  %vm2240_vm15 = vcmp.eq.f32.partialorder %v2239_v3, 8.507059e+37  ;;  %3179 = vpow2.f32 %v1247_v35 }
 0x1ac   : > { %v2238_v15 = vsel %vm2237_vm3, %v3172_v44, %v2234_v12  ;;  %v2228_v10 = vsel %vm2225_vm4, %v2227_v48, %v2223_v37  ;;  %v1074_v40 = vsub.f32 0.0, %v4788_v1  ;;  %v1526_v26 = vmul.f32 %v4826_v29, %v4784_v21 }
 0x1ad   : > { %2900 = vst [vmem:[%s3617_s13 + $0xb0] sm:$0xff] %v2801_v28   ;;  %v2243_v24 = vsel %vm2240_vm15, %v2242_v17, %v2238_v15  ;;  %v977_v56 = vadd.f32 %v4613_v13, %v976_v14  ;;  %v1766_v41 = vmul.f32 %v4836_v46, %v4792_v31  ;;  %v1017_v39 = vadd.f32 %v4613_v13, %v1016_v47 }
 0x1ae   : > { %v2841_v63 = vpack.c.bf16 %v2243_v24, %v2228_v10  ;;  %v1153_v4 = vmul.f32 1.442695, %v1074_v40  ;;  %v1057_v52 = vadd.f32 %v4613_v13, %v1056_v38  ;;  %v1527_v5 = vsub.f32 1.0, %v1526_v26 }
 0x1af   : > { %v4849_v53 = vpop.eup %3177  ;;  %v1090_v55 = vsub.f32 0.0, %v977_v56  ;;  %v1106_v2 = vsub.f32 0.0, %v1017_v39  ;;  %v1767_v62 = vsub.f32 1.0, %v1766_v41  ;;  %v1534_v23 = vand.u32 2147483647, %v4784_v21 }
 0x1b0   : > { %2908 = vst [vmem:[%s3617_s13 + $0xf0] sm:$0xff] %v2841_v63   ;;  %3181 = vpow2.f32 %v1153_v4  ;;  %v1122_v7 = vsub.f32 0.0, %v1057_v52  ;;  %v2006_v18 = vmul.f32 %v4849_v53, %v4804_v6  ;;  %v1528_v13 = vmul.f32 %v4826_v29, %v1527_v5 }
 0x1b1   : > { %v1185_v60 = vmul.f32 1.442695, %v1090_v55  ;;  %v3180_v43 = vpop.eup %3179  ;;  %v1217_v16 = vmul.f32 1.442695, %v1106_v2  ;;  %v1768_v8 = vmul.f32 %v4836_v46, %v1767_v62  ;;  %vm1530_vm0 = vweird.f32 %v4784_v21 }
 0x1b2   : > { %v1249_v9 = vmul.f32 1.442695, %v1122_v7  ;;  %v4854_v1 = vadd.f32 1.0, %v3180_v43  ;;  %v2007_v49 = vsub.f32 1.0, %v2006_v18  ;;  %v1536_v58 = vand.u32 2147483648, %v4784_v21 }
 0x1b3   : > { %3183 = vpow2.f32 %v1185_v60  ;;  %v1529_v11 = vadd.f32 %v4826_v29, %v1528_v13  ;;  %vm1531_vm5 = vweird.f32 %v4826_v29  ;;  %vm1770_vm6 = vweird.f32 %v4792_v31 }
 0x1b4   : > { %3185 = vpow2.f32 %v1217_v16  ;;  %v1769_v42 = vadd.f32 %v4836_v46, %v1768_v8  ;;  %vm1771_vm7 = vweird.f32 %v4836_v46  ;;  %v2008_v61 = vmul.f32 %v4849_v53, %v2007_v49  ;;  %vm4884_vm9 = vmor %vm1530_vm0, %vm1531_vm5 }
 0x1b5   : > { %3187 = vrcp.f32 %v4854_v1  ;;  %vm4875_vm8 = vcmp.eq.f32.partialorder %v1534_v23, 8.507059e+37  ;;  %v1776_v0 = vand.u32 2147483648, %v4792_v31  ;;  %v1537_v25 = vor.u32 1.1754944e-38, %v1536_v58  ;;  %vm4896_vm10 = vmor %vm1770_vm6, %vm1771_vm7 }
 0x1b6   : > { %v3182_v45 = vpop.eup %3181  ;;  %3189 = vpow2.f32 %v1249_v9  ;;  %v1774_v30 = vand.u32 2147483647, %v4792_v31  ;;  %v2016_v34 = vand.u32 2147483648, %v4804_v6  ;;  %v1533_v20 = vsel %vm4884_vm9, %v4826_v29, %v1529_v11 }
 0x1b7   : > { %v4860_v44 = vadd.f32 1.0, %v3182_v45  ;;  %vm2010_vm11 = vweird.f32 %v4804_v6  ;;  %vm2011_vm12 = vweird.f32 %v4849_v53  ;;  %v1773_v21 = vsel %vm4896_vm10, %v4836_v46, %v1769_v42 }
 0x1b8   : > { %v4907_v36 = vadd.f32 %v4849_v53, %v2008_v61  ;;  %v1777_v29 = vor.u32 1.1754944e-38, %v1776_v0  ;;  %v2014_v37 = vand.u32 2147483647, %v4804_v6  ;;  %v1538_v48 = vsel %vm4875_vm8, %v1537_v25, %v1533_v20  ;;  %vm4925_vm14 = vmor %vm2010_vm11, %vm2011_vm12 }
 0x1b9   : > { %v3184_v33 = vpop.eup %3183  ;;  %3191 = vrcp.f32 %v4860_v44  ;;  %v1549_v27 = vand.u32 2147483647, %v4860_v44  ;;  %v1551_v12 = vand.u32 2147483648, %v4860_v44  ;;  %vm1775_vm13 = vcmp.eq.f32.partialorder %v1774_v30, 8.507059e+37 }
 0x1ba   : > { %v3186_v50 = vpop.eup %3185  ;;  %v4871_v57 = vadd.f32 1.0, %v3184_v33  ;;  %v2017_v28 = vor.u32 1.1754944e-38, %v2016_v34  ;;  %v4919_v14 = vsel %vm1775_vm13, %v1777_v29, %v1773_v21  ;;  %v2254_v15 = vand.u32 2147483647, %v4854_v1 }
 0x1bb   : > { %v4873_v51 = vpop.eup %3187  ;;  %v4880_v19 = vadd.f32 1.0, %v3186_v50  ;;  %v2256_v47 = vand.u32 2147483648, %v4854_v1  ;;  %v2013_v10 = vsel %vm4925_vm14, %v4849_v53, %v4907_v36  ;;  %vm1545_vm1 = vweird.f32 %v4860_v44 }
 0x1bc   : > { %v3190_v54 = vpop.eup %3189  ;;  %3193 = vrcp.f32 %v4871_v57  ;;  %v2246_v31 = vmul.f32 %v4873_v51, %v4854_v1  ;;  %vm4937_vm2 = vcmp.eq.f32.partialorder %v1549_v27, 8.507059e+37  ;;  %v1552_v26 = vor.u32 1.1754944e-38, %v1551_v12 }
 0x1bd   : > { %3195 = vrcp.f32 %v4880_v19  ;;  %v4911_v22 = vadd.f32 1.0, %v3190_v54  ;;  %v1789_v41 = vand.u32 2147483647, %v4871_v57  ;;  %vm4943_vm3 = vcmp.eq.f32.partialorder %v2014_v37, 8.507059e+37 }
 0x1be   : > { %v2247_v24 = vsub.f32 1.0, %v2246_v31  ;;  %vm2250_vm4 = vweird.f32 %v4854_v1  ;;  %vm2251_vm15 = vweird.f32 %v4873_v51  ;;  %vm1785_vm5 = vweird.f32 %v4871_v57 }
 0x1bf   : > { %v3192_v35 = vpop.eup %3191  ;;  %3197 = vrcp.f32 %v4911_v22  ;;  %v1791_v55 = vand.u32 2147483648, %v4871_v57  ;;  %v2029_v2 = vand.u32 2147483647, %v4880_v19  ;;  %vm2025_vm6 = vweird.f32 %v4880_v19 }
 0x1c0   : > { %v1541_v17 = vmul.f32 %v3192_v35, %v4860_v44  ;;  %vm1546_vm0 = vweird.f32 %v3192_v35  ;;  %v2248_v7 = vmul.f32 %v4873_v51, %v2247_v24  ;;  %vm4957_vm9 = vcmp.eq.f32.partialorder %v1789_v41, 8.507059e+37 }
 0x1c1   : > { %vm1547_vm7 = vmor %vm1545_vm1, %vm1546_vm0  ;;  %v2031_v16 = vand.u32 2147483648, %v4880_v19  ;;  %v1792_v23 = vor.u32 1.1754944e-38, %v1791_v55  ;;  %vm4965_vm11 = vcmp.eq.f32.partialorder %v2029_v2, 8.507059e+37  ;;  %v2269_v59 = vand.u32 2147483647, %v4911_v22 }
 0x1c2   : > { %v3194_v38 = vpop.eup %3193  ;;  %v1542_v40 = vsub.f32 1.0, %v1541_v17  ;;  %v2249_v58 = vadd.f32 %v4873_v51, %v2248_v7  ;;  %v2271_v0 = vand.u32 2147483648, %v4911_v22  ;;  %v2018_v25 = vsel %vm4943_vm3, %v2017_v28, %v2013_v10  ;;  %vm4985_vm1 = vmor %vm2250_vm4, %vm2251_vm15 }
 0x1c3   : > { %v3196_v6 = vpop.eup %3195  ;;  %v1781_v56 = vmul.f32 %v3194_v38, %v4871_v57  ;;  %vm1786_vm8 = vweird.f32 %v3194_v38  ;;  %v2032_v61 = vor.u32 1.1754944e-38, %v2031_v16  ;;  %v2257_v36 = vor.u32 1.1754944e-38, %v2256_v47 }
 0x1c4   : > { %v1543_v39 = vmul.f32 %v3192_v35, %v1542_v40  ;;  %v2021_v52 = vmul.f32 %v3196_v6, %v4880_v19  ;;  %vm2026_vm10 = vweird.f32 %v3196_v6  ;;  %vm1787_vm12 = vmor %vm1785_vm5, %vm1786_vm8  ;;  %v2253_v20 = vsel %vm4985_vm1, %v4873_v51, %v2249_v58 }
 0x1c5   : > { %v1782_v53 = vsub.f32 1.0, %v1781_v56  ;;  %v3198_v43 = vpop.eup %3197  ;;  %vm2027_vm13 = vmor %vm2025_vm6, %vm2026_vm10  ;;  %v2272_v31 = vor.u32 1.1754944e-38, %v2271_v0  ;;  %vm2255_vm4 = vcmp.eq.f32.partialorder %v2254_v15, 8.507059e+37  ;;  %vm2270_vm15 = vcmp.eq.f32.partialorder %v2269_v59, 8.507059e+37 }
 0x1c6   : > { %v1544_v5 = vadd.f32 %v3192_v35, %v1543_v39  ;;  %v2022_v60 = vsub.f32 1.0, %v2021_v52  ;;  %v2261_v45 = vmul.f32 %v3198_v43, %v4911_v22  ;;  %vm2266_vm14 = vweird.f32 %v3198_v43 }
 0x1c7   : > { %v1783_v62 = vmul.f32 %v3194_v38, %v1782_v53  ;;  %v2258_v29 = vsel %vm2255_vm4, %v2257_v36, %v2253_v20 }
 0x1c8   : > { %v1548_v9 = vsel %vm1547_vm7, %v3192_v35, %v1544_v5  ;;  %v2023_v13 = vmul.f32 %v3196_v6, %v2022_v60  ;;  %v2262_v50 = vsub.f32 1.0, %v2261_v45 }
 0x1c9   : > { %v1553_v8 = vsel %vm4937_vm2, %v1552_v26, %v1548_v9  ;;  %v1784_v49 = vadd.f32 %v3194_v38, %v1783_v62  ;;  %vm2265_vm2 = vweird.f32 %v4911_v22 }
 0x1ca   : > { %v2726_v33 = vpack.c.bf16 %v1553_v8, %v1538_v48  ;;  %v2024_v11 = vadd.f32 %v3196_v6, %v2023_v13  ;;  %v2263_v57 = vmul.f32 %v3198_v43, %v2262_v50  ;;  %vm2267_vm3 = vmor %vm2265_vm2, %vm2266_vm14 }
 0x1cb   : > { %v1788_v42 = vsel %vm1787_vm12, %v3194_v38, %v1784_v49 }
 0x1cc   : > { %2885 = vst [vmem:[%s3617_s13 + $0x38] sm:$0xff] %v2726_v33   ;;  %v1793_v54 = vsel %vm4957_vm9, %v1792_v23, %v1788_v42  ;;  %v2028_v32 = vsel %vm2027_vm13, %v3196_v6, %v2024_v11  ;;  %v2264_v21 = vadd.f32 %v3198_v43, %v2263_v57 }
 0x1cd   : > { %v2766_v30 = vpack.c.bf16 %v1793_v54, %v4919_v14  ;;  %v2033_v34 = vsel %vm4965_vm11, %v2032_v61, %v2028_v32 }
 0x1ce   : > { %v2806_v3 = vpack.c.bf16 %v2033_v34, %v2018_v25  ;;  %v2268_v35 = vsel %vm2267_vm3, %v3198_v43, %v2264_v21 }
 0x1cf   : > { %2893 = vst [vmem:[%s3617_s13 + $0x78] sm:$0xff] %v2766_v30   ;;  %v2273_v37 = vsel %vm2270_vm15, %v2272_v31, %v2268_v35 }
 0x1d0   : > { %2901 = vst [vmem:[%s3617_s13 + $0xb8] sm:$0xff] %v2806_v3   ;;  %v2846_v27 = vpack.c.bf16 %v2273_v37, %v2258_v29 }
 0x1d2   : > { %2909 = vst [vmem:[%s3617_s13 + $0xf8] sm:$0xff] %v2846_v27  }
 0x1d3 PF: > { %s15_s20 = sadd.s32 1, %s3223_s20   ;;  %s5164_s18 = smov %s3219_s19 }
 0x1d4   : > { %p12_p5 = scmp.ge.s32.totalorder %s15_s20, 6   ;;  %s5165_s19 = smov %s5167_s21 }
 0x1d6   :  { %14 = sbr.rel (!%p12_p5) target bundleno = 2 (0x2), region = 73 }

</bundles_post_ra>
